<compile_context>
chip_gen: v7x
topology: tpu7x:2x2x1
jax: 0.10.0
libtpu: 0.0.40
codegen_flags: <defaults>
</compile_context>

<pallas_src>
import functools

import jax
import jax.numpy as jnp
from jax.experimental import pallas as pl
from jax.experimental.pallas import tpu as pltpu

S_SCALE = 64.0    # AngularPenaltySMLoss sphereface default s
M_MARGIN = 1.35   # AngularPenaltySMLoss sphereface default m
EPS = 1e-7

K_PAD = 32        # im2col contraction: 3*3*3 = 27 -> 32 (zero pad, lane-layout friendly)
F_PAD = 384       # embedding dim: 257 -> 384 (zero pad)
C_PAD = 128       # classes: 2 -> 128 (zero pad, masked in-kernel)
C_STEM = 2048     # backbone output channels (ResNet-50 trunk width)
CHUNK = 512       # stem channels processed per grid step
FC_DIM = 512      # nn.Linear(2048, 512)


# ---------------------------- fused Pallas kernel ----------------------------

def fused_head_kernel(p_ref, cw_ref, cb_ref, fcw_ref, fcb_ref,
                      fc1w_ref, fc1b_ref, pw_ref, pb_ref,
                      lwn_ref, onehot_ref, cmask_ref, o_ref, acc_ref, *, B, P):
    k = pl.program_id(0)

    @pl.when(k == 0)
    def _():
        acc_ref[...] = jnp.zeros_like(acc_ref)

    # conv stem for this channel chunk: (BP, K_PAD) x (K_PAD, CHUNK) on the MXU
    y = jnp.dot(p_ref[...], cw_ref[...], preferred_element_type=jnp.float32)
    y = jnp.maximum(y + cb_ref[...], 0.0).astype(jnp.bfloat16)          # (BP, CHUNK) bf16

    # global average pool per image: in-kernel block-diagonal ones/P operand (bf16 MXU pass)
    BP = y.shape[0]
    rows = jax.lax.broadcasted_iota(jnp.int32, (B, BP), 0)
    cols = jax.lax.broadcasted_iota(jnp.int32, (B, BP), 1)
    pool = jnp.where((cols >= rows * P) & (cols < (rows + 1) * P),
                     1.0 / P, 0.0).astype(jnp.bfloat16)                 # (B, BP)
    feat = jnp.dot(pool, y, preferred_element_type=jnp.float32)         # (B, CHUNK) f32

    # accumulate the fc (2048 -> 512) pre-activation over channel chunks
    acc_ref[...] += jnp.dot(feat.astype(jnp.bfloat16), fcw_ref[...],
                            preferred_element_type=jnp.float32)         # (B, 512)

    @pl.when(k == pl.num_programs(0) - 1)
    def _():
        # fc -> relu (Dropout(p=0.4) is identity in eval mode.
        # TODO(synk): train-mode dropout omitted.)
        h = jnp.maximum(acc_ref[...] + fcb_ref[...], 0.0)               # (B, 512)

        # fc1 -> relu
        h = jnp.dot(h.astype(jnp.bfloat16), fc1w_ref[...], preferred_element_type=jnp.float32)
        h = jnp.maximum(h + fc1b_ref[...], 0.0)                         # (B, 256)

        # projection (assumed Linear 256 -> 257); padded columns are exactly zero
        emb = jnp.dot(h.astype(jnp.bfloat16), pw_ref[...], preferred_element_type=jnp.float32)
        emb = emb + pb_ref[...]                                         # (B, F_PAD)

        # ---- AngularPenaltySMLoss (sphereface) cosine statistics ----
        # loss weight columns are pre-normalized offline; normalize the embedding in f32.
        xn = emb * jax.lax.rsqrt(jnp.maximum(jnp.sum(emb * emb, axis=1, keepdims=True), 1e-24))
        wf = jnp.dot(xn.astype(jnp.bfloat16), lwn_ref[...],
                     preferred_element_type=jnp.float32)                # cos(theta), (B, C_PAD)

        onehot = onehot_ref[...]
        tgt = jnp.sum(wf * onehot, axis=1, keepdims=True)
        tgt = jnp.clip(tgt, -1.0 + EPS, 1.0 - EPS)
        # stabilized denominator: sum over valid non-target classes of exp(s*(cos_j - 1))
        excl = jnp.sum(jnp.exp(S_SCALE * (wf - 1.0)) * (cmask_ref[...] - onehot),
                       axis=1, keepdims=True)

        # pack both stats into one lane-dense (B, 128) slab: col 0 = tgt, col 1 = excl
        col = jax.lax.broadcasted_iota(jnp.int32, o_ref.shape, 1)
        o_ref[...] = jnp.where(col == 0, tgt, jnp.where(col == 1, excl, 0.0))


def fused_forward_stats(patches, params, onehot, cmask, B, P):
    BP, Kp = patches.shape
    assert C_STEM % CHUNK == 0
    n_chunks = C_STEM // CHUNK
    kernel = functools.partial(fused_head_kernel, B=B, P=P)
    return pl.pallas_call(
        kernel,
        out_shape=jax.ShapeDtypeStruct((B, C_PAD), jnp.float32),
        grid_spec=pltpu.PrefetchScalarGridSpec(
            num_scalar_prefetch=0,
            grid=(n_chunks,),
            in_specs=[
                pl.BlockSpec((BP, Kp), lambda k: (0, 0)),        # patches (bf16), resident
                pl.BlockSpec((Kp, CHUNK), lambda k: (0, k)),     # conv_w chunk (bf16)
                pl.BlockSpec((1, CHUNK), lambda k: (0, k)),      # conv_b chunk (f32)
                pl.BlockSpec((CHUNK, FC_DIM), lambda k: (k, 0)), # fc_w chunk (bf16)
                pl.BlockSpec((1, FC_DIM), lambda k: (0, 0)),     # fc_b
                pl.BlockSpec((FC_DIM, 256), lambda k: (0, 0)),   # fc1_w (bf16)
                pl.BlockSpec((1, 256), lambda k: (0, 0)),        # fc1_b
                pl.BlockSpec((256, F_PAD), lambda k: (0, 0)),    # proj_w (bf16)
                pl.BlockSpec((1, F_PAD), lambda k: (0, 0)),      # proj_b
                pl.BlockSpec((F_PAD, C_PAD), lambda k: (0, 0)),  # pre-normalized loss W (bf16)
                pl.BlockSpec((B, C_PAD), lambda k: (0, 0)),      # onehot
                pl.BlockSpec((1, C_PAD), lambda k: (0, 0)),      # valid-class mask
            ],
            out_specs=pl.BlockSpec((B, C_PAD), lambda k: (0, 0)),
            scratch_shapes=[pltpu.VMEM((B, FC_DIM), jnp.float32)],   # fc pre-activation acc
        ),
        compiler_params=pltpu.CompilerParams(
            dimension_semantics=("arbitrary",),   # chunk axis is a reduction
        ),
    )(patches, params["conv_w"], params["conv_b"],
      params["fc_w"], params["fc_b"], params["fc1_w"], params["fc1_b"],
      params["proj_w"], params["proj_b"], params["loss_wn"], onehot, cmask)


# ---------------------------- glue (plain JAX) ----------------------------

def im2col_3x3_padded(x_nchw):
    """NCHW -> (B*H*W, K_PAD) bf16 im2col patches (3x3, same padding), K zero-padded to 32."""
    B, C, H, W = x_nchw.shape
    x = jnp.transpose(x_nchw, (0, 2, 3, 1))                      # NCHW -> NHWC
    xp = jnp.pad(x, ((0, 0), (1, 1), (1, 1), (0, 0)))
    taps = [xp[:, kh:kh + H, kw:kw + W, :] for kh in range(3) for kw in range(3)]
    patches = jnp.stack(taps, axis=3).reshape(B, H * W, 9 * C)   # (B, P, 27)
    patches = jnp.pad(patches, ((0, 0), (0, 0), (0, K_PAD - 9 * C)))
    return patches.reshape(B * H * W, K_PAD).astype(jnp.bfloat16)


def init_params(key):
    ks = jax.random.split(key, 5)

    def lin(k, fan_in, fan_out):
        kw, kb = jax.random.split(k)
        bound = 1.0 / float(fan_in) ** 0.5
        w = jax.random.uniform(kw, (fan_in, fan_out), jnp.float32, -bound, bound)
        b = jax.random.uniform(kb, (fan_out,), jnp.float32, -bound, bound)
        return w, b

    p = {}
    # TODO(synk): pretrained torchvision ResNet-50 trunk cannot be reproduced in-script;
    # replaced by a single 3x3 conv stem (3->2048) + ReLU + global average pool stand-in.
    p["conv_w"], p["conv_b"] = lin(ks[0], 27, C_STEM)
    p["fc_w"], p["fc_b"] = lin(ks[1], C_STEM, 512)               # nn.Linear(2048, 512)
    p["fc1_w"], p["fc1_b"] = lin(ks[2], 512, 256)                # nn.Linear(512, 256)
    # TODO(synk): `Projection` class is undefined in the source; assumed Linear(256->257)
    # since Model sets self.features = 257 when projection=True.
    p["proj_w"], p["proj_b"] = lin(ks[3], 256, 257)
    bound = 1.0 / 257.0 ** 0.5
    p["loss_w_t"] = jax.random.uniform(ks[4], (257, 2), jnp.float32, -bound, bound)
    return p


def prepare_params(p):
    """One-time layout prep: zero-pad awkward dims, pre-normalize loss weight, cast to bf16."""
    q = {}
    q["conv_w"] = jnp.pad(p["conv_w"], ((0, K_PAD - p["conv_w"].shape[0]), (0, 0))).astype(jnp.bfloat16)
    q["conv_b"] = p["conv_b"].reshape(1, -1).astype(jnp.float32)
    q["fc_w"] = p["fc_w"].astype(jnp.bfloat16)
    q["fc_b"] = p["fc_b"].reshape(1, -1).astype(jnp.float32)
    q["fc1_w"] = p["fc1_w"].astype(jnp.bfloat16)
    q["fc1_b"] = p["fc1_b"].reshape(1, -1).astype(jnp.float32)
    q["proj_w"] = jnp.pad(p["proj_w"], ((0, 0), (0, F_PAD - p["proj_w"].shape[1]))).astype(jnp.bfloat16)
    q["proj_b"] = jnp.pad(p["proj_b"], ((0, F_PAD - p["proj_b"].shape[0]),)).reshape(1, -1).astype(jnp.float32)
    # sphereface weight: column-normalize offline (== F.normalize(W, dim=0) in the loss),
    # then zero-pad.  Padded columns stay zero -> masked out in-kernel.
    w = p["loss_w_t"]                                             # (257, 2)
    wn = w / jnp.maximum(jnp.sqrt(jnp.sum(w * w, axis=0, keepdims=True)), 1e-12)
    wn = jnp.pad(wn, ((0, F_PAD - wn.shape[0]), (0, C_PAD - wn.shape[1])))
    q["loss_wn"] = wn.astype(jnp.bfloat16)
    return q


def model_forward(prepped, x, labels, num_classes=2):
    B, _, H, W = x.shape
    P = H * W
    patches = im2col_3x3_padded(x)                                        # (B*P, K_PAD) bf16
    onehot = jax.nn.one_hot(labels, C_PAD, dtype=jnp.float32)             # (B, C_PAD)
    cmask = (jnp.arange(C_PAD) < num_classes).astype(jnp.float32).reshape(1, C_PAD)

    stats = fused_forward_stats(patches, prepped, onehot, cmask, B, P)    # (B, C_PAD)
    tgt = stats[:, 0:1]           # clipped cos(theta_y)
    excl = stats[:, 1:2]          # sum_{j != y} exp(s*(cos_j - 1))   (shifted by s)

    # Final per-sample scalar math kept in JAX (arccos/cos not guaranteed to lower in Mosaic),
    # in numerically-stable shifted form: L = (num - s) - log(exp(num - s) + excl_shifted).
    num = S_SCALE * jnp.cos(M_MARGIN * jnp.arccos(tgt))
    L = (num - S_SCALE) - jnp.log(jnp.exp(num - S_SCALE) + excl)
    return -jnp.mean(L)


if __name__ == "__main__":
    key = jax.random.PRNGKey(0)
    pkey, xkey = jax.random.split(key)
    params = prepare_params(init_params(pkey))
    x = jax.random.normal(xkey, (2, 3, 16, 16), jnp.float32)   # NCHW, like PyTorch
    labels = jnp.array([0, 1], dtype=jnp.int32)
    loss = jax.jit(model_forward)(params, x, labels)
    jax.block_until_ready(loss)
    print("KERNEL_OK")
</pallas_src>

<mosaic_0001>
module attributes {stable_mosaic.version = 11 : i64} {
  func.func @fused_head_kernel(%arg0: i32, %arg1: memref<512x32xbf16, #tpu.memory_space<vmem>>, %arg2: memref<32x512xbf16, #tpu.memory_space<vmem>>, %arg3: memref<1x512xf32, #tpu.memory_space<vmem>>, %arg4: memref<512x512xbf16, #tpu.memory_space<vmem>>, %arg5: memref<1x512xf32, #tpu.memory_space<vmem>>, %arg6: memref<512x256xbf16, #tpu.memory_space<vmem>>, %arg7: memref<1x256xf32, #tpu.memory_space<vmem>>, %arg8: memref<256x384xbf16, #tpu.memory_space<vmem>>, %arg9: memref<1x384xf32, #tpu.memory_space<vmem>>, %arg10: memref<384x128xbf16, #tpu.memory_space<vmem>>, %arg11: memref<2x128xf32, #tpu.memory_space<vmem>>, %arg12: memref<1x128xf32, #tpu.memory_space<vmem>>, %arg13: memref<2x128xf32, #tpu.memory_space<vmem>>, %arg14: memref<2x512xf32, #tpu.memory_space<vmem>>) attributes {dimension_semantics = [#tpu.dimension_semantics<arbitrary>], iteration_bounds = array<i64: 4>, scalar_prefetch = 0 : i64, scratch_operands = 1 : i64, tpu.core_type = #tpu.core_type<tc>, window_params = [{pipeline_mode = #tpu.pipeline_mode<synchronous>, transform_indices = @transform_0, window_bounds = array<i64: 512, 32>}, {transform_indices = @transform_1, window_bounds = array<i64: 32, 512>}, {transform_indices = @transform_2, window_bounds = array<i64: 1, 512>}, {transform_indices = @transform_3, window_bounds = array<i64: 512, 512>}, {pipeline_mode = #tpu.pipeline_mode<synchronous>, transform_indices = @transform_4, window_bounds = array<i64: 1, 512>}, {pipeline_mode = #tpu.pipeline_mode<synchronous>, transform_indices = @transform_5, window_bounds = array<i64: 512, 256>}, {pipeline_mode = #tpu.pipeline_mode<synchronous>, transform_indices = @transform_6, window_bounds = array<i64: 1, 256>}, {pipeline_mode = #tpu.pipeline_mode<synchronous>, transform_indices = @transform_7, window_bounds = array<i64: 256, 384>}, {pipeline_mode = #tpu.pipeline_mode<synchronous>, transform_indices = @transform_8, window_bounds = array<i64: 1, 384>}, {pipeline_mode = #tpu.pipeline_mode<synchronous>, transform_indices = @transform_9, window_bounds = array<i64: 384, 128>}, {pipeline_mode = #tpu.pipeline_mode<synchronous>, transform_indices = @transform_10, window_bounds = array<i64: 2, 128>}, {pipeline_mode = #tpu.pipeline_mode<synchronous>, transform_indices = @transform_11, window_bounds = array<i64: 1, 128>}, {pipeline_mode = #tpu.pipeline_mode<synchronous>, transform_indices = @transform_12, window_bounds = array<i64: 2, 128>}]} {
    %c0_i32 = arith.constant 0 : i32
    %0 = arith.cmpi eq, %arg0, %c0_i32 : i32
    %1 = arith.extui %0 : i1 to i32
    %c0_i32_0 = arith.constant 0 : i32
    %2 = arith.cmpi ne, %1, %c0_i32_0 : i32
    scf.if %2 {
      %cst_19 = arith.constant 0.000000e+00 : f32
      %37 = vector.broadcast %cst_19 : f32 to vector<2x512xf32>
      %c0_20 = arith.constant 0 : index
      %c0_21 = arith.constant 0 : index
      %38 = vector.load %arg14[%c0_20, %c0_21] : memref<2x512xf32, #tpu.memory_space<vmem>>, vector<2x512xf32>
      tpu.vector_store %arg14[%c0_20, %c0_21], %37 {strides = array<i32>} : memref<2x512xf32, #tpu.memory_space<vmem>>, vector<2x512xf32>,
    } else {
    }
    %c0 = arith.constant 0 : index
    %c0_1 = arith.constant 0 : index
    %3 = vector.load %arg1[%c0, %c0_1] : memref<512x32xbf16, #tpu.memory_space<vmem>>, vector<512x32xbf16>
    %c0_2 = arith.constant 0 : index
    %c0_3 = arith.constant 0 : index
    %4 = vector.load %arg2[%c0_2, %c0_3] : memref<32x512xbf16, #tpu.memory_space<vmem>>, vector<32x512xbf16>
    %cst = arith.constant dense<0.000000e+00> : vector<512x512xf32>
    %5 = tpu.matmul %3, %4, %cst {dimension_numbers = #tpu.dot_dimension_numbers<[1], [0], [0], [1], [0, 0, 1, 1], [], []>} : vector<512x32xbf16>, vector<32x512xbf16>, vector<512x512xf32> -> vector<512x512xf32>
    %c0_4 = arith.constant 0 : index
    %c0_5 = arith.constant 0 : index
    %6 = vector.load %arg3[%c0_4, %c0_5] : memref<1x512xf32, #tpu.memory_space<vmem>>, vector<1x512xf32>
    %7 = vector.broadcast %6 : vector<1x512xf32> to vector<512x512xf32>
    %8 = arith.addf %5, %7 : vector<512x512xf32>
    %cst_6 = arith.constant 0.000000e+00 : f32
    %9 = vector.broadcast %cst_6 : f32 to vector<512x512xf32>
    %10 = arith.maximumf %8, %9 : vector<512x512xf32>
    %11 = arith.truncf %10 : vector<512x512xf32> to vector<512x512xbf16>
    %12 = tpu.iota {dimensions = array<i32: 0>} : vector<2x512xi32>
    %13 = tpu.iota {dimensions = array<i32: 1>} : vector<2x512xi32>
    %c256_i32 = arith.constant 256 : i32
    %14 = vector.broadcast %c256_i32 : i32 to vector<2x512xi32>
    %15 = arith.muli %12, %14 : vector<2x512xi32>
    %16 = arith.cmpi sge, %13, %15 : vector<2x512xi32>
    %c1_i32 = arith.constant 1 : i32
    %17 = vector.broadcast %c1_i32 : i32 to vector<2x512xi32>
    %18 = arith.addi %12, %17 : vector<2x512xi32>
    %c256_i32_7 = arith.constant 256 : i32
    %19 = vector.broadcast %c256_i32_7 : i32 to vector<2x512xi32>
    %20 = arith.muli %18, %19 : vector<2x512xi32>
    %21 = arith.cmpi slt, %13, %20 : vector<2x512xi32>
    %22 = arith.andi %16, %21 : vector<2x512xi1>
    %cst_8 = arith.constant 3.906250e-03 : f32
    %cst_9 = arith.constant 0.000000e+00 : f32
    %23 = vector.broadcast %cst_8 : f32 to vector<2x512xf32>
    %24 = vector.broadcast %cst_9 : f32 to vector<2x512xf32>
    %25 = arith.select %22, %23, %24 : vector<2x512xi1>, vector<2x512xf32>
    %26 = arith.truncf %25 : vector<2x512xf32> to vector<2x512xbf16>
    %cst_10 = arith.constant dense<0.000000e+00> : vector<2x512xf32>
    %27 = tpu.matmul %26, %11, %cst_10 {dimension_numbers = #tpu.dot_dimension_numbers<[1], [0], [0], [1], [0, 0, 1, 1], [], []>} : vector<2x512xbf16>, vector<512x512xbf16>, vector<2x512xf32> -> vector<2x512xf32>
    %c0_11 = arith.constant 0 : index
    %c0_12 = arith.constant 0 : index
    %28 = vector.load %arg14[%c0_11, %c0_12] : memref<2x512xf32, #tpu.memory_space<vmem>>, vector<2x512xf32>
    %29 = arith.truncf %27 : vector<2x512xf32> to vector<2x512xbf16>
    %c0_13 = arith.constant 0 : index
    %c0_14 = arith.constant 0 : index
    %30 = vector.load %arg4[%c0_13, %c0_14] : memref<512x512xbf16, #tpu.memory_space<vmem>>, vector<512x512xbf16>
    %cst_15 = arith.constant dense<0.000000e+00> : vector<2x512xf32>
    %31 = tpu.matmul %29, %30, %cst_15 {dimension_numbers = #tpu.dot_dimension_numbers<[1], [0], [0], [1], [0, 0, 1, 1], [], []>} : vector<2x512xbf16>, vector<512x512xbf16>, vector<2x512xf32> -> vector<2x512xf32>
    %32 = arith.addf %28, %31 : vector<2x512xf32>
    %c0_16 = arith.constant 0 : index
    %c0_17 = arith.constant 0 : index
    %33 = vector.load %arg14[%c0_16, %c0_17] : memref<2x512xf32, #tpu.memory_space<vmem>>, vector<2x512xf32>
    tpu.vector_store %arg14[%c0_16, %c0_17], %32 {strides = array<i32>} : memref<2x512xf32, #tpu.memory_space<vmem>>, vector<2x512xf32>,
    %c3_i32 = arith.constant 3 : i32
    %34 = arith.cmpi eq, %arg0, %c3_i32 : i32
    %35 = arith.extui %34 : i1 to i32
    %c0_i32_18 = arith.constant 0 : i32
    %36 = arith.cmpi ne, %35, %c0_i32_18 : i32
    scf.if %36 {
      %c0_19 = arith.constant 0 : index
      %c0_20 = arith.constant 0 : index
      %37 = vector.load %arg14[%c0_19, %c0_20] : memref<2x512xf32, #tpu.memory_space<vmem>>, vector<2x512xf32>
      %c0_21 = arith.constant 0 : index
      %c0_22 = arith.constant 0 : index
      %38 = vector.load %arg5[%c0_21, %c0_22] : memref<1x512xf32, #tpu.memory_space<vmem>>, vector<1x512xf32>
      %39 = vector.broadcast %38 : vector<1x512xf32> to vector<2x512xf32>
      %40 = arith.addf %37, %39 : vector<2x512xf32>
      %cst_23 = arith.constant 0.000000e+00 : f32
      %41 = vector.broadcast %cst_23 : f32 to vector<2x512xf32>
      %42 = arith.maximumf %40, %41 : vector<2x512xf32>
      %43 = arith.truncf %42 : vector<2x512xf32> to vector<2x512xbf16>
      %c0_24 = arith.constant 0 : index
      %c0_25 = arith.constant 0 : index
      %44 = vector.load %arg6[%c0_24, %c0_25] : memref<512x256xbf16, #tpu.memory_space<vmem>>, vector<512x256xbf16>
      %cst_26 = arith.constant dense<0.000000e+00> : vector<2x256xf32>
      %45 = tpu.matmul %43, %44, %cst_26 {dimension_numbers = #tpu.dot_dimension_numbers<[1], [0], [0], [1], [0, 0, 1, 1], [], []>} : vector<2x512xbf16>, vector<512x256xbf16>, vector<2x256xf32> -> vector<2x256xf32>
      %c0_27 = arith.constant 0 : index
      %c0_28 = arith.constant 0 : index
      %46 = vector.load %arg7[%c0_27, %c0_28] : memref<1x256xf32, #tpu.memory_space<vmem>>, vector<1x256xf32>
      %47 = vector.broadcast %46 : vector<1x256xf32> to vector<2x256xf32>
      %48 = arith.addf %45, %47 : vector<2x256xf32>
      %cst_29 = arith.constant 0.000000e+00 : f32
      %49 = vector.broadcast %cst_29 : f32 to vector<2x256xf32>
      %50 = arith.maximumf %48, %49 : vector<2x256xf32>
      %51 = arith.truncf %50 : vector<2x256xf32> to vector<2x256xbf16>
      %c0_30 = arith.constant 0 : index
      %c0_31 = arith.constant 0 : index
      %52 = vector.load %arg8[%c0_30, %c0_31] : memref<256x384xbf16, #tpu.memory_space<vmem>>, vector<256x384xbf16>
      %cst_32 = arith.constant dense<0.000000e+00> : vector<2x384xf32>
      %53 = tpu.matmul %51, %52, %cst_32 {dimension_numbers = #tpu.dot_dimension_numbers<[1], [0], [0], [1], [0, 0, 1, 1], [], []>} : vector<2x256xbf16>, vector<256x384xbf16>, vector<2x384xf32> -> vector<2x384xf32>
      %c0_33 = arith.constant 0 : index
      %c0_34 = arith.constant 0 : index
      %54 = vector.load %arg9[%c0_33, %c0_34] : memref<1x384xf32, #tpu.memory_space<vmem>>, vector<1x384xf32>
      %55 = vector.broadcast %54 : vector<1x384xf32> to vector<2x384xf32>
      %56 = arith.addf %53, %55 : vector<2x384xf32>
      %57 = arith.mulf %56, %56 : vector<2x384xf32>
      %cst_35 = arith.constant dense<0.000000e+00> : vector<2xf32>
      %58 = vector.multi_reduction <add>, %57, %cst_35 [1] : vector<2x384xf32> to vector<2xf32>
      %59 = vector.shape_cast %58 : vector<2xf32> to vector<2x1xf32>
      %cst_36 = arith.constant 1.000000e-24 : f32
      %60 = vector.broadcast %cst_36 : f32 to vector<2x1xf32>
      %61 = arith.maximumf %59, %60 : vector<2x1xf32>
      %62 = math.rsqrt %61 : vector<2x1xf32>
      %63 = vector.broadcast %62 : vector<2x1xf32> to vector<2x384xf32>
      %64 = arith.mulf %56, %63 : vector<2x384xf32>
      %65 = arith.truncf %64 : vector<2x384xf32> to vector<2x384xbf16>
      %c0_37 = arith.constant 0 : index
      %c0_38 = arith.constant 0 : index
      %66 = vector.load %arg10[%c0_37, %c0_38] : memref<384x128xbf16, #tpu.memory_space<vmem>>, vector<384x128xbf16>
      %cst_39 = arith.constant dense<0.000000e+00> : vector<2x128xf32>
      %67 = tpu.matmul %65, %66, %cst_39 {dimension_numbers = #tpu.dot_dimension_numbers<[1], [0], [0], [1], [0, 0, 1, 1], [], []>} : vector<2x384xbf16>, vector<384x128xbf16>, vector<2x128xf32> -> vector<2x128xf32>
      %c0_40 = arith.constant 0 : index
      %c0_41 = arith.constant 0 : index
      %68 = vector.load %arg11[%c0_40, %c0_41] : memref<2x128xf32, #tpu.memory_space<vmem>>, vector<2x128xf32>
      %69 = arith.mulf %67, %68 : vector<2x128xf32>
      %cst_42 = arith.constant dense<0.000000e+00> : vector<2xf32>
      %70 = vector.multi_reduction <add>, %69, %cst_42 [1] : vector<2x128xf32> to vector<2xf32>
      %71 = vector.shape_cast %70 : vector<2xf32> to vector<2x1xf32>
      %cst_43 = arith.constant -0.99999988 : f32
      %cst_44 = arith.constant 0.99999988 : f32
      %72 = vector.broadcast %cst_43 : f32 to vector<2x1xf32>
      %73 = arith.maximumf %72, %71 : vector<2x1xf32>
      %74 = vector.broadcast %cst_44 : f32 to vector<2x1xf32>
      %75 = arith.minimumf %74, %73 : vector<2x1xf32>
      %cst_45 = arith.constant 1.000000e+00 : f32
      %76 = vector.broadcast %cst_45 : f32 to vector<2x128xf32>
      %77 = arith.subf %67, %76 : vector<2x128xf32>
      %cst_46 = arith.constant 6.400000e+01 : f32
      %78 = vector.broadcast %cst_46 : f32 to vector<2x128xf32>
      %79 = arith.mulf %78, %77 : vector<2x128xf32>
      %80 = math.exp %79 : vector<2x128xf32>
      %c0_47 = arith.constant 0 : index
      %c0_48 = arith.constant 0 : index
      %81 = vector.load %arg12[%c0_47, %c0_48] : memref<1x128xf32, #tpu.memory_space<vmem>>, vector<1x128xf32>
      %82 = vector.broadcast %81 : vector<1x128xf32> to vector<2x128xf32>
      %83 = arith.subf %82, %68 : vector<2x128xf32>
      %84 = arith.mulf %80, %83 : vector<2x128xf32>
      %cst_49 = arith.constant dense<0.000000e+00> : vector<2xf32>
      %85 = vector.multi_reduction <add>, %84, %cst_49 [1] : vector<2x128xf32> to vector<2xf32>
      %86 = vector.shape_cast %85 : vector<2xf32> to vector<2x1xf32>
      %87 = tpu.iota {dimensions = array<i32: 1>} : vector<2x128xi32>
      %c0_i32_50 = arith.constant 0 : i32
      %88 = vector.broadcast %c0_i32_50 : i32 to vector<2x128xi32>
      %89 = arith.cmpi eq, %87, %88 : vector<2x128xi32>
      %c1_i32_51 = arith.constant 1 : i32
      %90 = vector.broadcast %c1_i32_51 : i32 to vector<2x128xi32>
      %91 = arith.cmpi eq, %87, %90 : vector<2x128xi32>
      %cst_52 = arith.constant 0.000000e+00 : f32
      %92 = vector.shape_cast %86 : vector<2x1xf32> to vector<2x1xf32>
      %93 = vector.broadcast %92 : vector<2x1xf32> to vector<2x128xf32>
      %94 = vector.broadcast %cst_52 : f32 to vector<2x128xf32>
      %95 = arith.select %91, %93, %94 : vector<2x128xi1>, vector<2x128xf32>
      %96 = vector.shape_cast %75 : vector<2x1xf32> to vector<2x1xf32>
      %97 = vector.broadcast %96 : vector<2x1xf32> to vector<2x128xf32>
      %98 = arith.select %89, %97, %95 : vector<2x128xi1>, vector<2x128xf32>
      %c0_53 = arith.constant 0 : index
      %c0_54 = arith.constant 0 : index
      %99 = vector.load %arg13[%c0_53, %c0_54] : memref<2x128xf32, #tpu.memory_space<vmem>>, vector<2x128xf32>
      tpu.vector_store %arg13[%c0_53, %c0_54], %98 {strides = array<i32>} : memref<2x128xf32, #tpu.memory_space<vmem>>, vector<2x128xf32>,
    } else {
    }
    return
  }
  func.func @transform_0(%arg0: i32) -> (i32, i32) {
    %c0_i32 = arith.constant 0 : i32
    %c0_i32_0 = arith.constant 0 : i32
    %c0_i32_1 = arith.constant 0 : i32
    return %c0_i32, %c0_i32_0 : i32, i32
  }
  func.func @transform_1(%arg0: i32) -> (i32, i32) {
    %c0_i32 = arith.constant 0 : i32
    %c0_i32_0 = arith.constant 0 : i32
    return %c0_i32, %arg0 : i32, i32
  }
  func.func @transform_2(%arg0: i32) -> (i32, i32) {
    %c0_i32 = arith.constant 0 : i32
    %c0_i32_0 = arith.constant 0 : i32
    return %c0_i32, %arg0 : i32, i32
  }
  func.func @transform_3(%arg0: i32) -> (i32, i32) {
    %c0_i32 = arith.constant 0 : i32
    %c0_i32_0 = arith.constant 0 : i32
    return %arg0, %c0_i32 : i32, i32
  }
  func.func @transform_4(%arg0: i32) -> (i32, i32) {
    %c0_i32 = arith.constant 0 : i32
    %c0_i32_0 = arith.constant 0 : i32
    %c0_i32_1 = arith.constant 0 : i32
    return %c0_i32, %c0_i32_0 : i32, i32
  }
  func.func @transform_5(%arg0: i32) -> (i32, i32) {
    %c0_i32 = arith.constant 0 : i32
    %c0_i32_0 = arith.constant 0 : i32
    %c0_i32_1 = arith.constant 0 : i32
    return %c0_i32, %c0_i32_0 : i32, i32
  }
  func.func @transform_6(%arg0: i32) -> (i32, i32) {
    %c0_i32 = arith.constant 0 : i32
    %c0_i32_0 = arith.constant 0 : i32
    %c0_i32_1 = arith.constant 0 : i32
    return %c0_i32, %c0_i32_0 : i32, i32
  }
  func.func @transform_7(%arg0: i32) -> (i32, i32) {
    %c0_i32 = arith.constant 0 : i32
    %c0_i32_0 = arith.constant 0 : i32
    %c0_i32_1 = arith.constant 0 : i32
    return %c0_i32, %c0_i32_0 : i32, i32
  }
  func.func @transform_8(%arg0: i32) -> (i32, i32) {
    %c0_i32 = arith.constant 0 : i32
    %c0_i32_0 = arith.constant 0 : i32
    %c0_i32_1 = arith.constant 0 : i32
    return %c0_i32, %c0_i32_0 : i32, i32
  }
  func.func @transform_9(%arg0: i32) -> (i32, i32) {
    %c0_i32 = arith.constant 0 : i32
    %c0_i32_0 = arith.constant 0 : i32
    %c0_i32_1 = arith.constant 0 : i32
    return %c0_i32, %c0_i32_0 : i32, i32
  }
  func.func @transform_10(%arg0: i32) -> (i32, i32) {
    %c0_i32 = arith.constant 0 : i32
    %c0_i32_0 = arith.constant 0 : i32
    %c0_i32_1 = arith.constant 0 : i32
    return %c0_i32, %c0_i32_0 : i32, i32
  }
  func.func @transform_11(%arg0: i32) -> (i32, i32) {
    %c0_i32 = arith.constant 0 : i32
    %c0_i32_0 = arith.constant 0 : i32
    %c0_i32_1 = arith.constant 0 : i32
    return %c0_i32, %c0_i32_0 : i32, i32
  }
  func.func @transform_12(%arg0: i32) -> (i32, i32) {
    %c0_i32 = arith.constant 0 : i32
    %c0_i32_0 = arith.constant 0 : i32
    %c0_i32_1 = arith.constant 0 : i32
    return %c0_i32, %c0_i32_0 : i32, i32
  }
}

</mosaic_0001>

<bundles_post_ra>
// kernel: model_forward.1
= control target key start
LH: loop header
LB: loop body
LE: loop exit
PB: predicated region body
PF: predicated region fallthrough
CT: control target
= control target key end

     0   :  { %s7301_s0 = inlined_call_operand.vmem [shape: bf16[512,32], index: 0, kind: input, shape index: {}]   ;;  %s7302_s1 = inlined_call_operand.hbm [shape: bf16[32,2048], index: 1, kind: input, shape index: {}]   ;;  %s7303_s2 = inlined_call_operand.hbm [shape: f32[1,2048], index: 2, kind: input, shape index: {}]   ;;  %s7304_s3 = inlined_call_operand.hbm [shape: bf16[2048,512], index: 3, kind: input, shape index: {}]   ;;  %s7305_s4 = inlined_call_operand.hbm [shape: f32[1,512], index: 4, kind: input, shape index: {}]   ;;  %s7306_s5 = inlined_call_operand.hbm [shape: bf16[512,256], index: 5, kind: input, shape index: {}]   ;;  %s7307_s6 = inlined_call_operand.hbm [shape: f32[1,256], index: 6, kind: input, shape index: {}]   ;;  %s7308_s7 = inlined_call_operand.hbm [shape: bf16[256,384], index: 7, kind: input, shape index: {}]   ;;  %s7309_s8 = inlined_call_operand.hbm [shape: f32[1,384], index: 8, kind: input, shape index: {}]   ;;  %s7310_s9 = inlined_call_operand.hbm [shape: bf16[384,128], index: 9, kind: input, shape index: {}]   ;;  %s7311_s10 = inlined_call_operand.vmem [shape: f32[2,128], index: 10, kind: input, shape index: {}]   ;;  %s7312_s11 = inlined_call_operand.vmem [shape: f32[1,128], index: 11, kind: input, shape index: {}]   ;;  %s7313_s12 = inlined_call_operand.vmem [shape: f32[2,128], index: 12, kind: output, shape index: {}]  }
   0x1   :  { %7328 = sst [smem:[#allocation25_spill]] %s7303_s2 }
   0x2   :  { %7329 = sst [smem:[#allocation26_spill]] %s7305_s4 }
   0x3   :  { %7330 = sst [smem:[#allocation27_spill]] %s7307_s6 }
   0x4   :  { %7331 = sst [smem:[#allocation28_spill]] %s7309_s8 }
   0x5   :  { %7332 = sst [smem:[#allocation29_spill]] %s7311_s10 }
   0x6   :  { %7333 = sst [smem:[#allocation30_spill]] %s7312_s11 }
   0x7   :  { %7334 = sst [smem:[#allocation31_spill]] %s7313_s12 }
   0x8   :  { %17 = vsyncpa [#allocation4], 0 }
   0x9   :  { %19 = vsyncpa [#allocation4 + $0x1], 0 }
   0xa   :  { %20 = vsyncpa [#allocation6], 0 }
   0xb   :  { %22 = vsyncpa [#allocation6 + $0x1], 0 }
   0xc   :  { %23 = vsyncpa [#allocation9], 0 }
   0xd   :  { %24 = vsyncpa [#allocation12], 0 }
   0xe   :  { %25 = vsyncpa [#allocation15], 0  ;;  %s6115_s21 = smov 0   ;;  %s6117_s22 = smov 0  }
   0xf   :  { %s6119_s23 = smov 0   ;;  %s6121_s24 = smov 0  }
  0x10 LB: > { %7335 = sst [smem:[#allocation22_spill]] %s6020_s23  ;;  %s6026_s25 = smov [#allocation8]   ;;  %s6024_s24 = sphi %s6121_s24, %s7375_s24   ;;  %s6020_s23 = sphi %s6119_s23, %s7377_s23   ;;  %s6016_s22 = sphi %s6117_s22, %s7379_s22   ;;  %s6012_s21 = sphi %s6115_s21, %s7378_s21  }
  0x11   : > { %s340_s26 = sshll.u32 %s6026_s25, 4  ;;  %s6136_s27 = sadd.s32 4294967295, %s6024_s24   ;;  %s341_s26 = int_to_ptr.vmem [resolvable:$true] %s340_s26 }
  0x12   : > { %p4649_p0 = scmp.ge.s32.totalorder %s6024_s24, 1  ;;  %p7314_p1 = scmp.eq.s32.totalorder %s6136_s27, 0 }
  0x13   : > { %p324_p2 = scmp.lt.s32.totalorder %s6024_s24, 5  ;;  %s6027_s29 = smov [#allocation11]  }
  0x14   : > { %s364_s30 = sshll.u32 %s6027_s29, 4  ;;  %s6028_s13 = smov [#allocation14]   ;;  %s6148_s30 = int_to_ptr.vmem [resolvable:$true] %s364_s30 }
  0x15   : > { %p6142_p4 = pnand %p4649_p0, %p324_p2  ;;  %s388_s14 = sshll.u32 %s6028_s13, 4  ;;  %s6156_s14 = int_to_ptr.vmem [resolvable:$true] %s388_s14 }
  0x16   : > { %s7338_s4 = sld [smem:[#allocation26_spill]] }
  0x17   : > { %s7336_s28 = scalar_select %p6142_p4, 1, 0 }
  0x18   : > { %p5197_p5 = pneg %p6142_p4 }
  0x1a   : > { %p6152_p6 = pnand %p5197_p5, %p7314_p1 }
  0x1c   : > { %s7337_s15 = scalar_select %p6152_p6, 1, 0 }
  0x1d   : > { %s5716_s18 = scalar_lea.hbm %s7338_s4, 64  ;;  %p6166_p8 = pneg %p6152_p6 }
  0x1e   : > { %p5717_p7 = scmp.ne.s32.totalorder %s7338_s4, %s5716_s18  ;;  %p5723_p11 = scmp.lt.u32.totalorder %s5716_s18, %s7338_s4 }
  0x1f   : > { %s7339_s25 = scalar_select %p6166_p8, 1, 0 }
  0x20   : > { %p5719_p9 = pnand %p6166_p8, %p5717_p7 }
  0x22   : > { %p5720_p10 = pneg %p5719_p9 }
  0x24   : > { %p5725_p12 = pnand %p5723_p11, %p5720_p10 }
  0x26   : > { %5728 = shalt.err (!%p5725_p12)
}
  0x27   : > { %s5729_s16 = scalar_lea.vmem %s341_s26, 64  ;;  %p5737_p5 = scmp.lt.s32.totalorder %s341_s26, %s341_s26 }
  0x28   : > { %p5730_p13 = scmp.ne.s32.totalorder %s341_s26, %s5729_s16  ;;  %p5738_p3 = scmp.lt.s32.totalorder %s5729_s16, %s5729_s16 }
  0x2a   : > { %p5732_p0 = pnand %p5730_p13, %p6166_p8  ;;  %p5739_p1 = por %p5738_p3, %p5737_p5 }
  0x2c   : > { %p5733_p2 = pneg %p5732_p0 }
  0x2e   : > { %p5740_p4 = pnand %p5739_p1, %p5733_p2 }
  0x30   : > { %5743 = shalt.err (!%p5740_p4)
}
  0x31   : > { %5200 = dma.hbm_to_vmem [thread:$0]  (!%p6152_p6), %s7338_s4, 64, %s341_s26, [#allocation9]  }
  0x32   : > { %s7340_s6 = sld [smem:[#allocation27_spill]] }
  0x38   : > { %s5744_s29 = scalar_lea.hbm %s7340_s6, 32 }
  0x39   : > { %p5745_p7 = scmp.ne.s32.totalorder %s7340_s6, %s5744_s29  ;;  %p5751_p1 = scmp.lt.u32.totalorder %s5744_s29, %s7340_s6 }
  0x3b   : > { %p5747_p9 = pnand %p5745_p7, %p6166_p8 }
  0x3d   : > { %p5748_p3 = pneg %p5747_p9 }
  0x3f   : > { %p5753_p4 = pnand %p5751_p1, %p5748_p3 }
  0x41   : > { %5756 = shalt.err (!%p5753_p4)
}
  0x42   : > { %s5757_s26 = scalar_lea.vmem %s6148_s30, 32  ;;  %p5765_p13 = scmp.lt.s32.totalorder %s6148_s30, %s6148_s30 }
  0x43   : > { %p5758_p10 = scmp.ne.s32.totalorder %s6148_s30, %s5757_s26  ;;  %p5766_p0 = scmp.lt.s32.totalorder %s5757_s26, %s5757_s26 }
  0x45   : > { %p5760_p11 = pnand %p5758_p10, %p6166_p8  ;;  %p5767_p2 = por %p5766_p0, %p5765_p13 }
  0x47   : > { %p5761_p12 = pneg %p5760_p11 }
  0x49   : > { %p5768_p5 = pnand %p5767_p2, %p5761_p12 }
  0x4b   : > { %5771 = shalt.err (!%p5768_p5)
}
  0x4c   : > { %5206 = dma.hbm_to_vmem [thread:$0]  (!%p6152_p6), %s7340_s6, 32, %s6148_s30, [#allocation12]  }
  0x4d   : > { %s7341_s8 = sld [smem:[#allocation28_spill]] }
  0x53   : > { %s5772_s18 = scalar_lea.hbm %s7341_s8, 48 }
  0x54   : > { %p5773_p7 = scmp.ne.s32.totalorder %s7341_s8, %s5772_s18  ;;  %p5779_p1 = scmp.lt.u32.totalorder %s5772_s18, %s7341_s8 }
  0x56   : > { %p5775_p9 = pnand %p5773_p7, %p6166_p8 }
  0x58   : > { %p5776_p3 = pneg %p5775_p9 }
  0x5a   : > { %p5781_p4 = pnand %p5779_p1, %p5776_p3 }
  0x5c   : > { %5784 = shalt.err (!%p5781_p4)
}
  0x5d   : > { %s5785_s30 = scalar_lea.vmem %s6156_s14, 48  ;;  %s5792_s26 = scalar_lea.vmem %s6156_s14, 64 }
  0x5e   : > { %p5786_p10 = scmp.ne.s32.totalorder %s6156_s14, %s5785_s30  ;;  %p5793_p13 = scmp.lt.s32.totalorder %s6156_s14, %s6156_s14 }
  0x5f   : > { %p5794_p0 = scmp.lt.s32.totalorder %s5792_s26, %s5785_s30 }
  0x60   : > { %p5788_p11 = pnand %p5786_p10, %p6166_p8 }
  0x61   : > { %p5795_p2 = por %p5794_p0, %p5793_p13 }
  0x62   : > { %p5789_p12 = pneg %p5788_p11 }
  0x64   : > { %p5796_p5 = pnand %p5795_p2, %p5789_p12 }
  0x66   : > { %5799 = shalt.err (!%p5796_p5)
}
  0x67   : > { %5212 = dma.hbm_to_vmem [thread:$0]  (!%p6152_p6), %s7341_s8, 48, %s6156_s14, [#allocation15]  }
  0x68   : > { %s6230_s17 = sadd.s32 1, %s6024_s24   ;;  %s59_s18 = sadd.s32 1, %s6020_s23 }
  0x69   : > { %7342 = sst [smem:[#allocation23_spill]] %s6230_s17  ;;  %s56_s19 = ssub.s32 %s6024_s24, %s6230_s17 }
  0x6a   : > { %p57_p7 = scmp.eq.s32.totalorder %s56_s19, 0  ;;  %p66_p9 = scmp.ne.s32.totalorder %s6020_s23, %s6016_s22 }
  0x6b   : > { %p67_p3 = scmp.eq.s32.totalorder %s6024_s24, 0  ;;  %p72_p1 = scmp.ne.s32.totalorder %s6016_s22, %s6012_s21 }
  0x6c   : > { %s6241_s20 = scalar_select %p57_p7, %s6020_s23, %s59_s18  }
  0x6d   : > { %p68_p4 = por %p67_p3, %p66_p9  ;;  %p7344_p10 = scmp.eq.s32.totalorder %s6136_s27, 0 }
  0x6e   : > { %7343 = sst [smem:[#allocation24_spill]] %s6241_s20  ;;  %p5232_p12 = scmp.lt.s32.totalorder %s6024_s24, 4 }
  0x6f   : > { %p6245_p11 = por %p7344_p10, %p72_p1  ;;  %s6251_s14 = sand.u32 1, %s6020_s23  }
  0x70   : > { %s439_s16 = sand.u32 1, %s6024_s24   ;;  %p6255_p13 = pnand %p5232_p12, %p68_p4 }
  0x71   : > { %s7345_s29 = scalar_select %p6245_p11, 1, 0 }
  0x72   : > { %s7346_s30 = scalar_select %p6255_p13, 1, 0 }
  0x73   : > { %s4660_s21 = sshll.u32 %s6251_s14, 2  ;;  %s5069_s26 = sshll.u32 %s6024_s24, 6 }
  0x74   : > { %s7347_s2 = sld [smem:[#allocation25_spill]]  ;;  %s443_s18 = scalar_lea.vmem [#allocation5], %s4660_s21 }
  0x75   : > { %s451_s4 = sshll.u32 %s443_s18, 4  ;;  %s6269_s6 = scalar_lea.sflag [#allocation6], %s439_s16  ;;  %s6266_s4 = int_to_ptr.vmem [resolvable:$true] %s451_s4 }
  0x76   : > { %p6275_p2 = pneg %p6255_p13 }
  0x78   : > { %s7348_s20 = scalar_select %p6275_p2, 1, 0 }
  0x7a   : > { %s6264_s19 = scalar_lea.hbm %s7347_s2, %s5069_s26  ;;  %s5805_s21 = scalar_lea.hbm %s7347_s2, 256 }
  0x7b   : > { %s5800_s8 = scalar_lea.hbm %s6264_s19, 64  ;;  %p5806_p9 = scmp.lt.u32.totalorder %s6264_s19, %s7347_s2 }
  0x7c   : > { %p5801_p0 = scmp.ne.s32.totalorder %s6264_s19, %s5800_s8  ;;  %p5807_p3 = scmp.lt.u32.totalorder %s5805_s21, %s5800_s8 }
  0x7d   : > { %p5809_p4 = scmp.lt.u32.totalorder %s5800_s8, %s6264_s19 }
  0x7e   : > { %p5803_p5 = pnand %p6275_p2, %p5801_p0  ;;  %p5808_p1 = por %p5807_p3, %p5806_p9 }
  0x80   : > { %p5804_p7 = pneg %p5803_p5  ;;  %p5810_p10 = por %p5809_p4, %p5808_p1 }
  0x82   : > { %p5811_p12 = pnand %p5810_p10, %p5804_p7 }
  0x84   : > { %5814 = shalt.err (!%p5811_p12)
}
  0x85   : > { %s5815_s16 = scalar_lea.vmem %s6266_s4, 64  ;;  %s6029_s26 = smov [#allocation5]  }
  0x86   : > { %p5816_p0 = scmp.ne.s32.totalorder %s6266_s4, %s5815_s16  ;;  %s5820_s11 = sshll.u32 %s6029_s26, 4  ;;  %s5821_s11 = int_to_ptr.vmem [resolvable:$false] %s5820_s11 }
  0x87   : > { %s5822_s12 = scalar_lea.vmem %s5821_s11, 128  ;;  %p5823_p6 = scmp.lt.s32.totalorder %s6266_s4, %s5821_s11 }
  0x88   : > { %p5818_p5 = pnand %p5816_p0, %p6275_p2  ;;  %p5824_p8 = scmp.lt.s32.totalorder %s5822_s12, %s5815_s16 }
  0x8a   : > { %p5819_p11 = pneg %p5818_p5  ;;  %p5825_p9 = por %p5824_p8, %p5823_p6 }
  0x8c   : > { %p5826_p3 = pnand %p5825_p9, %p5819_p11 }
  0x8e   : > { %5829 = shalt.err (!%p5826_p3)
}
  0x8f   : > { %5222 = dma.hbm_to_vmem [thread:$0]  (!%p6255_p13), %s6264_s19, 64, %s6266_s4, %s6269_s6  }
  0x90   : > { %s6030_s8 = smov [#allocation10]   ;;  %s5830_s26 = scalar_lea.hbm %s7306_s5, 8192 }
  0x91   : > { %s350_s21 = sshll.u32 %s6030_s8, 4  ;;  %p5831_p6 = scmp.ne.s32.totalorder %s7306_s5, %s5830_s26  ;;  %s351_s21 = int_to_ptr.vmem [resolvable:$true] %s350_s21 }
  0x92   : > { %p7349_p8 = scmp.ne.s32.totalorder %s7339_s25, 0  ;;  %p5837_p1 = scmp.lt.u32.totalorder %s5830_s26, %s7306_s5 }
  0x94   : > { %p5833_p11 = pnand %p5831_p6, %p7349_p8 }
  0x96   : > { %p5834_p7 = pneg %p5833_p11 }
  0x98   : > { %p5839_p4 = pnand %p5837_p1, %p5834_p7 }
  0x9a   : > { %5842 = shalt.err (!%p5839_p4)
}
  0x9b   : > { %s5843_s4 = scalar_lea.vmem %s351_s21, 8192  ;;  %p5851_p5 = scmp.lt.s32.totalorder %s351_s21, %s351_s21 }
  0x9c   : > { %p5844_p10 = scmp.ne.s32.totalorder %s351_s21, %s5843_s4  ;;  %p5852_p9 = scmp.lt.s32.totalorder %s5843_s4, %s5843_s4 }
  0x9e   : > { %p5846_p12 = pnand %p5844_p10, %p7349_p8  ;;  %p5853_p3 = por %p5852_p9, %p5851_p5 }
  0xa0   : > { %p5847_p0 = pneg %p5846_p12 }
  0xa2   : > { %p5854_p13 = pnand %p5853_p3, %p5847_p0 }
  0xa4   : > { %5857 = shalt.err (!%p5854_p13)
}
  0xa5   : > { %s6031_s2 = smov 128   ;;  %s6032_s13 = smov 8  }
  0xa6   : > { %p7350_p6 = scmp.ne.s32.totalorder %s7337_s15, 0  ;;  %s6033_s18 = smov [#allocation13]  }
  0xa7   : > { %s374_s26 = sshll.u32 %s6033_s18, 4  ;;  %s5858_s12 = scalar_lea.hbm %s7308_s7, 6144  ;;  %s375_s26 = int_to_ptr.vmem [resolvable:$true] %s374_s26 }
  0xa8   : > { %5203 = dma.hbm_to_vmem [thread:$0]  (!%p7350_p6), %s7306_s5, 8192, %s351_s21, [#allocation9], %s6031_s2, %s6031_s2, %s6032_s13  }
  0xa9   : > { %p5859_p13 = scmp.ne.s32.totalorder %s7308_s7, %s5858_s12  ;;  %p5865_p1 = scmp.lt.u32.totalorder %s5858_s12, %s7308_s7 }
  0xab   : > { %p5861_p11 = pnand %p5859_p13, %p7349_p8 }
  0xad   : > { %p5862_p7 = pneg %p5861_p11 }
  0xaf   : > { %p5867_p4 = pnand %p5865_p1, %p5862_p7 }
  0xb1   : > { %5870 = shalt.err (!%p5867_p4)
}
  0xb2   : > { %s5871_s21 = scalar_lea.vmem %s375_s26, 6144  ;;  %p5879_p5 = scmp.lt.s32.totalorder %s375_s26, %s375_s26 }
  0xb3   : > { %p5872_p10 = scmp.ne.s32.totalorder %s375_s26, %s5871_s21  ;;  %p5880_p9 = scmp.lt.s32.totalorder %s5871_s21, %s5871_s21 }
  0xb5   : > { %p5874_p12 = pnand %p5872_p10, %p7349_p8  ;;  %p5881_p3 = por %p5880_p9, %p5879_p5 }
  0xb7   : > { %p5875_p0 = pneg %p5874_p12 }
  0xb9   : > { %p5882_p2 = pnand %p5881_p3, %p5875_p0 }
  0xbb   : > { %5885 = shalt.err (!%p5882_p2)
}
  0xbc   : > { %s6034_s23 = smov 192   ;;  %s6035_s2 = smov 12  }
  0xbd   : > { %5209 = dma.hbm_to_vmem [thread:$0]  (!%p7350_p6), %s7308_s7, 6144, %s375_s26, [#allocation12], %s6034_s23, %s6034_s23, %s6035_s2  }
  0xbe   : > { %s6036_s13 = smov [#allocation16]   ;;  %s5886_s11 = scalar_lea.hbm %s7310_s9, 3072 }
  0xbf   : > { %s398_s19 = sshll.u32 %s6036_s13, 4  ;;  %p5887_p2 = scmp.ne.s32.totalorder %s7310_s9, %s5886_s11  ;;  %s399_s19 = int_to_ptr.vmem [resolvable:$true] %s398_s19 }
  0xc0   : > { %p5893_p7 = scmp.lt.u32.totalorder %s5886_s11, %s7310_s9 }
  0xc1   : > { %p5889_p13 = pnand %p5887_p2, %p7349_p8 }
  0xc3   : > { %p5890_p11 = pneg %p5889_p13 }
  0xc5   : > { %p5895_p1 = pnand %p5893_p7, %p5890_p11 }
  0xc7   : > { %5898 = shalt.err (!%p5895_p1)
}
  0xc8   : > { %s5899_s26 = scalar_lea.vmem %s399_s19, 3072  ;;  %p5907_p0 = scmp.lt.s32.totalorder %s399_s19, %s399_s19 }
  0xc9   : > { %p5900_p4 = scmp.ne.s32.totalorder %s399_s19, %s5899_s26  ;;  %p5908_p5 = scmp.lt.s32.totalorder %s5899_s26, %s5899_s26 }
  0xcb   : > { %p5902_p10 = pnand %p5900_p4, %p7349_p8  ;;  %p5909_p9 = por %p5908_p5, %p5907_p0 }
  0xcd   : > { %p5903_p12 = pneg %p5902_p10 }
  0xcf   : > { %p5910_p3 = pnand %p5909_p9, %p5903_p12 }
  0xd1   : > { %5913 = shalt.err (!%p5910_p3)
}
  0xd2   : > { %s6037_s23 = smov 64   ;;  %s6038_s2 = smov 4  }
  0xd3   : > { %5215 = dma.hbm_to_vmem [thread:$0]  (!%p7350_p6), %s7310_s9, 3072, %s399_s19, [#allocation15], %s6037_s23, %s6037_s23, %s6038_s2  }
  0xd4   : > { %s5068_s25 = sshll.u32 %s6024_s24, 8  ;;  %s7351_s11 = sshll.u32 %s6251_s14, 6 }
  0xd5   : > { %s6357_s18 = scalar_lea.hbm %s7302_s1, %s5068_s25  ;;  %s422_s16 = scalar_lea.vmem [#allocation3], %s7351_s11 }
  0xd6   : > { %s429_s12 = sshll.u32 %s422_s16, 4  ;;  %s419_s15 = scalar_lea.sflag [#allocation4], %s6251_s14  ;;  %s6361_s12 = int_to_ptr.vmem [resolvable:$true] %s429_s12 }
  0xd7   : > { %s5914_s4 = scalar_lea.hbm %s6357_s18, 1024  ;;  %p7352_p2 = scmp.ne.s32.totalorder %s7348_s20, 0 }
  0xd8   : > { %p5915_p8 = scmp.ne.s32.totalorder %s6357_s18, %s5914_s4  ;;  %s5919_s26 = scalar_lea.hbm %s7302_s1, 4096 }
  0xd9   : > { %p5920_p11 = scmp.lt.u32.totalorder %s6357_s18, %s7302_s1  ;;  %p5921_p7 = scmp.lt.u32.totalorder %s5919_s26, %s5914_s4 }
  0xda   : > { %p5917_p6 = pnand %p5915_p8, %p7352_p2  ;;  %p5923_p4 = scmp.lt.u32.totalorder %s5914_s4, %s6357_s18 }
  0xdb   : > { %p5922_p1 = por %p5921_p7, %p5920_p11 }
  0xdc   : > { %p5918_p13 = pneg %p5917_p6 }
  0xdd   : > { %p5924_p10 = por %p5923_p4, %p5922_p1 }
  0xdf   : > { %p5925_p12 = pnand %p5924_p10, %p5918_p13 }
  0xe1   : > { %5928 = shalt.err (!%p5925_p12)
}
  0xe2   : > { %s5929_s10 = scalar_lea.vmem %s6361_s12, 1024  ;;  %s6039_s17 = smov [#allocation3]  }
  0xe3   : > { %p5930_p0 = scmp.ne.s32.totalorder %s6361_s12, %s5929_s10  ;;  %s5934_s25 = sshll.u32 %s6039_s17, 4  ;;  %s5935_s25 = int_to_ptr.vmem [resolvable:$false] %s5934_s25 }
  0xe4   : > { %s5936_s13 = scalar_lea.vmem %s5935_s25, 2048  ;;  %p5937_p3 = scmp.lt.s32.totalorder %s6361_s12, %s5935_s25 }
  0xe5   : > { %p5932_p5 = pnand %p5930_p0, %p7352_p2  ;;  %p5938_p8 = scmp.lt.s32.totalorder %s5936_s13, %s5929_s10 }
  0xe7   : > { %p5933_p9 = pneg %p5932_p5  ;;  %p5939_p6 = por %p5938_p8, %p5937_p3 }
  0xe9   : > { %p5940_p11 = pnand %p5939_p6, %p5933_p9 }
  0xeb   : > { %5943 = shalt.err (!%p5940_p11)
}
  0xec   : > { %s6040_s8 = smov 1024   ;;  %s6041_s11 = smov 256  }
  0xed   : > { %s6042_s16 = smov 16   ;;  %p7353_p13 = scmp.ne.s32.totalorder %s7346_s30, 0 }
  0xee   : > { %s5071_s4 = sshll.u32 %s6024_s24, 14  ;;  %s7354_s23 = sshll.u32 %s6251_s14, 10 }
  0xef   : > { %5219 = dma.hbm_to_vmem [thread:$0]  (!%p7353_p13), %s6357_s18, 1024, %s6361_s12, %s419_s15, %s6040_s8, %s6041_s11, %s6042_s16  }
  0xf0   : > { %s6393_s26 = scalar_lea.hbm %s7304_s3, %s5071_s4  ;;  %s462_s2 = scalar_lea.vmem [#allocation7], %s7354_s23 }
  0xf1   : > { %s470_s10 = sshll.u32 %s462_s2, 4  ;;  %s5944_s17 = scalar_lea.hbm %s6393_s26, 16384  ;;  %s6397_s10 = int_to_ptr.vmem [resolvable:$true] %s470_s10 }
  0xf2   : > { %p5945_p7 = scmp.ne.s32.totalorder %s6393_s26, %s5944_s17  ;;  %s5949_s12 = scalar_lea.hbm %s7304_s3, 65536 }
  0xf3   : > { %p5950_p10 = scmp.lt.u32.totalorder %s6393_s26, %s7304_s3  ;;  %p5951_p12 = scmp.lt.u32.totalorder %s5949_s12, %s5944_s17 }
  0xf4   : > { %p5947_p1 = pnand %p5945_p7, %p7352_p2  ;;  %p5953_p5 = scmp.lt.u32.totalorder %s5944_s17, %s6393_s26 }
  0xf5   : > { %p5952_p0 = por %p5951_p12, %p5950_p10 }
  0xf6   : > { %p5948_p4 = pneg %p5947_p1 }
  0xf7   : > { %p5954_p9 = por %p5953_p5, %p5952_p0 }
  0xf9   : > { %p5955_p3 = pnand %p5954_p9, %p5948_p4 }
  0xfb   : > { %5958 = shalt.err (!%p5955_p3)
}
  0xfc   : > { %s5959_s14 = scalar_lea.vmem %s6397_s10, 16384  ;;  %s6043_s13 = smov [#allocation7]  }
  0xfd   : > { %p5960_p8 = scmp.ne.s32.totalorder %s6397_s10, %s5959_s14  ;;  %s5964_s8 = sshll.u32 %s6043_s13, 4  ;;  %s5965_s8 = int_to_ptr.vmem [resolvable:$false] %s5964_s8 }
  0xfe   : > { %s5966_s4 = scalar_lea.vmem %s5965_s8, 32768  ;;  %p5967_p7 = scmp.lt.s32.totalorder %s6397_s10, %s5965_s8 }
  0xff   : > { %p5962_p6 = pnand %p5960_p8, %p7352_p2  ;;  %p5968_p1 = scmp.lt.s32.totalorder %s5966_s4, %s5959_s14 }
 0x101   : > { %p5963_p11 = pneg %p5962_p6  ;;  %p5969_p10 = por %p5968_p1, %p5967_p7 }
 0x103   : > { %p5970_p12 = pnand %p5969_p10, %p5963_p11 }
 0x105   : > { %5973 = shalt.err (!%p5970_p12)
}
 0x106   : > { %5225 = dma.hbm_to_vmem [thread:$0]  (!%p7353_p13), %s6393_s26, 16384, %s6397_s10, %s6269_s6, %s6041_s11, %s6041_s11, %s6042_s16  }
 0x107   : > { %p7355_p2 = scmp.ne.s32.totalorder %s7336_s28, 0 }
 0x108   : > { %s484_s20 = sand.u32 (!%p7355_p2), 1, %s6016_s22   ;;  %p7356_p4 = scmp.ne.s32.totalorder (!%p7355_p2), %s7345_s29, 0 }
 0x109   : > { %482 = sbr.rel (%p7355_p2) target bundleno = 2378 (0x94a), region = 68  ;;  %s4668_s19 = sshll.u32 (!%p7355_p2), %s484_s20, 6 }
 0x10a   : > { %s485_s21 = scalar_lea.sflag (!%p7355_p2), [#allocation4], %s484_s20  ;;  %s6427_s23 = scalar_lea.vmem (!%p7355_p2), [#allocation3], %s4668_s19 }
 0x110   : > { %5991 = dma.done.wait (%p7356_p4), %s485_s21, 1024  }
 0x111   : > { %5993 = vsyncadd (%p7356_p4), %s485_s21, 4294966272  ;;  %s493_s30 = sand.u32 1, %s6136_s27   ;;  %s4669_s2 = sshll.u32 %s484_s20, 2 }
 0x112   : > { %s494_s6 = scalar_lea.sflag [#allocation6], %s493_s30  ;;  %s6434_s11 = scalar_lea.vmem [#allocation5], %s4669_s2 }
 0x113   : > { %5995 = dma.done.wait (%p7356_p4), %s494_s6, 16448  }
 0x114   : > { %5997 = vsyncadd (%p7356_p4), %s494_s6, 4294950848  ;;  %s4670_s28 = sshll.u32 %s484_s20, 10  ;;  %p7357_p13 = scmp.eq.s32.totalorder %s6136_s27, 0 }
 0x115   : > { %s6440_s16 = scalar_lea.vmem [#allocation7], %s4670_s28 }
 0x116   : > { %5999 = dma.done.wait (%p7357_p13), [#allocation9], 8256   ;;  %p7358_p0 = pmov %p7357_p13 }
 0x118   : > { %6001 = vsyncadd (%p7358_p0), [#allocation9], 4294959040  ;;  %p7359_p5 = pmov %p7358_p0 }
 0x119   : > { %p7360_p9 = pmov %p7358_p0 }
 0x11a   : > { %6003 = dma.done.wait (%p7359_p5), [#allocation12], 6176  }
 0x11b   : > { %6005 = vsyncadd (%p7360_p9), [#allocation12], 4294961120  ;;  %p7361_p3 = pmov %p7358_p0 }
 0x11c   : > { %p7362_p8 = pmov %p7358_p0 }
 0x11d   : > { %6007 = dma.done.wait (%p7361_p3), [#allocation15], 3120  }
 0x11e   : > { %6009 = vsyncadd (%p7362_p8), [#allocation15], 4294964176  ;;  %p7363_p6 = scmp.ne.s32.totalorder %s6136_s27, 0 }
 0x11f   : > { %v6044_v0 = vmov (!%p7363_p6), 0.0  }
 0x120   : > { %583 = sbr.rel (%p7363_p6) target bundleno = 295 (0x127), region = 108  ;;  %584 = vst [vmem:[#allocation2] sm:$0xff] (!%p7363_p6), %v6044_v0 }
 0x127 PF: > { %v5292_v1 = vld [vmem:[%s6427_s23 + $0x4] ss:$16 sps:$4 sm:$0xff]   ;;  %v5294_v2 = vld [vmem:[%s6427_s23] ss:$16 sps:$4 sm:$0xff]   ;;  %v6045_v3 = vmov 0   ;;  %v5298_v6 = vld [vmem:[%s7301_s0] sm:$0xff]   ;;  %v659_v36 = vlaneseq }
 0x128   : > { %1008 = vmatprep.mubr.bf16.mxu0 %v6045_v3  ;;  %1361 = vmatprep.mubr.bf16.mxu1 %v6045_v3  ;;  %v5295_v4 = vld [vmem:[%s6427_s23 + $0x24] ss:$16 sps:$4 sm:$0xff]   ;;  %v5297_v5 = vld [vmem:[%s6427_s23 + $0x20] ss:$16 sps:$4 sm:$0xff]   ;;  %vm879_vm0 = vcmask 261120   ;;  %v5300_v12 = vld [vmem:[%s7301_s0 + $0x10] sm:$0xff]  }
 0x129   : > { %976 = vmatprep.subr.bf16.mxu0 %v5292_v1  ;;  %v5305_v7 = vld [vmem:[%s6427_s23 + $0xc] ss:$16 sps:$4 sm:$0xff]   ;;  %v5307_v8 = vld [vmem:[%s6427_s23 + $0x8] ss:$16 sps:$4 sm:$0xff]   ;;  %v5299_v11 = vld [vmem:[%s7301_s0 + $0x8] sm:$0xff]   ;;  %v6644_v37 = vshrl.u32 %v659_v36, 7 }
 0x12a   : > { %977 = vmatpush1.bf16.msra.mxu0 %v5294_v2  ;;  %v5308_v9 = vld [vmem:[%s6427_s23 + $0x2c] ss:$16 sps:$4 sm:$0xff]   ;;  %1329 = vmatprep.subr.bf16.mxu1 %v5305_v7  ;;  %v5311_v10 = vld [vmem:[%s6427_s23 + $0x28] ss:$16 sps:$4 sm:$0xff]   ;;  %v5301_v13 = vld [vmem:[%s7301_s0 + $0x18] sm:$0xff]   ;;  %p4926_p11 = scmp.ne.s32.totalorder %s6136_s27, 3 }
 0x12b   : > { %978 = vmatprep.subr.bf16.mxu0 %v5295_v4  ;;  %1330 = vmatpush1.bf16.msra.mxu1 %v5307_v8  ;;  %v5302_v14 = vld [vmem:[%s7301_s0 + $0x20] sm:$0xff]   ;;  %v5303_v15 = vld [vmem:[%s7301_s0 + $0x28] sm:$0xff]   ;;  %v5304_v16 = vld [vmem:[%s7301_s0 + $0x30] sm:$0xff]   ;;  %v6653_v39 = vsub.s32 0, %v6644_v37  ;;  %v6657_v41 = vsub.s32 1, %v6644_v37  ;;  %v6676_v52 = vsub.s32 2, %v6644_v37 }
 0x12c   : > { %1331 = vmatprep.subr.bf16.mxu1 %v5308_v9  ;;  %v5310_v17 = vld [vmem:[%s7301_s0 + $0x38] sm:$0xff]   ;;  %v5312_v18 = vld [vmem:[%s7301_s0 + $0x40] sm:$0xff]   ;;  %v5313_v19 = vld [vmem:[%s7301_s0 + $0x48] sm:$0xff]   ;;  %v673_v54 = vsub.s32 3, %v6644_v37  ;;  %s7372_s29 = sld [smem:[#allocation29_spill]] (!%p4926_p11)  ;;  %s7373_s17 = sld [smem:[#allocation30_spill]] (!%p4926_p11) }
 0x12d   : > { %v5314_v20 = vld [vmem:[%s7301_s0 + $0x50] sm:$0xff]   ;;  %v5315_v21 = vld [vmem:[%s7301_s0 + $0x58] sm:$0xff]   ;;  %v5316_v22 = vld [vmem:[%s7301_s0 + $0x60] sm:$0xff]   ;;  %s7374_s12 = sld [smem:[#allocation31_spill]] (!%p4926_p11) }
 0x12e   : > { %979 = vmatpush1.bf16.msra.mxu0 %v5297_v5  ;;  %v5317_v23 = vld [vmem:[%s7301_s0 + $0x68] sm:$0xff]   ;;  %v5318_v24 = vld [vmem:[%s7301_s0 + $0x70] sm:$0xff]   ;;  %v5319_v25 = vld [vmem:[%s7301_s0 + $0x78] sm:$0xff]  }
 0x12f   : > { %1332 = vmatpush1.bf16.msra.mxu1 %v5311_v10  ;;  %v5320_v26 = vld [vmem:[%s7301_s0 + $0x80] sm:$0xff]   ;;  %v5321_v27 = vld [vmem:[%s7301_s0 + $0x88] sm:$0xff]   ;;  %v5322_v28 = vld [vmem:[%s7301_s0 + $0x90] sm:$0xff]  }
 0x130   : > { %v5323_v29 = vld [vmem:[%s7301_s0 + $0x98] sm:$0xff]   ;;  %v5324_v30 = vld [vmem:[%s7301_s0 + $0xa0] sm:$0xff]   ;;  %v5325_v31 = vld [vmem:[%s7301_s0 + $0xa8] sm:$0xff]  }
 0x131   : > { %4718 = vmatmul.mubr.msk.bf16.vlgmr.msra.gmra.mrb[0].mxu0 %vm879_vm0, %v5298_v6  ;;  %v5326_v32 = vld [vmem:[%s7301_s0 + $0xb0] sm:$0xff]   ;;  %v5327_v33 = vld [vmem:[%s7301_s0 + $0xb8] sm:$0xff]   ;;  %v5328_v34 = vld [vmem:[%s7301_s0 + $0xc0] sm:$0xff]  }
 0x132   : > { %1018 = vmatprep.mubr.bf16.mxu0 %v6045_v3  ;;  %4750 = vmatmul.mubr.msk.bf16.vlgmr.msra.gmra.mrb[0].mxu1 %vm879_vm0, %v5298_v6  ;;  %v5329_v35 = vld [vmem:[%s7301_s0 + $0xc8] sm:$0xff]   ;;  %v5330_v38 = vld [vmem:[%s7301_s0 + $0xd0] sm:$0xff]   ;;  %v5331_v47 = vld [vmem:[%s7301_s0 + $0xd8] sm:$0xff]  }
 0x133   : > { %1371 = vmatprep.mubr.bf16.mxu1 %v6045_v3  ;;  %v657_v40 = vld [vmem:[%s6434_s11] sm:$0xf]  ;;  %v6695_v2 = vld [vmem:[%s7301_s0 + $0xe0] sm:$0xff]  }
 0x134   : > { %v6661_v42 = vrot.slane %v657_v40, %v6653_v39  ;;  %v6664_v43 = vrot.slane %v657_v40, %v6657_v41  ;;  %v6683_v60 = vrot.slane %v657_v40, %v6676_v52  ;;  %v6688_v63 = vrot.slane %v657_v40, %v673_v54 }
 0x139   : > { %4719 = vmatmul.mubr.msk.bf16.gmra.mrb[4].mxu0 %vm879_vm0, %v5299_v11 }
 0x13a   : > { %1028 = vmatprep.mubr.bf16.mxu0 %v6045_v3  ;;  %4751 = vmatmul.mubr.msk.bf16.gmra.mrb[4].mxu1 %vm879_vm0, %v5299_v11 }
 0x13b   : > { %1381 = vmatprep.mubr.bf16.mxu1 %v6045_v3 }
 0x141   : > { %4720 = vmatmul.mubr.msk.bf16.gmra.mrb[8].mxu0 %vm879_vm0, %v5300_v12 }
 0x142   : > { %1038 = vmatprep.mubr.bf16.mxu0 %v6045_v3  ;;  %4752 = vmatmul.mubr.msk.bf16.gmra.mrb[8].mxu1 %vm879_vm0, %v5300_v12 }
 0x143   : > { %1391 = vmatprep.mubr.bf16.mxu1 %v6045_v3 }
 0x149   : > { %4721 = vmatmul.mubr.msk.bf16.gmra.mrb[12].mxu0 %vm879_vm0, %v5301_v13 }
 0x14a   : > { %1048 = vmatprep.mubr.bf16.mxu0 %v6045_v3  ;;  %4753 = vmatmul.mubr.msk.bf16.gmra.mrb[12].mxu1 %vm879_vm0, %v5301_v13 }
 0x14b   : > { %1401 = vmatprep.mubr.bf16.mxu1 %v6045_v3 }
 0x151   : > { %4722 = vmatmul.mubr.msk.bf16.gmra.mrb[16].mxu0 %vm879_vm0, %v5302_v14 }
 0x152   : > { %1058 = vmatprep.mubr.bf16.mxu0 %v6045_v3  ;;  %4754 = vmatmul.mubr.msk.bf16.gmra.mrb[16].mxu1 %vm879_vm0, %v5302_v14 }
 0x153   : > { %1411 = vmatprep.mubr.bf16.mxu1 %v6045_v3 }
 0x159   : > { %4723 = vmatmul.mubr.msk.bf16.gmra.mrb[20].mxu0 %vm879_vm0, %v5303_v15 }
 0x15a   : > { %1068 = vmatprep.mubr.bf16.mxu0 %v6045_v3  ;;  %4755 = vmatmul.mubr.msk.bf16.gmra.mrb[20].mxu1 %vm879_vm0, %v5303_v15 }
 0x15b   : > { %1421 = vmatprep.mubr.bf16.mxu1 %v6045_v3 }
 0x161   : > { %4724 = vmatmul.mubr.msk.bf16.gmra.mrb[24].mxu0 %vm879_vm0, %v5304_v16 }
 0x162   : > { %1078 = vmatprep.mubr.bf16.mxu0 %v6045_v3  ;;  %4756 = vmatmul.mubr.msk.bf16.gmra.mrb[24].mxu1 %vm879_vm0, %v5304_v16 }
 0x163   : > { %1431 = vmatprep.mubr.bf16.mxu1 %v6045_v3 }
 0x169   : > { %4725 = vmatmul.mubr.msk.bf16.gmra.mrb[28].mxu0 %vm879_vm0, %v5310_v17 }
 0x16a   : > { %1088 = vmatprep.mubr.bf16.mxu0 %v6045_v3  ;;  %4757 = vmatmul.mubr.msk.bf16.gmra.mrb[28].mxu1 %vm879_vm0, %v5310_v17 }
 0x16b   : > { %1441 = vmatprep.mubr.bf16.mxu1 %v6045_v3 }
 0x171   : > { %4726 = vmatmul.mubr.msk.bf16.gmra.mrb[32].mxu0 %vm879_vm0, %v5312_v18 }
 0x172   : > { %1098 = vmatprep.mubr.bf16.mxu0 %v6045_v3  ;;  %4758 = vmatmul.mubr.msk.bf16.gmra.mrb[32].mxu1 %vm879_vm0, %v5312_v18 }
 0x173   : > { %1451 = vmatprep.mubr.bf16.mxu1 %v6045_v3 }
 0x179   : > { %4727 = vmatmul.mubr.msk.bf16.gmra.mrb[36].mxu0 %vm879_vm0, %v5313_v19 }
 0x17a   : > { %1108 = vmatprep.mubr.bf16.mxu0 %v6045_v3  ;;  %4759 = vmatmul.mubr.msk.bf16.gmra.mrb[36].mxu1 %vm879_vm0, %v5313_v19 }
 0x17b   : > { %1461 = vmatprep.mubr.bf16.mxu1 %v6045_v3 }
 0x181   : > { %4728 = vmatmul.mubr.msk.bf16.gmra.mrb[40].mxu0 %vm879_vm0, %v5314_v20 }
 0x182   : > { %1118 = vmatprep.mubr.bf16.mxu0 %v6045_v3  ;;  %4760 = vmatmul.mubr.msk.bf16.gmra.mrb[40].mxu1 %vm879_vm0, %v5314_v20 }
 0x183   : > { %1471 = vmatprep.mubr.bf16.mxu1 %v6045_v3 }
 0x189   : > { %4729 = vmatmul.mubr.msk.bf16.gmra.mrb[44].mxu0 %vm879_vm0, %v5315_v21 }
 0x18a   : > { %1128 = vmatprep.mubr.bf16.mxu0 %v6045_v3  ;;  %4761 = vmatmul.mubr.msk.bf16.gmra.mrb[44].mxu1 %vm879_vm0, %v5315_v21 }
 0x18b   : > { %1481 = vmatprep.mubr.bf16.mxu1 %v6045_v3 }
 0x191   : > { %4730 = vmatmul.mubr.msk.bf16.gmra.mrb[48].mxu0 %vm879_vm0, %v5316_v22 }
 0x192   : > { %1138 = vmatprep.mubr.bf16.mxu0 %v6045_v3  ;;  %4762 = vmatmul.mubr.msk.bf16.gmra.mrb[48].mxu1 %vm879_vm0, %v5316_v22 }
 0x193   : > { %1491 = vmatprep.mubr.bf16.mxu1 %v6045_v3 }
 0x199   : > { %4731 = vmatmul.mubr.msk.bf16.gmra.mrb[52].mxu0 %vm879_vm0, %v5317_v23 }
 0x19a   : > { %1148 = vmatprep.mubr.bf16.mxu0 %v6045_v3  ;;  %4763 = vmatmul.mubr.msk.bf16.gmra.mrb[52].mxu1 %vm879_vm0, %v5317_v23 }
 0x19b   : > { %1501 = vmatprep.mubr.bf16.mxu1 %v6045_v3 }
 0x1a1   : > { %4732 = vmatmul.mubr.msk.bf16.gmra.mrb[56].mxu0 %vm879_vm0, %v5318_v24 }
 0x1a2   : > { %1158 = vmatprep.mubr.bf16.mxu0 %v6045_v3  ;;  %4764 = vmatmul.mubr.msk.bf16.gmra.mrb[56].mxu1 %vm879_vm0, %v5318_v24 }
 0x1a3   : > { %1511 = vmatprep.mubr.bf16.mxu1 %v6045_v3 }
 0x1a9   : > { %4733 = vmatmul.mubr.msk.bf16.gmra.mrb[60].mxu0 %vm879_vm0, %v5319_v25 }
 0x1aa   : > { %1168 = vmatprep.mubr.bf16.mxu0 %v6045_v3  ;;  %4765 = vmatmul.mubr.msk.bf16.gmra.mrb[60].mxu1 %vm879_vm0, %v5319_v25 }
 0x1ab   : > { %1521 = vmatprep.mubr.bf16.mxu1 %v6045_v3 }
 0x1b1   : > { %4734 = vmatmul.mubr.msk.bf16.gmra.mrb[64].mxu0 %vm879_vm0, %v5320_v26 }
 0x1b2   : > { %1178 = vmatprep.mubr.bf16.mxu0 %v6045_v3  ;;  %4766 = vmatmul.mubr.msk.bf16.gmra.mrb[64].mxu1 %vm879_vm0, %v5320_v26 }
 0x1b3   : > { %1531 = vmatprep.mubr.bf16.mxu1 %v6045_v3 }
 0x1b9   : > { %4735 = vmatmul.mubr.msk.bf16.gmra.mrb[68].mxu0 %vm879_vm0, %v5321_v27 }
 0x1ba   : > { %1188 = vmatprep.mubr.bf16.mxu0 %v6045_v3  ;;  %4767 = vmatmul.mubr.msk.bf16.gmra.mrb[68].mxu1 %vm879_vm0, %v5321_v27 }
 0x1bb   : > { %1541 = vmatprep.mubr.bf16.mxu1 %v6045_v3 }
 0x1c1   : > { %4736 = vmatmul.mubr.msk.bf16.gmra.mrb[72].mxu0 %vm879_vm0, %v5322_v28 }
 0x1c2   : > { %1198 = vmatprep.mubr.bf16.mxu0 %v6045_v3  ;;  %4768 = vmatmul.mubr.msk.bf16.gmra.mrb[72].mxu1 %vm879_vm0, %v5322_v28  ;;  %v6712_v28 = vld [vmem:[%s7301_s0 + $0xe8] sm:$0xff]  }
 0x1c3   : > { %1551 = vmatprep.mubr.bf16.mxu1 %v6045_v3 }
 0x1c9   : > { %4737 = vmatmul.mubr.msk.bf16.gmra.mrb[76].mxu0 %vm879_vm0, %v5323_v29 }
 0x1ca   : > { %1208 = vmatprep.mubr.bf16.mxu0 %v6045_v3  ;;  %4769 = vmatmul.mubr.msk.bf16.gmra.mrb[76].mxu1 %vm879_vm0, %v5323_v29 }
 0x1cb   : > { %1561 = vmatprep.mubr.bf16.mxu1 %v6045_v3 }
 0x1d1   : > { %4738 = vmatmul.mubr.msk.bf16.gmra.mrb[80].mxu0 %vm879_vm0, %v5324_v30 }
 0x1d2   : > { %1218 = vmatprep.mubr.bf16.mxu0 %v6045_v3  ;;  %4770 = vmatmul.mubr.msk.bf16.gmra.mrb[80].mxu1 %vm879_vm0, %v5324_v30 }
 0x1d3   : > { %1571 = vmatprep.mubr.bf16.mxu1 %v6045_v3 }
 0x1d9   : > { %4739 = vmatmul.mubr.msk.bf16.gmra.mrb[84].mxu0 %vm879_vm0, %v5325_v31 }
 0x1da   : > { %1228 = vmatprep.mubr.bf16.mxu0 %v6045_v3  ;;  %4771 = vmatmul.mubr.msk.bf16.gmra.mrb[84].mxu1 %vm879_vm0, %v5325_v31 }
 0x1db   : > { %1581 = vmatprep.mubr.bf16.mxu1 %v6045_v3 }
 0x1e1   : > { %4740 = vmatmul.mubr.msk.bf16.gmra.mrb[88].mxu0 %vm879_vm0, %v5326_v32 }
 0x1e2   : > { %1238 = vmatprep.mubr.bf16.mxu0 %v6045_v3  ;;  %4772 = vmatmul.mubr.msk.bf16.gmra.mrb[88].mxu1 %vm879_vm0, %v5326_v32 }
 0x1e3   : > { %1591 = vmatprep.mubr.bf16.mxu1 %v6045_v3 }
 0x1e9   : > { %4741 = vmatmul.mubr.msk.bf16.gmra.mrb[92].mxu0 %vm879_vm0, %v5327_v33 }
 0x1ea   : > { %1248 = vmatprep.mubr.bf16.mxu0 %v6045_v3  ;;  %4773 = vmatmul.mubr.msk.bf16.gmra.mrb[92].mxu1 %vm879_vm0, %v5327_v33 }
 0x1eb   : > { %1601 = vmatprep.mubr.bf16.mxu1 %v6045_v3 }
 0x1f1   : > { %4742 = vmatmul.mubr.msk.bf16.gmra.mrb[96].mxu0 %vm879_vm0, %v5328_v34 }
 0x1f2   : > { %1258 = vmatprep.mubr.bf16.mxu0 %v6045_v3  ;;  %4774 = vmatmul.mubr.msk.bf16.gmra.mrb[96].mxu1 %vm879_vm0, %v5328_v34 }
 0x1f3   : > { %1611 = vmatprep.mubr.bf16.mxu1 %v6045_v3 }
 0x1f9   : > { %4743 = vmatmul.mubr.msk.bf16.gmra.mrb[100].mxu0 %vm879_vm0, %v5329_v35 }
 0x1fa   : > { %1268 = vmatprep.mubr.bf16.mxu0 %v6045_v3  ;;  %4775 = vmatmul.mubr.msk.bf16.gmra.mrb[100].mxu1 %vm879_vm0, %v5329_v35 }
 0x1fb   : > { %1621 = vmatprep.mubr.bf16.mxu1 %v6045_v3 }
 0x201   : > { %4744 = vmatmul.mubr.msk.bf16.gmra.mrb[104].mxu0 %vm879_vm0, %v5330_v38 }
 0x202   : > { %1278 = vmatprep.mubr.bf16.mxu0 %v6045_v3  ;;  %4776 = vmatmul.mubr.msk.bf16.gmra.mrb[104].mxu1 %vm879_vm0, %v5330_v38 }
 0x203   : > { %1631 = vmatprep.mubr.bf16.mxu1 %v6045_v3 }
 0x204   : > { %v1010_v44 = vpop.f32.mrb[0].mxu0 }
 0x205   : > { %v1011_v45 = vadd.f32 %v1010_v44, %v6661_v42  ;;  %v1012_v46 = vpop.f32.mrb[1].mxu0  ;;  %v1363_v6 = vpop.f32.mrb[0].mxu1 }
 0x206   : > { %v1013_v48 = vadd.f32 %v1012_v46, %v6664_v43  ;;  %v1014_v49 = vpop.f32.mrb[2].mxu0  ;;  %v1364_v9 = vadd.f32 %v1363_v6, %v6683_v60  ;;  %v1365_v10 = vpop.f32.mrb[1].mxu1  ;;  %v6719_v46 = vand.u32 127, %v659_v36 }
 0x207   : > { %v1015_v50 = vadd.f32 %v1014_v49, %v6661_v42  ;;  %v1016_v51 = vpop.f32.mrb[3].mxu0  ;;  %v1682_v55 = vmax.f32 %v1011_v45, 0.0  ;;  %v1366_v12 = vadd.f32 %v1365_v10, %v6688_v63  ;;  %v1367_v13 = vpop.f32.mrb[2].mxu1 }
 0x208   : > { %v1017_v53 = vadd.f32 %v1016_v51, %v6664_v43  ;;  %v1683_v57 = vmax.f32 %v1013_v48, 0.0  ;;  %v1684_v16 = vmax.f32 %v1364_v9, 0.0  ;;  %v1368_v17 = vadd.f32 %v1367_v13, %v6683_v60  ;;  %v1369_v18 = vpop.f32.mrb[3].mxu1  ;;  %v6741_v9 = vld [vmem:[%s7301_s0 + $0xf0] sm:$0xff]  }
 0x209   : > { %v1686_v56 = vmax.f32 %v1015_v50, 0.0  ;;  %4745 = vmatmul.mubr.msk.bf16.gmra.mrb[108].mxu0 %vm879_vm0, %v5331_v47  ;;  %v1685_v21 = vmax.f32 %v1366_v12, 0.0  ;;  %v1370_v22 = vadd.f32 %v1369_v18, %v6688_v63  ;;  %v2078_v50 = vadd.s32 1, %v6644_v37 }
 0x20a   : > { %v1687_v58 = vmax.f32 %v1017_v53, 0.0  ;;  %1288 = vmatprep.mubr.bf16.mxu0 %v6045_v3  ;;  %v1688_v24 = vmax.f32 %v1368_v17, 0.0  ;;  %4777 = vmatmul.mubr.msk.bf16.gmra.mrb[108].mxu1 %vm879_vm0, %v5331_v47 }
 0x20b   : > { %v1938_v59 = vpack.c.bf16 %v1686_v56, %v1682_v55  ;;  %v1689_v27 = vmax.f32 %v1370_v22, 0.0  ;;  %1641 = vmatprep.mubr.bf16.mxu1 %v6045_v3 }
 0x20c   : > { %v1939_v61 = vpack.c.bf16 %v1687_v58, %v1683_v57  ;;  %v1020_v62 = vpop.f32.mrb[4].mxu0  ;;  %v1940_v31 = vpack.c.bf16 %v1688_v24, %v1684_v16 }
 0x20d   : > { %v1021_v0 = vadd.f32 %v1020_v62, %v6661_v42  ;;  %v1022_v1 = vpop.f32.mrb[5].mxu0  ;;  %v1941_v34 = vpack.c.bf16 %v1689_v27, %v1685_v21  ;;  %v1373_v35 = vpop.f32.mrb[4].mxu1 }
 0x20e   : > { %2096 = vmatprep.subr.bf16.mxu0 %v1939_v61  ;;  %v1023_v4 = vadd.f32 %v1022_v1, %v6664_v43  ;;  %v1024_v5 = vpop.f32.mrb[6].mxu0  ;;  %v1374_v44 = vadd.f32 %v1373_v35, %v6683_v60  ;;  %v1375_v45 = vpop.f32.mrb[5].mxu1  ;;  %v2070_v1 = vadd.s32 128, %v6719_v46 }
 0x20f   : > { %2097 = vmatpush1.bf16.msra.mxu0 %v1938_v59  ;;  %v1025_v7 = vadd.f32 %v1024_v5, %v6661_v42  ;;  %v1026_v8 = vpop.f32.mrb[7].mxu0  ;;  %v1690_v14 = vmax.f32 %v1021_v0, 0.0  ;;  %2178 = vmatprep.subr.bf16.mxu1 %v1941_v34  ;;  %v1376_v48 = vadd.f32 %v1375_v45, %v6688_v63  ;;  %v1377_v49 = vpop.f32.mrb[6].mxu1  ;;  %v6770_v45 = vld [vmem:[%s7301_s0 + $0xf8] sm:$0xff]  }
 0x210   : > { %v1027_v11 = vadd.f32 %v1026_v8, %v6664_v43  ;;  %v1691_v19 = vmax.f32 %v1023_v4, 0.0  ;;  %2179 = vmatpush1.bf16.msra.mxu1 %v1940_v31  ;;  %v1692_v55 = vmax.f32 %v1374_v44, 0.0  ;;  %v1378_v56 = vadd.f32 %v1377_v49, %v6683_v60  ;;  %v1379_v57 = vpop.f32.mrb[7].mxu1 }
 0x211   : > { %4746 = vmatmul.mubr.msk.bf16.gmra.mrb[112].mxu0 %vm879_vm0, %v6695_v2  ;;  %v1694_v15 = vmax.f32 %v1025_v7, 0.0  ;;  %v1693_v59 = vmax.f32 %v1376_v48, 0.0  ;;  %v1380_v61 = vadd.f32 %v1379_v57, %v6688_v63  ;;  %v6734_v7 = vmul.u32 256, %v6644_v37 }
 0x212   : > { %v1695_v20 = vmax.f32 %v1027_v11, 0.0  ;;  %1298 = vmatprep.mubr.bf16.mxu0 %v6045_v3  ;;  %4778 = vmatmul.mubr.msk.bf16.gmra.mrb[112].mxu1 %vm879_vm0, %v6695_v2  ;;  %v1696_v0 = vmax.f32 %v1378_v56, 0.0  ;;  %v6736_v8 = vmul.u32 256, %v2078_v50 }
 0x213   : > { %v1942_v23 = vpack.c.bf16 %v1694_v15, %v1690_v14  ;;  %v1697_v6 = vmax.f32 %v1380_v61, 0.0  ;;  %1651 = vmatprep.mubr.bf16.mxu1 %v6045_v3  ;;  %vm2075_vm1 = vcmp.ge.s32.totalorder %v2070_v1, %v6734_v7  ;;  %vm2074_vm5 = vcmp.ge.s32.totalorder %v6719_v46, %v6734_v7 }
 0x214   : > { %v1943_v25 = vpack.c.bf16 %v1695_v20, %v1691_v19  ;;  %v1030_v26 = vpop.f32.mrb[8].mxu0  ;;  %v1944_v11 = vpack.c.bf16 %v1696_v0, %v1692_v55  ;;  %vm2081_vm2 = vcmp.lt.s32.totalorder %v2070_v1, %v6736_v8  ;;  %vm2080_vm6 = vcmp.lt.s32.totalorder %v6719_v46, %v6736_v8 }
 0x215   : > { %v1031_v29 = vadd.f32 %v1030_v26, %v6661_v42  ;;  %v1032_v30 = vpop.f32.mrb[9].mxu0  ;;  %v1945_v14 = vpack.c.bf16 %v1697_v6, %v1693_v59  ;;  %v1383_v15 = vpop.f32.mrb[8].mxu1  ;;  %vm6763_vm3 = vmand %vm2075_vm1, %vm2081_vm2  ;;  %vm4193_vm1 = vcmask (!%p4926_p11), 1041408   ;;  %vm6049_vm2 = vmmov (!%p4926_p11), 0  }
 0x216   : > { %2098 = vmatprep.subr.bf16.mxu0 %v1943_v25  ;;  %v1033_v32 = vadd.f32 %v1032_v30, %v6664_v43  ;;  %v1034_v33 = vpop.f32.mrb[10].mxu0  ;;  %v1384_v18 = vadd.f32 %v1383_v15, %v6683_v60  ;;  %v1385_v19 = vpop.f32.mrb[9].mxu1  ;;  %vm4782_vm4 = vmpackc.low %vm6763_vm3, %vm6763_vm3  ;;  %vm4505_vm3 = vcmp.eq.s32.totalorder (!%p4926_p11), %v6719_v46, 1 }
 0x217   : > { %2099 = vmatpush1.bf16.msra.mxu0 %v1942_v23  ;;  %v1035_v38 = vadd.f32 %v1034_v33, %v6661_v42  ;;  %v1036_v40 = vpop.f32.mrb[11].mxu0  ;;  %v1698_v51 = vmax.f32 %v1031_v29, 0.0  ;;  %2180 = vmatprep.subr.bf16.mxu1 %v1945_v14  ;;  %v1386_v21 = vadd.f32 %v1385_v19, %v6688_v63  ;;  %v1387_v22 = vpop.f32.mrb[10].mxu1  ;;  %vm6900_vm7 = vmand %vm2074_vm5, %vm2080_vm6 }
 0x218   : > { %v1037_v47 = vadd.f32 %v1036_v40, %v6664_v43  ;;  %v1699_v36 = vmax.f32 %v1033_v32, 0.0  ;;  %2181 = vmatpush1.bf16.msra.mxu1 %v1944_v11  ;;  %v1700_v25 = vmax.f32 %v1384_v18, 0.0  ;;  %v1388_v26 = vadd.f32 %v1387_v22, %v6683_v60  ;;  %v1389_v27 = vpop.f32.mrb[11].mxu1  ;;  %vm4784_vm8 = vmpackc.low %vm6900_vm7, %vm6900_vm7 }
 0x219   : > { %4747 = vmatmul.mubr.msk.bf16.gmra.mrb[116].mxu0 %vm879_vm0, %v6712_v28  ;;  %v1702_v53 = vmax.f32 %v1035_v38, 0.0  ;;  %v1701_v31 = vmax.f32 %v1386_v21, 0.0  ;;  %v1390_v32 = vadd.f32 %v1389_v27, %v6688_v63 }
 0x21a   : > { %1308 = vmatprep.mubr.bf16.mxu0 %v6045_v3  ;;  %v1703_v58 = vmax.f32 %v1037_v47, 0.0  ;;  %4779 = vmatmul.mubr.msk.bf16.gmra.mrb[116].mxu1 %vm879_vm0, %v6712_v28  ;;  %v1704_v34 = vmax.f32 %v1388_v26, 0.0 }
 0x21b   : > { %v1946_v62 = vpack.c.bf16 %v1702_v53, %v1698_v51  ;;  %1661 = vmatprep.mubr.bf16.mxu1 %v6045_v3  ;;  %v1705_v40 = vmax.f32 %v1390_v32, 0.0 }
 0x21c   : > { %v1947_v4 = vpack.c.bf16 %v1703_v58, %v1699_v36  ;;  %v1040_v5 = vpop.f32.mrb[12].mxu0  ;;  %v1948_v48 = vpack.c.bf16 %v1704_v34, %v1700_v25 }
 0x21d   : > { %v1041_v2 = vadd.f32 %v1040_v5, %v6661_v42  ;;  %v1042_v10 = vpop.f32.mrb[13].mxu0  ;;  %v1949_v51 = vpack.c.bf16 %v1705_v40, %v1701_v31  ;;  %v1393_v53 = vpop.f32.mrb[12].mxu1 }
 0x21e   : > { %2100 = vmatprep.subr.bf16.mxu0 %v1947_v4  ;;  %v1043_v12 = vadd.f32 %v1042_v10, %v6664_v43  ;;  %v1044_v13 = vpop.f32.mrb[14].mxu0  ;;  %v1394_v57 = vadd.f32 %v1393_v53, %v6683_v60  ;;  %v1395_v36 = vpop.f32.mrb[13].mxu1 }
 0x21f   : > { %2101 = vmatpush1.bf16.msra.mxu0 %v1946_v62  ;;  %v1045_v16 = vadd.f32 %v1044_v13, %v6661_v42  ;;  %v1046_v17 = vpop.f32.mrb[15].mxu0  ;;  %v1706_v23 = vmax.f32 %v1041_v2, 0.0  ;;  %2182 = vmatprep.subr.bf16.mxu1 %v1949_v51  ;;  %v1396_v59 = vadd.f32 %v1395_v36, %v6688_v63  ;;  %v1397_v61 = vpop.f32.mrb[14].mxu1 }
 0x220   : > { %v1047_v20 = vadd.f32 %v1046_v17, %v6664_v43  ;;  %v1707_v29 = vmax.f32 %v1043_v12, 0.0  ;;  %2183 = vmatpush1.bf16.msra.mxu1 %v1948_v48  ;;  %v1708_v1 = vmax.f32 %v1394_v57, 0.0  ;;  %v1398_v4 = vadd.f32 %v1397_v61, %v6683_v60  ;;  %v1399_v5 = vpop.f32.mrb[15].mxu1 }
 0x221   : > { %4748 = vmatmul.mubr.msk.bf16.gmra.mrb[120].mxu0 %vm879_vm0, %v6741_v9  ;;  %v1710_v24 = vmax.f32 %v1045_v16, 0.0  ;;  %v1709_v10 = vmax.f32 %v1396_v59, 0.0  ;;  %v1400_v11 = vadd.f32 %v1399_v5, %v6688_v63  ;;  %v6046_v12 = vmov 0.00390625|0.00390625  }
 0x222   : > { %1318 = vmatprep.mubr.bf16.mxu0 %v6045_v3  ;;  %v1711_v30 = vmax.f32 %v1047_v20, 0.0  ;;  %4780 = vmatmul.mubr.msk.bf16.gmra.mrb[120].mxu1 %vm879_vm0, %v6741_v9  ;;  %v1712_v14 = vmax.f32 %v1398_v4, 0.0 }
 0x223   : > { %v1950_v33 = vpack.c.bf16 %v1710_v24, %v1706_v23  ;;  %1671 = vmatprep.mubr.bf16.mxu1 %v6045_v3  ;;  %v1713_v17 = vmax.f32 %v1400_v11, 0.0 }
 0x224   : > { %v1951_v35 = vpack.c.bf16 %v1711_v30, %v1707_v29  ;;  %v1050_v38 = vpop.f32.mrb[16].mxu0  ;;  %v1952_v20 = vpack.c.bf16 %v1712_v14, %v1708_v1 }
 0x225   : > { %v1051_v28 = vadd.f32 %v1050_v38, %v6661_v42  ;;  %v1052_v47 = vpop.f32.mrb[17].mxu0  ;;  %v1953_v23 = vpack.c.bf16 %v1713_v17, %v1709_v10  ;;  %v1403_v24 = vpop.f32.mrb[16].mxu1 }
 0x226   : > { %2102 = vmatprep.subr.bf16.mxu0 %v1951_v35  ;;  %v1053_v49 = vadd.f32 %v1052_v47, %v6664_v43  ;;  %v1054_v50 = vpop.f32.mrb[18].mxu0  ;;  %v1404_v26 = vadd.f32 %v1403_v24, %v6683_v60  ;;  %v1405_v27 = vpop.f32.mrb[17].mxu1 }
 0x227   : > { %2103 = vmatpush1.bf16.msra.mxu0 %v1950_v33  ;;  %v1055_v55 = vadd.f32 %v1054_v50, %v6661_v42  ;;  %v1056_v56 = vpop.f32.mrb[19].mxu0  ;;  %v1714_v62 = vmax.f32 %v1051_v28, 0.0  ;;  %2184 = vmatprep.subr.bf16.mxu1 %v1953_v23  ;;  %v1406_v29 = vadd.f32 %v1405_v27, %v6688_v63  ;;  %v1407_v30 = vpop.f32.mrb[18].mxu1 }
 0x228   : > { %v1057_v58 = vadd.f32 %v1056_v56, %v6664_v43  ;;  %v1715_v6 = vmax.f32 %v1053_v49, 0.0  ;;  %2185 = vmatpush1.bf16.msra.mxu1 %v1952_v20  ;;  %v1716_v33 = vmax.f32 %v1404_v26, 0.0  ;;  %v1408_v34 = vadd.f32 %v1407_v30, %v6683_v60  ;;  %v1409_v35 = vpop.f32.mrb[19].mxu1 }
 0x229   : > { %4749 = vmatmul.mubr.msk.bf16.gmra.mrb[124].mxu0 %vm879_vm0, %v6770_v45  ;;  %v1718_v0 = vmax.f32 %v1055_v55, 0.0  ;;  %v1717_v28 = vmax.f32 %v1406_v29, 0.0  ;;  %v1410_v47 = vadd.f32 %v1409_v35, %v6688_v63 }
 0x22a   : > { %v1719_v2 = vmax.f32 %v1057_v58, 0.0  ;;  %4783 = vmatprep.mubr.msk.bf16.mxu0 %vm4782_vm4, %v6046_v12  ;;  %4781 = vmatmul.mubr.msk.bf16.gmra.mrb[124].mxu1 %vm879_vm0, %v6770_v45  ;;  %v1720_v49 = vmax.f32 %v1408_v34, 0.0 }
 0x22b   : > { %v1954_v13 = vpack.c.bf16 %v1718_v0, %v1714_v62  ;;  %v1721_v53 = vmax.f32 %v1410_v47, 0.0  ;;  %4791 = vmatprep.mubr.msk.bf16.mxu1 %vm4782_vm4, %v6046_v12  ;;  %vm4504_vm4 = vcmp.eq.s32.totalorder (!%p4926_p11), %v6719_v46, 0 }
 0x22c   : > { %v1955_v15 = vpack.c.bf16 %v1719_v2, %v1715_v6  ;;  %v1060_v16 = vpop.f32.mrb[20].mxu0  ;;  %v1956_v57 = vpack.c.bf16 %v1720_v49, %v1716_v33 }
 0x22d   : > { %v1061_v18 = vadd.f32 %v1060_v16, %v6661_v42  ;;  %v1062_v19 = vpop.f32.mrb[21].mxu0  ;;  %v1957_v45 = vpack.c.bf16 %v1721_v53, %v1717_v28  ;;  %v1413_v59 = vpop.f32.mrb[20].mxu1 }
 0x22e   : > { %2104 = vmatprep.subr.bf16.mxu0 %v1955_v15  ;;  %v1063_v21 = vadd.f32 %v1062_v19, %v6664_v43  ;;  %v1064_v22 = vpop.f32.mrb[22].mxu0  ;;  %v1414_v0 = vadd.f32 %v1413_v59, %v6683_v60  ;;  %v1415_v1 = vpop.f32.mrb[21].mxu1 }
 0x22f   : > { %2105 = vmatpush1.bf16.msra.mxu0 %v1954_v13  ;;  %v1065_v25 = vadd.f32 %v1064_v22, %v6661_v42  ;;  %v1066_v9 = vpop.f32.mrb[23].mxu0  ;;  %v1722_v31 = vmax.f32 %v1061_v18, 0.0  ;;  %2186 = vmatprep.subr.bf16.mxu1 %v1957_v45  ;;  %v1416_v4 = vadd.f32 %v1415_v1, %v6688_v63  ;;  %v1417_v5 = vpop.f32.mrb[22].mxu1 }
 0x230   : > { %v1067_v3 = vadd.f32 %v1066_v9, %v6664_v43  ;;  %v1723_v38 = vmax.f32 %v1063_v21, 0.0  ;;  %2187 = vmatpush1.bf16.msra.mxu1 %v1956_v57  ;;  %v1724_v10 = vmax.f32 %v1414_v0, 0.0  ;;  %v1418_v11 = vadd.f32 %v1417_v5, %v6683_v60  ;;  %v1419_v13 = vpop.f32.mrb[23].mxu1 }
 0x231   : > { %v1726_v32 = vmax.f32 %v1065_v25, 0.0  ;;  %v1725_v16 = vmax.f32 %v1416_v4, 0.0  ;;  %v1420_v17 = vadd.f32 %v1419_v13, %v6688_v63 }
 0x232   : > { %v1727_v40 = vmax.f32 %v1067_v3, 0.0  ;;  %v1728_v19 = vmax.f32 %v1418_v11, 0.0 }
 0x233   : > { %v1958_v48 = vpack.c.bf16 %v1726_v32, %v1722_v31  ;;  %v1729_v22 = vmax.f32 %v1420_v17, 0.0 }
 0x234   : > { %v1959_v50 = vpack.c.bf16 %v1727_v40, %v1723_v38  ;;  %v1070_v51 = vpop.f32.mrb[24].mxu0  ;;  %v1960_v25 = vpack.c.bf16 %v1728_v19, %v1724_v10 }
 0x235   : > { %v1071_v55 = vadd.f32 %v1070_v51, %v6661_v42  ;;  %v1072_v56 = vpop.f32.mrb[25].mxu0  ;;  %v1961_v27 = vpack.c.bf16 %v1729_v22, %v1725_v16  ;;  %v1423_v3 = vpop.f32.mrb[24].mxu1 }
 0x236   : > { %2106 = vmatprep.subr.bf16.mxu0 %v1959_v50  ;;  %v1073_v36 = vadd.f32 %v1072_v56, %v6664_v43  ;;  %v1074_v58 = vpop.f32.mrb[26].mxu0  ;;  %v1424_v31 = vadd.f32 %v1423_v3, %v6683_v60  ;;  %v1425_v32 = vpop.f32.mrb[25].mxu1 }
 0x237   : > { %2107 = vmatpush1.bf16.msra.mxu0 %v1958_v48  ;;  %v1075_v61 = vadd.f32 %v1074_v58, %v6661_v42  ;;  %v1076_v62 = vpop.f32.mrb[27].mxu0  ;;  %v1730_v6 = vmax.f32 %v1071_v55, 0.0  ;;  %2188 = vmatprep.subr.bf16.mxu1 %v1961_v27  ;;  %v1426_v34 = vadd.f32 %v1425_v32, %v6688_v63  ;;  %v1427_v35 = vpop.f32.mrb[26].mxu1 }
 0x238   : > { %v1077_v44 = vadd.f32 %v1076_v62, %v6664_v43  ;;  %v1731_v14 = vmax.f32 %v1073_v36, 0.0  ;;  %2189 = vmatpush1.bf16.msra.mxu1 %v1960_v25  ;;  %v1732_v28 = vmax.f32 %v1424_v31, 0.0  ;;  %v1428_v47 = vadd.f32 %v1427_v35, %v6683_v60  ;;  %v1429_v48 = vpop.f32.mrb[27].mxu1 }
 0x239   : > { %v1734_v2 = vmax.f32 %v1075_v61, 0.0  ;;  %v1733_v51 = vmax.f32 %v1426_v34, 0.0  ;;  %v1430_v53 = vadd.f32 %v1429_v48, %v6688_v63 }
 0x23a   : > { %v1735_v15 = vmax.f32 %v1077_v44, 0.0  ;;  %v1736_v56 = vmax.f32 %v1428_v47, 0.0 }
 0x23b   : > { %v1962_v18 = vpack.c.bf16 %v1734_v2, %v1730_v6  ;;  %v1737_v58 = vmax.f32 %v1430_v53, 0.0 }
 0x23c   : > { %v1963_v20 = vpack.c.bf16 %v1735_v15, %v1731_v14  ;;  %v1080_v21 = vpop.f32.mrb[28].mxu0  ;;  %v1964_v61 = vpack.c.bf16 %v1736_v56, %v1732_v28 }
 0x23d   : > { %v1081_v23 = vadd.f32 %v1080_v21, %v6661_v42  ;;  %v1082_v24 = vpop.f32.mrb[29].mxu0  ;;  %v1965_v1 = vpack.c.bf16 %v1737_v58, %v1733_v51  ;;  %v1433_v44 = vpop.f32.mrb[28].mxu1 }
 0x23e   : > { %2108 = vmatprep.subr.bf16.mxu0 %v1963_v20  ;;  %v1083_v9 = vadd.f32 %v1082_v24, %v6664_v43  ;;  %v1084_v26 = vpop.f32.mrb[30].mxu0  ;;  %v1434_v6 = vadd.f32 %v1433_v44, %v6683_v60  ;;  %v1435_v2 = vpop.f32.mrb[29].mxu1 }
 0x23f   : > { %2109 = vmatpush1.bf16.msra.mxu0 %v1962_v18  ;;  %v1085_v29 = vadd.f32 %v1084_v26, %v6661_v42  ;;  %v1086_v30 = vpop.f32.mrb[31].mxu0  ;;  %v1738_v38 = vmax.f32 %v1081_v23, 0.0  ;;  %2190 = vmatprep.subr.bf16.mxu1 %v1965_v1  ;;  %v1436_v11 = vadd.f32 %v1435_v2, %v6688_v63  ;;  %v1437_v13 = vpop.f32.mrb[30].mxu1 }
 0x240   : > { %v1087_v33 = vadd.f32 %v1086_v30, %v6664_v43  ;;  %v1739_v49 = vmax.f32 %v1083_v9, 0.0  ;;  %2191 = vmatpush1.bf16.msra.mxu1 %v1964_v61  ;;  %v1740_v16 = vmax.f32 %v1434_v6, 0.0  ;;  %v1438_v17 = vadd.f32 %v1437_v13, %v6683_v60  ;;  %v1439_v18 = vpop.f32.mrb[31].mxu1 }
 0x241   : > { %v1742_v40 = vmax.f32 %v1085_v29, 0.0  ;;  %v1741_v21 = vmax.f32 %v1436_v11, 0.0  ;;  %v1440_v22 = vadd.f32 %v1439_v18, %v6688_v63 }
 0x242   : > { %v1743_v50 = vmax.f32 %v1087_v33, 0.0  ;;  %v1744_v24 = vmax.f32 %v1438_v17, 0.0 }
 0x243   : > { %v1966_v55 = vpack.c.bf16 %v1742_v40, %v1738_v38  ;;  %v1745_v26 = vmax.f32 %v1440_v22, 0.0 }
 0x244   : > { %v1967_v57 = vpack.c.bf16 %v1743_v50, %v1739_v49  ;;  %v1090_v36 = vpop.f32.mrb[32].mxu0  ;;  %v1968_v29 = vpack.c.bf16 %v1744_v24, %v1740_v16 }
 0x245   : > { %v1091_v45 = vadd.f32 %v1090_v36, %v6661_v42  ;;  %v1092_v59 = vpop.f32.mrb[33].mxu0  ;;  %v1969_v32 = vpack.c.bf16 %v1745_v26, %v1741_v21  ;;  %v1443_v33 = vpop.f32.mrb[32].mxu1 }
 0x246   : > { %2110 = vmatprep.subr.bf16.mxu0 %v1967_v57  ;;  %v1093_v62 = vadd.f32 %v1092_v59, %v6664_v43  ;;  %v1094_v0 = vpop.f32.mrb[34].mxu0  ;;  %v1444_v38 = vadd.f32 %v1443_v33, %v6683_v60  ;;  %v1445_v40 = vpop.f32.mrb[33].mxu1 }
 0x247   : > { %2111 = vmatpush1.bf16.msra.mxu0 %v1966_v55  ;;  %v1095_v4 = vadd.f32 %v1094_v0, %v6661_v42  ;;  %v1096_v5 = vpop.f32.mrb[35].mxu0  ;;  %v1746_v14 = vmax.f32 %v1091_v45, 0.0  ;;  %2192 = vmatprep.subr.bf16.mxu1 %v1969_v32  ;;  %v1446_v47 = vadd.f32 %v1445_v40, %v6688_v63  ;;  %v1447_v48 = vpop.f32.mrb[34].mxu1 }
 0x248   : > { %v1097_v10 = vadd.f32 %v1096_v5, %v6664_v43  ;;  %v1747_v19 = vmax.f32 %v1093_v62, 0.0  ;;  %2193 = vmatpush1.bf16.msra.mxu1 %v1968_v29  ;;  %v1748_v51 = vmax.f32 %v1444_v38, 0.0  ;;  %v1448_v53 = vadd.f32 %v1447_v48, %v6683_v60  ;;  %v1449_v55 = vpop.f32.mrb[35].mxu1 }
 0x249   : > { %v1750_v15 = vmax.f32 %v1095_v4, 0.0  ;;  %v1749_v36 = vmax.f32 %v1446_v47, 0.0  ;;  %v1450_v58 = vadd.f32 %v1449_v55, %v6688_v63 }
 0x24a   : > { %v1751_v20 = vmax.f32 %v1097_v10, 0.0  ;;  %v1752_v59 = vmax.f32 %v1448_v53, 0.0 }
 0x24b   : > { %v1970_v23 = vpack.c.bf16 %v1750_v15, %v1746_v14  ;;  %v1753_v0 = vmax.f32 %v1450_v58, 0.0 }
 0x24c   : > { %v1971_v25 = vpack.c.bf16 %v1751_v20, %v1747_v19  ;;  %v1100_v9 = vpop.f32.mrb[36].mxu0  ;;  %v1972_v4 = vpack.c.bf16 %v1752_v59, %v1748_v51 }
 0x24d   : > { %v1101_v27 = vadd.f32 %v1100_v9, %v6661_v42  ;;  %v1102_v3 = vpop.f32.mrb[37].mxu0  ;;  %v1973_v2 = vpack.c.bf16 %v1753_v0, %v1749_v36  ;;  %v1453_v10 = vpop.f32.mrb[36].mxu1 }
 0x24e   : > { %2112 = vmatprep.subr.bf16.mxu0 %v1971_v25  ;;  %v1103_v30 = vadd.f32 %v1102_v3, %v6664_v43  ;;  %v1104_v31 = vpop.f32.mrb[38].mxu0  ;;  %v1454_v14 = vadd.f32 %v1453_v10, %v6683_v60  ;;  %v1455_v15 = vpop.f32.mrb[37].mxu1 }
 0x24f   : > { %2113 = vmatpush1.bf16.msra.mxu0 %v1970_v23  ;;  %v1105_v34 = vadd.f32 %v1104_v31, %v6661_v42  ;;  %v1106_v35 = vpop.f32.mrb[39].mxu0  ;;  %v1754_v49 = vmax.f32 %v1101_v27, 0.0  ;;  %2194 = vmatprep.subr.bf16.mxu1 %v1973_v2  ;;  %v1456_v17 = vadd.f32 %v1455_v15, %v6688_v63  ;;  %v1457_v18 = vpop.f32.mrb[38].mxu1 }
 0x250   : > { %v1107_v28 = vadd.f32 %v1106_v35, %v6664_v43  ;;  %v1755_v56 = vmax.f32 %v1103_v30, 0.0  ;;  %2195 = vmatpush1.bf16.msra.mxu1 %v1972_v4  ;;  %v1756_v21 = vmax.f32 %v1454_v14, 0.0  ;;  %v1458_v22 = vadd.f32 %v1457_v18, %v6683_v60  ;;  %v1459_v23 = vpop.f32.mrb[39].mxu1 }
 0x251   : > { %v1758_v50 = vmax.f32 %v1105_v34, 0.0  ;;  %v1757_v9 = vmax.f32 %v1456_v17, 0.0  ;;  %v1460_v26 = vadd.f32 %v1459_v23, %v6688_v63 }
 0x252   : > { %v1759_v57 = vmax.f32 %v1107_v28, 0.0  ;;  %v1760_v3 = vmax.f32 %v1458_v22, 0.0 }
 0x253   : > { %v1974_v45 = vpack.c.bf16 %v1758_v50, %v1754_v49  ;;  %v1761_v31 = vmax.f32 %v1460_v26, 0.0 }
 0x254   : > { %v1975_v61 = vpack.c.bf16 %v1759_v57, %v1755_v56  ;;  %v1110_v62 = vpop.f32.mrb[40].mxu0  ;;  %v1976_v34 = vpack.c.bf16 %v1760_v3, %v1756_v21 }
 0x255   : > { %v1111_v1 = vadd.f32 %v1110_v62, %v6661_v42  ;;  %v1112_v44 = vpop.f32.mrb[41].mxu0  ;;  %v1977_v40 = vpack.c.bf16 %v1761_v31, %v1757_v9  ;;  %v1463_v28 = vpop.f32.mrb[40].mxu1 }
 0x256   : > { %v1113_v5 = vadd.f32 %v1112_v44, %v6664_v43  ;;  %v1114_v6 = vpop.f32.mrb[42].mxu0  ;;  %2114 = vmatprep.subr.bf16.mxu0 %v1975_v61  ;;  %v1464_v49 = vadd.f32 %v1463_v28, %v6683_v60  ;;  %v1465_v50 = vpop.f32.mrb[41].mxu1 }
 0x257   : > { %v1115_v11 = vadd.f32 %v1114_v6, %v6661_v42  ;;  %v1116_v13 = vpop.f32.mrb[43].mxu0  ;;  %2115 = vmatpush1.bf16.msra.mxu0 %v1974_v45  ;;  %v1762_v19 = vmax.f32 %v1111_v1, 0.0  ;;  %v1466_v53 = vadd.f32 %v1465_v50, %v6688_v63  ;;  %v1467_v55 = vpop.f32.mrb[42].mxu1  ;;  %2196 = vmatprep.subr.bf16.mxu1 %v1977_v40 }
 0x258   : > { %v1117_v16 = vadd.f32 %v1116_v13, %v6664_v43  ;;  %v1763_v24 = vmax.f32 %v1113_v5, 0.0  ;;  %v1764_v36 = vmax.f32 %v1464_v49, 0.0  ;;  %v1468_v58 = vadd.f32 %v1467_v55, %v6683_v60  ;;  %v1469_v45 = vpop.f32.mrb[43].mxu1  ;;  %2197 = vmatpush1.bf16.msra.mxu1 %v1976_v34 }
 0x259   : > { %v1766_v20 = vmax.f32 %v1115_v11, 0.0  ;;  %v1765_v62 = vmax.f32 %v1466_v53, 0.0  ;;  %v1470_v0 = vadd.f32 %v1469_v45, %v6688_v63 }
 0x25a   : > { %v1767_v25 = vmax.f32 %v1117_v16, 0.0  ;;  %v1768_v44 = vmax.f32 %v1468_v58, 0.0 }
 0x25b   : > { %v1978_v27 = vpack.c.bf16 %v1766_v20, %v1762_v19  ;;  %v1769_v6 = vmax.f32 %v1470_v0, 0.0 }
 0x25c   : > { %v1979_v29 = vpack.c.bf16 %v1767_v25, %v1763_v24  ;;  %v1120_v30 = vpop.f32.mrb[44].mxu0  ;;  %v1980_v11 = vpack.c.bf16 %v1768_v44, %v1764_v36 }
 0x25d   : > { %v1121_v32 = vadd.f32 %v1120_v30, %v6661_v42  ;;  %v1122_v33 = vpop.f32.mrb[45].mxu0  ;;  %v1981_v15 = vpack.c.bf16 %v1769_v6, %v1765_v62  ;;  %v1473_v16 = vpop.f32.mrb[44].mxu1 }
 0x25e   : > { %v1123_v35 = vadd.f32 %v1122_v33, %v6664_v43  ;;  %v1124_v38 = vpop.f32.mrb[46].mxu0  ;;  %2116 = vmatprep.subr.bf16.mxu0 %v1979_v29  ;;  %v1474_v19 = vadd.f32 %v1473_v16, %v6683_v60  ;;  %v1475_v20 = vpop.f32.mrb[45].mxu1 }
 0x25f   : > { %v1125_v47 = vadd.f32 %v1124_v38, %v6661_v42  ;;  %v1126_v48 = vpop.f32.mrb[47].mxu0  ;;  %2117 = vmatpush1.bf16.msra.mxu0 %v1978_v27  ;;  %v1770_v56 = vmax.f32 %v1121_v32, 0.0  ;;  %v1476_v22 = vadd.f32 %v1475_v20, %v6688_v63  ;;  %v1477_v23 = vpop.f32.mrb[46].mxu1  ;;  %2198 = vmatprep.subr.bf16.mxu1 %v1981_v15 }
 0x260   : > { %v1127_v51 = vadd.f32 %v1126_v48, %v6664_v43  ;;  %v1771_v59 = vmax.f32 %v1123_v35, 0.0  ;;  %v1772_v9 = vmax.f32 %v1474_v19, 0.0  ;;  %v1478_v26 = vadd.f32 %v1477_v23, %v6683_v60  ;;  %v1479_v27 = vpop.f32.mrb[47].mxu1  ;;  %2199 = vmatpush1.bf16.msra.mxu1 %v1980_v11 }
 0x261   : > { %v1774_v57 = vmax.f32 %v1125_v47, 0.0  ;;  %v1773_v30 = vmax.f32 %v1476_v22, 0.0  ;;  %v1480_v31 = vadd.f32 %v1479_v27, %v6688_v63 }
 0x262   : > { %v1775_v61 = vmax.f32 %v1127_v51, 0.0  ;;  %v1776_v33 = vmax.f32 %v1478_v26, 0.0 }
 0x263   : > { %v1982_v1 = vpack.c.bf16 %v1774_v57, %v1770_v56  ;;  %v1777_v38 = vmax.f32 %v1480_v31, 0.0 }
 0x264   : > { %v1983_v4 = vpack.c.bf16 %v1775_v61, %v1771_v59  ;;  %v1130_v5 = vpop.f32.mrb[48].mxu0  ;;  %v1984_v47 = vpack.c.bf16 %v1776_v33, %v1772_v9 }
 0x265   : > { %v1131_v2 = vadd.f32 %v1130_v5, %v6661_v42  ;;  %v1132_v10 = vpop.f32.mrb[49].mxu0  ;;  %v1985_v50 = vpack.c.bf16 %v1777_v38, %v1773_v30  ;;  %v1483_v51 = vpop.f32.mrb[48].mxu1 }
 0x266   : > { %v1133_v13 = vadd.f32 %v1132_v10, %v6664_v43  ;;  %v1134_v14 = vpop.f32.mrb[50].mxu0  ;;  %2118 = vmatprep.subr.bf16.mxu0 %v1983_v4  ;;  %v1484_v56 = vadd.f32 %v1483_v51, %v6683_v60  ;;  %v1485_v57 = vpop.f32.mrb[49].mxu1 }
 0x267   : > { %v1135_v17 = vadd.f32 %v1134_v14, %v6661_v42  ;;  %v1136_v18 = vpop.f32.mrb[51].mxu0  ;;  %2119 = vmatpush1.bf16.msra.mxu0 %v1982_v1  ;;  %v1778_v24 = vmax.f32 %v1131_v2, 0.0  ;;  %v1486_v58 = vadd.f32 %v1485_v57, %v6688_v63  ;;  %v1487_v45 = vpop.f32.mrb[50].mxu1  ;;  %2200 = vmatprep.subr.bf16.mxu1 %v1985_v50 }
 0x268   : > { %v1137_v21 = vadd.f32 %v1136_v18, %v6664_v43  ;;  %v1779_v3 = vmax.f32 %v1133_v13, 0.0  ;;  %v1780_v62 = vmax.f32 %v1484_v56, 0.0  ;;  %v1488_v0 = vadd.f32 %v1487_v45, %v6683_v60  ;;  %v1489_v1 = vpop.f32.mrb[51].mxu1  ;;  %2201 = vmatpush1.bf16.msra.mxu1 %v1984_v47 }
 0x269   : > { %v1782_v25 = vmax.f32 %v1135_v17, 0.0  ;;  %v1781_v5 = vmax.f32 %v1486_v58, 0.0  ;;  %v1490_v6 = vadd.f32 %v1489_v1, %v6688_v63 }
 0x26a   : > { %v1783_v29 = vmax.f32 %v1137_v21, 0.0  ;;  %v1784_v10 = vmax.f32 %v1488_v0, 0.0 }
 0x26b   : > { %v1986_v32 = vpack.c.bf16 %v1782_v25, %v1778_v24  ;;  %v1785_v14 = vmax.f32 %v1490_v6, 0.0 }
 0x26c   : > { %v1987_v34 = vpack.c.bf16 %v1783_v29, %v1779_v3  ;;  %v1140_v35 = vpop.f32.mrb[52].mxu0  ;;  %v1988_v17 = vpack.c.bf16 %v1784_v10, %v1780_v62 }
 0x26d   : > { %v1141_v40 = vadd.f32 %v1140_v35, %v6661_v42  ;;  %v1142_v28 = vpop.f32.mrb[53].mxu0  ;;  %v1989_v20 = vpack.c.bf16 %v1785_v14, %v1781_v5  ;;  %v1493_v21 = vpop.f32.mrb[52].mxu1 }
 0x26e   : > { %v1143_v48 = vadd.f32 %v1142_v28, %v6664_v43  ;;  %v1144_v49 = vpop.f32.mrb[54].mxu0  ;;  %2120 = vmatprep.subr.bf16.mxu0 %v1987_v34  ;;  %v1494_v24 = vadd.f32 %v1493_v21, %v6683_v60  ;;  %v1495_v25 = vpop.f32.mrb[53].mxu1 }
 0x26f   : > { %v1145_v53 = vadd.f32 %v1144_v49, %v6661_v42  ;;  %v1146_v55 = vpop.f32.mrb[55].mxu0  ;;  %2121 = vmatpush1.bf16.msra.mxu0 %v1986_v32  ;;  %v1786_v59 = vmax.f32 %v1141_v40, 0.0  ;;  %v1496_v26 = vadd.f32 %v1495_v25, %v6688_v63  ;;  %v1497_v27 = vpop.f32.mrb[54].mxu1  ;;  %2202 = vmatprep.subr.bf16.mxu1 %v1989_v20 }
 0x270   : > { %v1147_v36 = vadd.f32 %v1146_v55, %v6664_v43  ;;  %v1787_v44 = vmax.f32 %v1143_v48, 0.0  ;;  %v1788_v30 = vmax.f32 %v1494_v24, 0.0  ;;  %v1498_v31 = vadd.f32 %v1497_v27, %v6683_v60  ;;  %v1499_v32 = vpop.f32.mrb[55].mxu1  ;;  %2203 = vmatpush1.bf16.msra.mxu1 %v1988_v17 }
 0x271   : > { %v1790_v61 = vmax.f32 %v1145_v53, 0.0  ;;  %v1789_v35 = vmax.f32 %v1496_v26, 0.0  ;;  %v1500_v38 = vadd.f32 %v1499_v32, %v6688_v63 }
 0x272   : > { %v1791_v4 = vmax.f32 %v1147_v36, 0.0  ;;  %v1792_v28 = vmax.f32 %v1498_v31, 0.0  ;;  %v2072_v31 = vadd.s32 384, %v6719_v46 }
 0x273   : > { %v1990_v2 = vpack.c.bf16 %v1790_v61, %v1786_v59  ;;  %v1793_v49 = vmax.f32 %v1500_v38, 0.0 }
 0x274   : > { %v1991_v11 = vpack.c.bf16 %v1791_v4, %v1787_v44  ;;  %v1150_v13 = vpop.f32.mrb[56].mxu0  ;;  %v1992_v53 = vpack.c.bf16 %v1792_v28, %v1788_v30  ;;  %vm2077_vm9 = vcmp.ge.s32.totalorder %v2072_v31, %v6734_v7  ;;  %vm2083_vm10 = vcmp.lt.s32.totalorder %v2072_v31, %v6736_v8 }
 0x275   : > { %v1151_v15 = vadd.f32 %v1150_v13, %v6661_v42  ;;  %v1152_v16 = vpop.f32.mrb[57].mxu0  ;;  %v1993_v57 = vpack.c.bf16 %v1793_v49, %v1789_v35  ;;  %v1503_v36 = vpop.f32.mrb[56].mxu1  ;;  %vm6924_vm11 = vmand %vm2077_vm9, %vm2083_vm10 }
 0x276   : > { %v1153_v18 = vadd.f32 %v1152_v16, %v6664_v43  ;;  %v1154_v19 = vpop.f32.mrb[58].mxu0  ;;  %2122 = vmatprep.subr.bf16.mxu0 %v1991_v11  ;;  %v1504_v59 = vadd.f32 %v1503_v36, %v6683_v60  ;;  %v1505_v61 = vpop.f32.mrb[57].mxu1  ;;  %vm4786_vm12 = vmpackc.low %vm6924_vm11, %vm6924_vm11 }
 0x277   : > { %v1155_v22 = vadd.f32 %v1154_v19, %v6661_v42  ;;  %v1156_v23 = vpop.f32.mrb[59].mxu0  ;;  %2123 = vmatpush1.bf16.msra.mxu0 %v1990_v2  ;;  %v1794_v3 = vmax.f32 %v1151_v15, 0.0  ;;  %v1506_v0 = vadd.f32 %v1505_v61, %v6688_v63  ;;  %v1507_v1 = vpop.f32.mrb[58].mxu1  ;;  %2204 = vmatprep.subr.bf16.mxu1 %v1993_v57 }
 0x278   : > { %v1157_v9 = vadd.f32 %v1156_v23, %v6664_v43  ;;  %v1795_v33 = vmax.f32 %v1153_v18, 0.0  ;;  %v1796_v5 = vmax.f32 %v1504_v59, 0.0  ;;  %v1508_v6 = vadd.f32 %v1507_v1, %v6683_v60  ;;  %v1509_v2 = vpop.f32.mrb[59].mxu1  ;;  %2205 = vmatpush1.bf16.msra.mxu1 %v1992_v53 }
 0x279   : > { %v1798_v29 = vmax.f32 %v1155_v22, 0.0  ;;  %v1797_v13 = vmax.f32 %v1506_v0, 0.0  ;;  %v1510_v14 = vadd.f32 %v1509_v2, %v6688_v63 }
 0x27a   : > { %v1799_v34 = vmax.f32 %v1157_v9, 0.0  ;;  %v1800_v16 = vmax.f32 %v1508_v6, 0.0 }
 0x27b   : > { %v1994_v40 = vpack.c.bf16 %v1798_v29, %v1794_v3  ;;  %v1801_v20 = vmax.f32 %v1510_v14, 0.0 }
 0x27c   : > { %v1995_v47 = vpack.c.bf16 %v1799_v34, %v1795_v33  ;;  %v1160_v48 = vpop.f32.mrb[60].mxu0  ;;  %v1996_v23 = vpack.c.bf16 %v1800_v16, %v1796_v5 }
 0x27d   : > { %v1161_v50 = vadd.f32 %v1160_v48, %v6661_v42  ;;  %v1162_v51 = vpop.f32.mrb[61].mxu0  ;;  %v1997_v9 = vpack.c.bf16 %v1801_v20, %v1797_v13  ;;  %v1513_v26 = vpop.f32.mrb[60].mxu1 }
 0x27e   : > { %v1163_v55 = vadd.f32 %v1162_v51, %v6664_v43  ;;  %v1164_v56 = vpop.f32.mrb[62].mxu0  ;;  %2124 = vmatprep.subr.bf16.mxu0 %v1995_v47  ;;  %v1514_v29 = vadd.f32 %v1513_v26, %v6683_v60  ;;  %v1515_v30 = vpop.f32.mrb[61].mxu1 }
 0x27f   : > { %v1165_v58 = vadd.f32 %v1164_v56, %v6661_v42  ;;  %v1166_v45 = vpop.f32.mrb[63].mxu0  ;;  %2125 = vmatpush1.bf16.msra.mxu0 %v1994_v40  ;;  %v1802_v44 = vmax.f32 %v1161_v50, 0.0  ;;  %v1516_v35 = vadd.f32 %v1515_v30, %v6688_v63  ;;  %v1517_v38 = vpop.f32.mrb[62].mxu1  ;;  %2206 = vmatprep.subr.bf16.mxu1 %v1997_v9 }
 0x280   : > { %v1167_v62 = vadd.f32 %v1166_v45, %v6664_v43  ;;  %v1803_v10 = vmax.f32 %v1163_v55, 0.0  ;;  %v1804_v28 = vmax.f32 %v1514_v29, 0.0  ;;  %v1518_v47 = vadd.f32 %v1517_v38, %v6683_v60  ;;  %v1519_v48 = vpop.f32.mrb[63].mxu1  ;;  %2207 = vmatpush1.bf16.msra.mxu1 %v1996_v23 }
 0x281   : > { %v1806_v4 = vmax.f32 %v1165_v58, 0.0  ;;  %v1805_v50 = vmax.f32 %v1516_v35, 0.0  ;;  %v1520_v51 = vadd.f32 %v1519_v48, %v6688_v63 }
 0x282   : > { %v1807_v11 = vmax.f32 %v1167_v62, 0.0  ;;  %v1808_v55 = vmax.f32 %v1518_v47, 0.0 }
 0x283   : > { %v1998_v15 = vpack.c.bf16 %v1806_v4, %v1802_v44  ;;  %v1809_v58 = vmax.f32 %v1520_v51, 0.0 }
 0x284   : > { %v1999_v17 = vpack.c.bf16 %v1807_v11, %v1803_v10  ;;  %v1170_v18 = vpop.f32.mrb[64].mxu0  ;;  %v2000_v61 = vpack.c.bf16 %v1808_v55, %v1804_v28 }
 0x285   : > { %v1171_v21 = vadd.f32 %v1170_v18, %v6661_v42  ;;  %v1172_v22 = vpop.f32.mrb[65].mxu0  ;;  %v2001_v1 = vpack.c.bf16 %v1809_v58, %v1805_v50  ;;  %v1523_v44 = vpop.f32.mrb[64].mxu1 }
 0x286   : > { %v1173_v24 = vadd.f32 %v1172_v22, %v6664_v43  ;;  %v1174_v25 = vpop.f32.mrb[66].mxu0  ;;  %2126 = vmatprep.subr.bf16.mxu0 %v1999_v17  ;;  %v1524_v6 = vadd.f32 %v1523_v44, %v6683_v60  ;;  %v1525_v2 = vpop.f32.mrb[65].mxu1 }
 0x287   : > { %v1175_v27 = vadd.f32 %v1174_v25, %v6661_v42  ;;  %v1176_v3 = vpop.f32.mrb[67].mxu0  ;;  %2127 = vmatpush1.bf16.msra.mxu0 %v1998_v15  ;;  %v1810_v32 = vmax.f32 %v1171_v21, 0.0  ;;  %v1526_v11 = vadd.f32 %v1525_v2, %v6688_v63  ;;  %v1527_v13 = vpop.f32.mrb[66].mxu1  ;;  %2208 = vmatprep.subr.bf16.mxu1 %v2001_v1 }
 0x288   : > { %v1811_v33 = vmax.f32 %v1173_v24, 0.0  ;;  %v1177_v34 = vadd.f32 %v1176_v3, %v6664_v43  ;;  %v1812_v16 = vmax.f32 %v1524_v6, 0.0  ;;  %v1528_v17 = vadd.f32 %v1527_v13, %v6683_v60  ;;  %v1529_v18 = vpop.f32.mrb[67].mxu1  ;;  %2209 = vmatpush1.bf16.msra.mxu1 %v2000_v61 }
 0x289   : > { %v1814_v40 = vmax.f32 %v1175_v27, 0.0  ;;  %v1813_v22 = vmax.f32 %v1526_v11, 0.0  ;;  %v1530_v23 = vadd.f32 %v1529_v18, %v6688_v63 }
 0x28a   : > { %v1815_v49 = vmax.f32 %v1177_v34, 0.0  ;;  %4785 = vmatmul.mubr.msk.bf16.vlgmr.msra.gmra.mrb[128].mxu0 %vm4784_vm8, %v6046_v12  ;;  %v1816_v25 = vmax.f32 %v1528_v17, 0.0 }
 0x28b   : > { %v2002_v53 = vpack.c.bf16 %v1814_v40, %v1810_v32  ;;  %4787 = vmatprep.mubr.msk.bf16.mxu0 %vm4786_vm12, %v6046_v12  ;;  %v1817_v27 = vmax.f32 %v1530_v23, 0.0  ;;  %4793 = vmatmul.mubr.msk.bf16.vlgmr.msra.gmra.mrb[128].mxu1 %vm4784_vm8, %v6046_v12 }
 0x28c   : > { %v2003_v57 = vpack.c.bf16 %v1815_v49, %v1811_v33  ;;  %v1180_v36 = vpop.f32.mrb[68].mxu0  ;;  %v2004_v30 = vpack.c.bf16 %v1816_v25, %v1812_v16  ;;  %4795 = vmatprep.mubr.msk.bf16.mxu1 %vm4786_vm12, %v6046_v12 }
 0x28d   : > { %v1181_v45 = vadd.f32 %v1180_v36, %v6661_v42  ;;  %v1182_v59 = vpop.f32.mrb[69].mxu0  ;;  %v2005_v33 = vpack.c.bf16 %v1817_v27, %v1813_v22  ;;  %v1533_v34 = vpop.f32.mrb[68].mxu1 }
 0x28e   : > { %v1183_v62 = vadd.f32 %v1182_v59, %v6664_v43  ;;  %v1184_v0 = vpop.f32.mrb[70].mxu0  ;;  %2137 = vmatprep.subr.bf16.mxu0 %v2003_v57  ;;  %v1534_v38 = vadd.f32 %v1533_v34, %v6683_v60  ;;  %v1535_v40 = vpop.f32.mrb[69].mxu1 }
 0x28f   : > { %v1185_v4 = vadd.f32 %v1184_v0, %v6661_v42  ;;  %v1186_v5 = vpop.f32.mrb[71].mxu0  ;;  %2138 = vmatpush1.bf16.msra.mxu0 %v2002_v53  ;;  %v1818_v14 = vmax.f32 %v1181_v45, 0.0  ;;  %v1536_v47 = vadd.f32 %v1535_v40, %v6688_v63  ;;  %v1537_v48 = vpop.f32.mrb[70].mxu1  ;;  %2219 = vmatprep.subr.bf16.mxu1 %v2005_v33 }
 0x290   : > { %v1187_v10 = vadd.f32 %v1186_v5, %v6664_v43  ;;  %v1819_v20 = vmax.f32 %v1183_v62, 0.0  ;;  %v1820_v51 = vmax.f32 %v1534_v38, 0.0  ;;  %v1538_v53 = vadd.f32 %v1537_v48, %v6683_v60  ;;  %v1539_v55 = vpop.f32.mrb[71].mxu1  ;;  %2220 = vmatpush1.bf16.msra.mxu1 %v2004_v30 }
 0x291   : > { %v1822_v15 = vmax.f32 %v1185_v4, 0.0  ;;  %v1821_v36 = vmax.f32 %v1536_v47, 0.0  ;;  %v1540_v58 = vadd.f32 %v1539_v55, %v6688_v63 }
 0x292   : > { %v1823_v21 = vmax.f32 %v1187_v10, 0.0  ;;  %v1824_v59 = vmax.f32 %v1538_v53, 0.0 }
 0x293   : > { %v2006_v24 = vpack.c.bf16 %v1822_v15, %v1818_v14  ;;  %v1825_v0 = vmax.f32 %v1540_v58, 0.0 }
 0x294   : > { %v2007_v9 = vpack.c.bf16 %v1823_v21, %v1819_v20  ;;  %v1190_v26 = vpop.f32.mrb[72].mxu0  ;;  %v2008_v4 = vpack.c.bf16 %v1824_v59, %v1820_v51 }
 0x295   : > { %v1191_v3 = vadd.f32 %v1190_v26, %v6661_v42  ;;  %v1192_v29 = vpop.f32.mrb[73].mxu0  ;;  %v2009_v2 = vpack.c.bf16 %v1825_v0, %v1821_v36  ;;  %v1543_v10 = vpop.f32.mrb[72].mxu1 }
 0x296   : > { %v1193_v31 = vadd.f32 %v1192_v29, %v6664_v43  ;;  %v1194_v32 = vpop.f32.mrb[74].mxu0  ;;  %2139 = vmatprep.subr.bf16.mxu0 %v2007_v9  ;;  %v1544_v14 = vadd.f32 %v1543_v10, %v6683_v60  ;;  %v1545_v15 = vpop.f32.mrb[73].mxu1 }
 0x297   : > { %v1195_v19 = vadd.f32 %v1194_v32, %v6661_v42  ;;  %v1196_v35 = vpop.f32.mrb[75].mxu0  ;;  %2140 = vmatpush1.bf16.msra.mxu0 %v2006_v24  ;;  %v1826_v49 = vmax.f32 %v1191_v3, 0.0  ;;  %v1546_v17 = vadd.f32 %v1545_v15, %v6688_v63  ;;  %v1547_v18 = vpop.f32.mrb[74].mxu1  ;;  %2221 = vmatprep.subr.bf16.mxu1 %v2009_v2 }
 0x298   : > { %v1197_v28 = vadd.f32 %v1196_v35, %v6664_v43  ;;  %v1827_v56 = vmax.f32 %v1193_v31, 0.0  ;;  %v1828_v22 = vmax.f32 %v1544_v14, 0.0  ;;  %v1548_v23 = vadd.f32 %v1547_v18, %v6683_v60  ;;  %v1549_v24 = vpop.f32.mrb[75].mxu1  ;;  %2222 = vmatpush1.bf16.msra.mxu1 %v2008_v4 }
 0x299   : > { %v1830_v50 = vmax.f32 %v1195_v19, 0.0  ;;  %v1829_v26 = vmax.f32 %v1546_v17, 0.0  ;;  %v1550_v27 = vadd.f32 %v1549_v24, %v6688_v63 }
 0x29a   : > { %v1831_v57 = vmax.f32 %v1197_v28, 0.0  ;;  %v1832_v29 = vmax.f32 %v1548_v23, 0.0 }
 0x29b   : > { %v2010_v45 = vpack.c.bf16 %v1830_v50, %v1826_v49  ;;  %v1833_v32 = vmax.f32 %v1550_v27, 0.0 }
 0x29c   : > { %v2011_v61 = vpack.c.bf16 %v1831_v57, %v1827_v56  ;;  %v1200_v62 = vpop.f32.mrb[76].mxu0  ;;  %v2012_v19 = vpack.c.bf16 %v1832_v29, %v1828_v22 }
 0x29d   : > { %v1201_v1 = vadd.f32 %v1200_v62, %v6661_v42  ;;  %v1202_v44 = vpop.f32.mrb[77].mxu0  ;;  %v2013_v40 = vpack.c.bf16 %v1833_v32, %v1829_v26  ;;  %v1553_v28 = vpop.f32.mrb[76].mxu1 }
 0x29e   : > { %v1203_v5 = vadd.f32 %v1202_v44, %v6664_v43  ;;  %v1204_v6 = vpop.f32.mrb[78].mxu0  ;;  %2141 = vmatprep.subr.bf16.mxu0 %v2011_v61  ;;  %v1554_v49 = vadd.f32 %v1553_v28, %v6683_v60  ;;  %v1555_v50 = vpop.f32.mrb[77].mxu1 }
 0x29f   : > { %v1205_v11 = vadd.f32 %v1204_v6, %v6661_v42  ;;  %v1206_v13 = vpop.f32.mrb[79].mxu0  ;;  %2142 = vmatpush1.bf16.msra.mxu0 %v2010_v45  ;;  %v1834_v20 = vmax.f32 %v1201_v1, 0.0  ;;  %v1556_v53 = vadd.f32 %v1555_v50, %v6688_v63  ;;  %v1557_v55 = vpop.f32.mrb[78].mxu1  ;;  %2223 = vmatprep.subr.bf16.mxu1 %v2013_v40 }
 0x2a0   : > { %v1207_v16 = vadd.f32 %v1206_v13, %v6664_v43  ;;  %v1835_v25 = vmax.f32 %v1203_v5, 0.0  ;;  %v1836_v36 = vmax.f32 %v1554_v49, 0.0  ;;  %v1558_v58 = vadd.f32 %v1557_v55, %v6683_v60  ;;  %v1559_v45 = vpop.f32.mrb[79].mxu1  ;;  %2224 = vmatpush1.bf16.msra.mxu1 %v2012_v19 }
 0x2a1   : > { %v1838_v21 = vmax.f32 %v1205_v11, 0.0  ;;  %v1837_v62 = vmax.f32 %v1556_v53, 0.0  ;;  %v1560_v0 = vadd.f32 %v1559_v45, %v6688_v63 }
 0x2a2   : > { %v1839_v9 = vmax.f32 %v1207_v16, 0.0  ;;  %v1840_v44 = vmax.f32 %v1558_v58, 0.0 }
 0x2a3   : > { %v2014_v3 = vpack.c.bf16 %v1838_v21, %v1834_v20  ;;  %v1841_v6 = vmax.f32 %v1560_v0, 0.0 }
 0x2a4   : > { %v2015_v30 = vpack.c.bf16 %v1839_v9, %v1835_v25  ;;  %v1210_v31 = vpop.f32.mrb[80].mxu0  ;;  %v2016_v11 = vpack.c.bf16 %v1840_v44, %v1836_v36 }
 0x2a5   : > { %v1211_v33 = vadd.f32 %v1210_v31, %v6661_v42  ;;  %v1212_v34 = vpop.f32.mrb[81].mxu0  ;;  %v2017_v15 = vpack.c.bf16 %v1841_v6, %v1837_v62  ;;  %v1563_v16 = vpop.f32.mrb[80].mxu1 }
 0x2a6   : > { %v1213_v35 = vadd.f32 %v1212_v34, %v6664_v43  ;;  %v1214_v38 = vpop.f32.mrb[82].mxu0  ;;  %2143 = vmatprep.subr.bf16.mxu0 %v2015_v30  ;;  %v1564_v20 = vadd.f32 %v1563_v16, %v6683_v60  ;;  %v1565_v21 = vpop.f32.mrb[81].mxu1 }
 0x2a7   : > { %v1215_v47 = vadd.f32 %v1214_v38, %v6661_v42  ;;  %v1216_v48 = vpop.f32.mrb[83].mxu0  ;;  %2144 = vmatpush1.bf16.msra.mxu0 %v2014_v3  ;;  %v1842_v56 = vmax.f32 %v1211_v33, 0.0  ;;  %v1566_v23 = vadd.f32 %v1565_v21, %v6688_v63  ;;  %v1567_v24 = vpop.f32.mrb[82].mxu1  ;;  %2225 = vmatprep.subr.bf16.mxu1 %v2017_v15 }
 0x2a8   : > { %v1217_v51 = vadd.f32 %v1216_v48, %v6664_v43  ;;  %v1843_v59 = vmax.f32 %v1213_v35, 0.0  ;;  %v1844_v26 = vmax.f32 %v1564_v20, 0.0  ;;  %v1568_v27 = vadd.f32 %v1567_v24, %v6683_v60  ;;  %v1569_v3 = vpop.f32.mrb[83].mxu1  ;;  %2226 = vmatpush1.bf16.msra.mxu1 %v2016_v11 }
 0x2a9   : > { %v1846_v57 = vmax.f32 %v1215_v47, 0.0  ;;  %v1845_v31 = vmax.f32 %v1566_v23, 0.0  ;;  %v1570_v32 = vadd.f32 %v1569_v3, %v6688_v63 }
 0x2aa   : > { %v1847_v61 = vmax.f32 %v1217_v51, 0.0  ;;  %v1848_v34 = vmax.f32 %v1568_v27, 0.0 }
 0x2ab   : > { %v2018_v1 = vpack.c.bf16 %v1846_v57, %v1842_v56  ;;  %v1849_v38 = vmax.f32 %v1570_v32, 0.0 }
 0x2ac   : > { %v2019_v4 = vpack.c.bf16 %v1847_v61, %v1843_v59  ;;  %v1220_v5 = vpop.f32.mrb[84].mxu0  ;;  %v2020_v47 = vpack.c.bf16 %v1848_v34, %v1844_v26 }
 0x2ad   : > { %v1221_v2 = vadd.f32 %v1220_v5, %v6661_v42  ;;  %v1222_v10 = vpop.f32.mrb[85].mxu0  ;;  %v2021_v50 = vpack.c.bf16 %v1849_v38, %v1845_v31  ;;  %v1573_v51 = vpop.f32.mrb[84].mxu1 }
 0x2ae   : > { %v1223_v13 = vadd.f32 %v1222_v10, %v6664_v43  ;;  %v1224_v14 = vpop.f32.mrb[86].mxu0  ;;  %2145 = vmatprep.subr.bf16.mxu0 %v2019_v4  ;;  %v1574_v56 = vadd.f32 %v1573_v51, %v6683_v60  ;;  %v1575_v57 = vpop.f32.mrb[85].mxu1 }
 0x2af   : > { %v1225_v17 = vadd.f32 %v1224_v14, %v6661_v42  ;;  %v1226_v18 = vpop.f32.mrb[87].mxu0  ;;  %2146 = vmatpush1.bf16.msra.mxu0 %v2018_v1  ;;  %v1850_v25 = vmax.f32 %v1221_v2, 0.0  ;;  %v1576_v58 = vadd.f32 %v1575_v57, %v6688_v63  ;;  %v1577_v45 = vpop.f32.mrb[86].mxu1  ;;  %2227 = vmatprep.subr.bf16.mxu1 %v2021_v50 }
 0x2b0   : > { %v1227_v22 = vadd.f32 %v1226_v18, %v6664_v43  ;;  %v1851_v29 = vmax.f32 %v1223_v13, 0.0  ;;  %v1852_v62 = vmax.f32 %v1574_v56, 0.0  ;;  %v1578_v0 = vadd.f32 %v1577_v45, %v6683_v60  ;;  %v1579_v1 = vpop.f32.mrb[87].mxu1  ;;  %2228 = vmatpush1.bf16.msra.mxu1 %v2020_v47 }
 0x2b1   : > { %v1854_v9 = vmax.f32 %v1225_v17, 0.0  ;;  %v1853_v5 = vmax.f32 %v1576_v58, 0.0  ;;  %v1580_v6 = vadd.f32 %v1579_v1, %v6688_v63 }
 0x2b2   : > { %v1855_v30 = vmax.f32 %v1227_v22, 0.0  ;;  %v1856_v10 = vmax.f32 %v1578_v0, 0.0 }
 0x2b3   : > { %v2022_v33 = vpack.c.bf16 %v1854_v9, %v1850_v25  ;;  %v1857_v14 = vmax.f32 %v1580_v6, 0.0 }
 0x2b4   : > { %v2023_v19 = vpack.c.bf16 %v1855_v30, %v1851_v29  ;;  %v1230_v35 = vpop.f32.mrb[88].mxu0  ;;  %v2024_v17 = vpack.c.bf16 %v1856_v10, %v1852_v62 }
 0x2b5   : > { %v1231_v40 = vadd.f32 %v1230_v35, %v6661_v42  ;;  %v1232_v28 = vpop.f32.mrb[89].mxu0  ;;  %v2025_v21 = vpack.c.bf16 %v1857_v14, %v1853_v5  ;;  %v1583_v22 = vpop.f32.mrb[88].mxu1 }
 0x2b6   : > { %v1233_v48 = vadd.f32 %v1232_v28, %v6664_v43  ;;  %v1234_v49 = vpop.f32.mrb[90].mxu0  ;;  %2147 = vmatprep.subr.bf16.mxu0 %v2023_v19  ;;  %v1584_v25 = vadd.f32 %v1583_v22, %v6683_v60  ;;  %v1585_v9 = vpop.f32.mrb[89].mxu1 }
 0x2b7   : > { %v1235_v53 = vadd.f32 %v1234_v49, %v6661_v42  ;;  %v1236_v55 = vpop.f32.mrb[91].mxu0  ;;  %2148 = vmatpush1.bf16.msra.mxu0 %v2022_v33  ;;  %v1858_v59 = vmax.f32 %v1231_v40, 0.0  ;;  %v1586_v27 = vadd.f32 %v1585_v9, %v6688_v63  ;;  %v1587_v3 = vpop.f32.mrb[90].mxu1  ;;  %2229 = vmatprep.subr.bf16.mxu1 %v2025_v21 }
 0x2b8   : > { %v1237_v36 = vadd.f32 %v1236_v55, %v6664_v43  ;;  %v1859_v44 = vmax.f32 %v1233_v48, 0.0  ;;  %v1860_v31 = vmax.f32 %v1584_v25, 0.0  ;;  %v1588_v32 = vadd.f32 %v1587_v3, %v6683_v60  ;;  %v1589_v33 = vpop.f32.mrb[91].mxu1  ;;  %2230 = vmatpush1.bf16.msra.mxu1 %v2024_v17 }
 0x2b9   : > { %v1862_v61 = vmax.f32 %v1235_v53, 0.0  ;;  %v1861_v35 = vmax.f32 %v1586_v27, 0.0  ;;  %v1590_v38 = vadd.f32 %v1589_v33, %v6688_v63 }
 0x2ba   : > { %v1863_v4 = vmax.f32 %v1237_v36, 0.0  ;;  %v1864_v28 = vmax.f32 %v1588_v32, 0.0 }
 0x2bb   : > { %v2026_v2 = vpack.c.bf16 %v1862_v61, %v1858_v59  ;;  %v1865_v49 = vmax.f32 %v1590_v38, 0.0 }
 0x2bc   : > { %v2027_v11 = vpack.c.bf16 %v1863_v4, %v1859_v44  ;;  %v1240_v13 = vpop.f32.mrb[92].mxu0  ;;  %v2028_v53 = vpack.c.bf16 %v1864_v28, %v1860_v31 }
 0x2bd   : > { %v1241_v15 = vadd.f32 %v1240_v13, %v6661_v42  ;;  %v1242_v16 = vpop.f32.mrb[93].mxu0  ;;  %v2029_v57 = vpack.c.bf16 %v1865_v49, %v1861_v35  ;;  %v1593_v36 = vpop.f32.mrb[92].mxu1 }
 0x2be   : > { %v1243_v18 = vadd.f32 %v1242_v16, %v6664_v43  ;;  %v1244_v20 = vpop.f32.mrb[94].mxu0  ;;  %2149 = vmatprep.subr.bf16.mxu0 %v2027_v11  ;;  %v1594_v59 = vadd.f32 %v1593_v36, %v6683_v60  ;;  %v1595_v61 = vpop.f32.mrb[93].mxu1 }
 0x2bf   : > { %v1245_v23 = vadd.f32 %v1244_v20, %v6661_v42  ;;  %v1246_v24 = vpop.f32.mrb[95].mxu0  ;;  %2150 = vmatpush1.bf16.msra.mxu0 %v2026_v2  ;;  %v1866_v29 = vmax.f32 %v1241_v15, 0.0  ;;  %v1596_v0 = vadd.f32 %v1595_v61, %v6688_v63  ;;  %v1597_v1 = vpop.f32.mrb[94].mxu1  ;;  %2231 = vmatprep.subr.bf16.mxu1 %v2029_v57 }
 0x2c0   : > { %v1247_v26 = vadd.f32 %v1246_v24, %v6664_v43  ;;  %v1867_v34 = vmax.f32 %v1243_v18, 0.0  ;;  %v1868_v5 = vmax.f32 %v1594_v59, 0.0  ;;  %v1598_v6 = vadd.f32 %v1597_v1, %v6683_v60  ;;  %v1599_v2 = vpop.f32.mrb[95].mxu1  ;;  %2232 = vmatpush1.bf16.msra.mxu1 %v2028_v53 }
 0x2c1   : > { %v1870_v30 = vmax.f32 %v1245_v23, 0.0  ;;  %v1869_v13 = vmax.f32 %v1596_v0, 0.0  ;;  %v1600_v14 = vadd.f32 %v1599_v2, %v6688_v63 }
 0x2c2   : > { %v1871_v19 = vmax.f32 %v1247_v26, 0.0  ;;  %v1872_v16 = vmax.f32 %v1598_v6, 0.0 }
 0x2c3   : > { %v2030_v40 = vpack.c.bf16 %v1870_v30, %v1866_v29  ;;  %v1873_v20 = vmax.f32 %v1600_v14, 0.0 }
 0x2c4   : > { %v2031_v47 = vpack.c.bf16 %v1871_v19, %v1867_v34  ;;  %v1250_v48 = vpop.f32.mrb[96].mxu0  ;;  %v2032_v23 = vpack.c.bf16 %v1872_v16, %v1868_v5 }
 0x2c5   : > { %v1251_v50 = vadd.f32 %v1250_v48, %v6661_v42  ;;  %v1252_v51 = vpop.f32.mrb[97].mxu0  ;;  %v2033_v9 = vpack.c.bf16 %v1873_v20, %v1869_v13  ;;  %v1603_v26 = vpop.f32.mrb[96].mxu1 }
 0x2c6   : > { %v1253_v55 = vadd.f32 %v1252_v51, %v6664_v43  ;;  %v1254_v56 = vpop.f32.mrb[98].mxu0  ;;  %2151 = vmatprep.subr.bf16.mxu0 %v2031_v47  ;;  %v1604_v29 = vadd.f32 %v1603_v26, %v6683_v60  ;;  %v1605_v30 = vpop.f32.mrb[97].mxu1 }
 0x2c7   : > { %v1255_v58 = vadd.f32 %v1254_v56, %v6661_v42  ;;  %v1256_v45 = vpop.f32.mrb[99].mxu0  ;;  %2152 = vmatpush1.bf16.msra.mxu0 %v2030_v40  ;;  %v1874_v44 = vmax.f32 %v1251_v50, 0.0  ;;  %v1606_v32 = vadd.f32 %v1605_v30, %v6688_v63  ;;  %v1607_v33 = vpop.f32.mrb[98].mxu1  ;;  %2233 = vmatprep.subr.bf16.mxu1 %v2033_v9 }
 0x2c8   : > { %v1257_v62 = vadd.f32 %v1256_v45, %v6664_v43  ;;  %v1875_v10 = vmax.f32 %v1253_v55, 0.0  ;;  %v1876_v35 = vmax.f32 %v1604_v29, 0.0  ;;  %v1608_v38 = vadd.f32 %v1607_v33, %v6683_v60  ;;  %v1609_v40 = vpop.f32.mrb[99].mxu1  ;;  %2234 = vmatpush1.bf16.msra.mxu1 %v2032_v23 }
 0x2c9   : > { %v1878_v4 = vmax.f32 %v1255_v58, 0.0  ;;  %v1877_v48 = vmax.f32 %v1606_v32, 0.0  ;;  %v1610_v49 = vadd.f32 %v1609_v40, %v6688_v63 }
 0x2ca   : > { %v1879_v11 = vmax.f32 %v1257_v62, 0.0  ;;  %v1880_v51 = vmax.f32 %v1608_v38, 0.0 }
 0x2cb   : > { %v2034_v15 = vpack.c.bf16 %v1878_v4, %v1874_v44  ;;  %v1881_v56 = vmax.f32 %v1610_v49, 0.0 }
 0x2cc   : > { %v2035_v17 = vpack.c.bf16 %v1879_v11, %v1875_v10  ;;  %v1260_v18 = vpop.f32.mrb[100].mxu0  ;;  %v2036_v58 = vpack.c.bf16 %v1880_v51, %v1876_v35 }
 0x2cd   : > { %v1261_v21 = vadd.f32 %v1260_v18, %v6661_v42  ;;  %v1262_v22 = vpop.f32.mrb[101].mxu0  ;;  %v2037_v61 = vpack.c.bf16 %v1881_v56, %v1877_v48  ;;  %v1613_v62 = vpop.f32.mrb[100].mxu1 }
 0x2ce   : > { %v1263_v24 = vadd.f32 %v1262_v22, %v6664_v43  ;;  %v1264_v25 = vpop.f32.mrb[102].mxu0  ;;  %2153 = vmatprep.subr.bf16.mxu0 %v2035_v17  ;;  %v1614_v44 = vadd.f32 %v1613_v62, %v6683_v60  ;;  %v1615_v4 = vpop.f32.mrb[101].mxu1 }
 0x2cf   : > { %v1265_v27 = vadd.f32 %v1264_v25, %v6661_v42  ;;  %v1266_v3 = vpop.f32.mrb[103].mxu0  ;;  %2154 = vmatpush1.bf16.msra.mxu0 %v2034_v15  ;;  %v1882_v34 = vmax.f32 %v1261_v21, 0.0  ;;  %v1616_v6 = vadd.f32 %v1615_v4, %v6688_v63  ;;  %v1617_v2 = vpop.f32.mrb[102].mxu1  ;;  %2235 = vmatprep.subr.bf16.mxu1 %v2037_v61 }
 0x2d0   : > { %v1267_v31 = vadd.f32 %v1266_v3, %v6664_v43  ;;  %v1883_v28 = vmax.f32 %v1263_v24, 0.0  ;;  %v1884_v13 = vmax.f32 %v1614_v44, 0.0  ;;  %v1618_v14 = vadd.f32 %v1617_v2, %v6683_v60  ;;  %v1619_v15 = vpop.f32.mrb[103].mxu1  ;;  %2236 = vmatpush1.bf16.msra.mxu1 %v2036_v58 }
 0x2d1   : > { %v1886_v19 = vmax.f32 %v1265_v27, 0.0  ;;  %v1885_v18 = vmax.f32 %v1616_v6, 0.0  ;;  %v1620_v20 = vadd.f32 %v1619_v15, %v6688_v63 }
 0x2d2   : > { %v1887_v47 = vmax.f32 %v1267_v31, 0.0  ;;  %v1888_v22 = vmax.f32 %v1618_v14, 0.0 }
 0x2d3   : > { %v2038_v50 = vpack.c.bf16 %v1886_v19, %v1882_v34  ;;  %v1889_v25 = vmax.f32 %v1620_v20, 0.0 }
 0x2d4   : > { %v2039_v53 = vpack.c.bf16 %v1887_v47, %v1883_v28  ;;  %v1270_v55 = vpop.f32.mrb[104].mxu0  ;;  %v2040_v27 = vpack.c.bf16 %v1888_v22, %v1884_v13 }
 0x2d5   : > { %v1271_v57 = vadd.f32 %v1270_v55, %v6661_v42  ;;  %v1272_v36 = vpop.f32.mrb[105].mxu0  ;;  %v2041_v30 = vpack.c.bf16 %v1889_v25, %v1885_v18  ;;  %v1623_v31 = vpop.f32.mrb[104].mxu1 }
 0x2d6   : > { %v1273_v45 = vadd.f32 %v1272_v36, %v6664_v43  ;;  %v1274_v59 = vpop.f32.mrb[106].mxu0  ;;  %2155 = vmatprep.subr.bf16.mxu0 %v2039_v53  ;;  %v1624_v34 = vadd.f32 %v1623_v31, %v6683_v60  ;;  %v1625_v19 = vpop.f32.mrb[105].mxu1 }
 0x2d7   : > { %v1275_v0 = vadd.f32 %v1274_v59, %v6661_v42  ;;  %v1276_v1 = vpop.f32.mrb[107].mxu0  ;;  %2156 = vmatpush1.bf16.msra.mxu0 %v2038_v50  ;;  %v1890_v10 = vmax.f32 %v1271_v57, 0.0  ;;  %v1626_v38 = vadd.f32 %v1625_v19, %v6688_v63  ;;  %v1627_v40 = vpop.f32.mrb[106].mxu1  ;;  %2237 = vmatprep.subr.bf16.mxu1 %v2041_v30 }
 0x2d8   : > { %v1277_v5 = vadd.f32 %v1276_v1, %v6664_v43  ;;  %v1891_v16 = vmax.f32 %v1273_v45, 0.0  ;;  %v1892_v48 = vmax.f32 %v1624_v34, 0.0  ;;  %v1628_v49 = vadd.f32 %v1627_v40, %v6683_v60  ;;  %v1629_v50 = vpop.f32.mrb[107].mxu1  ;;  %2238 = vmatpush1.bf16.msra.mxu1 %v2040_v27 }
 0x2d9   : > { %v1894_v11 = vmax.f32 %v1275_v0, 0.0  ;;  %v1893_v55 = vmax.f32 %v1626_v38, 0.0  ;;  %v1630_v56 = vadd.f32 %v1629_v50, %v6688_v63 }
 0x2da   : > { %v1895_v17 = vmax.f32 %v1277_v5, 0.0  ;;  %v1896_v36 = vmax.f32 %v1628_v49, 0.0 }
 0x2db   : > { %v2042_v21 = vpack.c.bf16 %v1894_v11, %v1890_v10  ;;  %v1897_v59 = vmax.f32 %v1630_v56, 0.0 }
 0x2dc   : > { %v2043_v23 = vpack.c.bf16 %v1895_v17, %v1891_v16  ;;  %v1280_v24 = vpop.f32.mrb[108].mxu0  ;;  %v2044_v0 = vpack.c.bf16 %v1896_v36, %v1892_v48 }
 0x2dd   : > { %v1281_v9 = vadd.f32 %v1280_v24, %v6661_v42  ;;  %v1282_v26 = vpop.f32.mrb[109].mxu0  ;;  %v2045_v4 = vpack.c.bf16 %v1897_v59, %v1893_v55  ;;  %v1633_v5 = vpop.f32.mrb[108].mxu1 }
 0x2de   : > { %v1283_v3 = vadd.f32 %v1282_v26, %v6664_v43  ;;  %v1284_v29 = vpop.f32.mrb[110].mxu0  ;;  %2157 = vmatprep.subr.bf16.mxu0 %v2043_v23  ;;  %v1634_v10 = vadd.f32 %v1633_v5, %v6683_v60  ;;  %v1635_v11 = vpop.f32.mrb[109].mxu1 }
 0x2df   : > { %v1285_v32 = vadd.f32 %v1284_v29, %v6661_v42  ;;  %v1286_v33 = vpop.f32.mrb[111].mxu0  ;;  %2158 = vmatpush1.bf16.msra.mxu0 %v2042_v21  ;;  %v1898_v28 = vmax.f32 %v1281_v9, 0.0  ;;  %v1636_v14 = vadd.f32 %v1635_v11, %v6688_v63  ;;  %v1637_v15 = vpop.f32.mrb[110].mxu1  ;;  %2239 = vmatprep.subr.bf16.mxu1 %v2045_v4 }
 0x2e0   : > { %v1287_v35 = vadd.f32 %v1286_v33, %v6664_v43  ;;  %v1899_v51 = vmax.f32 %v1283_v3, 0.0  ;;  %v1900_v18 = vmax.f32 %v1634_v10, 0.0  ;;  %v1638_v20 = vadd.f32 %v1637_v15, %v6683_v60  ;;  %v1639_v21 = vpop.f32.mrb[111].mxu1  ;;  %2240 = vmatpush1.bf16.msra.mxu1 %v2044_v0 }
 0x2e1   : > { %v1902_v47 = vmax.f32 %v1285_v32, 0.0  ;;  %v1901_v24 = vmax.f32 %v1636_v14, 0.0  ;;  %v1640_v25 = vadd.f32 %v1639_v21, %v6688_v63 }
 0x2e2   : > { %v1903_v53 = vmax.f32 %v1287_v35, 0.0  ;;  %v1904_v26 = vmax.f32 %v1638_v20, 0.0 }
 0x2e3   : > { %v2046_v57 = vpack.c.bf16 %v1902_v47, %v1898_v28  ;;  %v1905_v29 = vmax.f32 %v1640_v25, 0.0 }
 0x2e4   : > { %v2047_v58 = vpack.c.bf16 %v1903_v53, %v1899_v51  ;;  %v1290_v45 = vpop.f32.mrb[112].mxu0  ;;  %v2048_v32 = vpack.c.bf16 %v1904_v26, %v1900_v18 }
 0x2e5   : > { %v1291_v61 = vadd.f32 %v1290_v45, %v6661_v42  ;;  %v1292_v62 = vpop.f32.mrb[113].mxu0  ;;  %v2049_v19 = vpack.c.bf16 %v1905_v29, %v1901_v24  ;;  %v1643_v35 = vpop.f32.mrb[112].mxu1 }
 0x2e6   : > { %v1293_v1 = vadd.f32 %v1292_v62, %v6664_v43  ;;  %v1294_v44 = vpop.f32.mrb[114].mxu0  ;;  %2159 = vmatprep.subr.bf16.mxu0 %v2047_v58  ;;  %v1644_v28 = vadd.f32 %v1643_v35, %v6683_v60  ;;  %v1645_v47 = vpop.f32.mrb[113].mxu1 }
 0x2e7   : > { %v1295_v6 = vadd.f32 %v1294_v44, %v6661_v42  ;;  %v1296_v2 = vpop.f32.mrb[115].mxu0  ;;  %2160 = vmatpush1.bf16.msra.mxu0 %v2046_v57  ;;  %v1906_v16 = vmax.f32 %v1291_v61, 0.0  ;;  %v1646_v49 = vadd.f32 %v1645_v47, %v6688_v63  ;;  %v1647_v50 = vpop.f32.mrb[114].mxu1  ;;  %2241 = vmatprep.subr.bf16.mxu1 %v2049_v19 }
 0x2e8   : > { %v1297_v13 = vadd.f32 %v1296_v2, %v6664_v43  ;;  %v1907_v22 = vmax.f32 %v1293_v1, 0.0  ;;  %v1908_v55 = vmax.f32 %v1644_v28, 0.0  ;;  %v1648_v56 = vadd.f32 %v1647_v50, %v6683_v60  ;;  %v1649_v57 = vpop.f32.mrb[115].mxu1  ;;  %2242 = vmatpush1.bf16.msra.mxu1 %v2048_v32 }
 0x2e9   : > { %v1910_v17 = vmax.f32 %v1295_v6, 0.0  ;;  %v1909_v45 = vmax.f32 %v1646_v49, 0.0  ;;  %v1650_v59 = vadd.f32 %v1649_v57, %v6688_v63 }
 0x2ea   : > { %v1911_v23 = vmax.f32 %v1297_v13, 0.0  ;;  %v1912_v62 = vmax.f32 %v1648_v56, 0.0 }
 0x2eb   : > { %v2050_v9 = vpack.c.bf16 %v1910_v17, %v1906_v16  ;;  %v1913_v44 = vmax.f32 %v1650_v59, 0.0 }
 0x2ec   : > { %v2051_v27 = vpack.c.bf16 %v1911_v23, %v1907_v22  ;;  %v1300_v3 = vpop.f32.mrb[116].mxu0  ;;  %v2052_v6 = vpack.c.bf16 %v1912_v62, %v1908_v55 }
 0x2ed   : > { %v1301_v30 = vadd.f32 %v1300_v3, %v6661_v42  ;;  %v1302_v31 = vpop.f32.mrb[117].mxu0  ;;  %v2053_v11 = vpack.c.bf16 %v1913_v44, %v1909_v45  ;;  %v1653_v13 = vpop.f32.mrb[116].mxu1 }
 0x2ee   : > { %v1303_v33 = vadd.f32 %v1302_v31, %v6664_v43  ;;  %v1304_v34 = vpop.f32.mrb[118].mxu0  ;;  %2161 = vmatprep.subr.bf16.mxu0 %v2051_v27  ;;  %v1654_v16 = vadd.f32 %v1653_v13, %v6683_v60  ;;  %v1655_v17 = vpop.f32.mrb[117].mxu1 }
 0x2ef   : > { %v1305_v38 = vadd.f32 %v1304_v34, %v6661_v42  ;;  %v1306_v40 = vpop.f32.mrb[119].mxu0  ;;  %2162 = vmatpush1.bf16.msra.mxu0 %v2050_v9  ;;  %v1914_v51 = vmax.f32 %v1301_v30, 0.0  ;;  %v1656_v20 = vadd.f32 %v1655_v17, %v6688_v63  ;;  %v1657_v21 = vpop.f32.mrb[118].mxu1  ;;  %2243 = vmatprep.subr.bf16.mxu1 %v2053_v11  ;;  %v2071_v34 = vadd.s32 256, %v6719_v46 }
 0x2f0   : > { %v1307_v48 = vadd.f32 %v1306_v40, %v6664_v43  ;;  %v1915_v36 = vmax.f32 %v1303_v33, 0.0  ;;  %v1916_v24 = vmax.f32 %v1654_v16, 0.0  ;;  %v1658_v25 = vadd.f32 %v1657_v21, %v6683_v60  ;;  %v1659_v9 = vpop.f32.mrb[119].mxu1  ;;  %2244 = vmatpush1.bf16.msra.mxu1 %v2052_v6  ;;  %v5387_v6 = vld [vmem:[%s6440_s16 + $0x108] ss:$16 sps:$4 sm:$0xff]  }
 0x2f1   : > { %v1918_v53 = vmax.f32 %v1305_v38, 0.0  ;;  %v1917_v3 = vmax.f32 %v1656_v20, 0.0  ;;  %v1660_v29 = vadd.f32 %v1659_v9, %v6688_v63  ;;  %vm2076_vm13 = vcmp.ge.s32.totalorder %v2071_v34, %v6734_v7  ;;  %v5336_v7 = vld [vmem:[%s6440_s16] ss:$16 sps:$4 sm:$0xff]  }
 0x2f2   : > { %v1919_v58 = vmax.f32 %v1307_v48, 0.0  ;;  %v1920_v31 = vmax.f32 %v1658_v25, 0.0  ;;  %vm2082_vm14 = vcmp.lt.s32.totalorder %v2071_v34, %v6736_v8  ;;  %v5342_v9 = vld [vmem:[%s6440_s16 + $0x20] ss:$16 sps:$4 sm:$0xff]   ;;  %v5362_v34 = vld [vmem:[%s6440_s16 + $0x84] ss:$16 sps:$4 sm:$0xff]  }
 0x2f3   : > { %v2054_v61 = vpack.c.bf16 %v1918_v53, %v1914_v51  ;;  %v1921_v19 = vmax.f32 %v1660_v29, 0.0  ;;  %vm7076_vm15 = vmand %vm2076_vm13, %vm2082_vm14  ;;  %v5341_v29 = vld [vmem:[%s6440_s16 + $0xc] ss:$16 sps:$4 sm:$0xff]  }
 0x2f4   : > { %v2055_v0 = vpack.c.bf16 %v1919_v58, %v1915_v36  ;;  %v1310_v1 = vpop.f32.mrb[120].mxu0  ;;  %v2056_v40 = vpack.c.bf16 %v1920_v31, %v1916_v24  ;;  %vm4788_vm0 = vmpackc.low %vm7076_vm15, %vm7076_vm15  ;;  %v5339_v31 = vld [vmem:[%s6440_s16 + $0x8] ss:$16 sps:$4 sm:$0xff]  }
 0x2f5   : > { %v1311_v4 = vadd.f32 %v1310_v1, %v6661_v42  ;;  %v1312_v5 = vpop.f32.mrb[121].mxu0  ;;  %v2057_v48 = vpack.c.bf16 %v1921_v19, %v1917_v3  ;;  %v1663_v49 = vpop.f32.mrb[120].mxu1  ;;  %v5345_v19 = vld [vmem:[%s6440_s16 + $0x28] ss:$16 sps:$4 sm:$0xff]  }
 0x2f6   : > { %v1313_v2 = vadd.f32 %v1312_v5, %v6664_v43  ;;  %v1314_v10 = vpop.f32.mrb[122].mxu0  ;;  %2163 = vmatprep.subr.bf16.mxu0 %v2055_v0  ;;  %v1664_v53 = vadd.f32 %v1663_v49, %v6683_v60  ;;  %v1665_v55 = vpop.f32.mrb[121].mxu1  ;;  %v5357_v49 = vld [vmem:[%s6440_s16 + $0x68] ss:$16 sps:$4 sm:$0xff]  }
 0x2f7   : > { %v1315_v14 = vadd.f32 %v1314_v10, %v6661_v42  ;;  %v1316_v15 = vpop.f32.mrb[123].mxu0  ;;  %2164 = vmatpush1.bf16.msra.mxu0 %v2054_v61  ;;  %v1922_v22 = vmax.f32 %v1311_v4, 0.0  ;;  %v1666_v57 = vadd.f32 %v1665_v55, %v6688_v63  ;;  %v1667_v36 = vpop.f32.mrb[122].mxu1  ;;  %2245 = vmatprep.subr.bf16.mxu1 %v2057_v48  ;;  %v5338_v10 = vld [vmem:[%s6440_s16 + $0x4] ss:$16 sps:$4 sm:$0xff]  }
 0x2f8   : > { %v1317_v18 = vadd.f32 %v1316_v15, %v6664_v43  ;;  %v1923_v26 = vmax.f32 %v1313_v2, 0.0  ;;  %v1924_v59 = vmax.f32 %v1664_v53, 0.0  ;;  %v1669_v61 = vpop.f32.mrb[123].mxu1  ;;  %2246 = vmatpush1.bf16.msra.mxu1 %v2056_v40  ;;  %v5368_v40 = vld [vmem:[%s6440_s16 + $0xa4] ss:$16 sps:$4 sm:$0xff]  }
 0x2f9   : > { %v1926_v23 = vmax.f32 %v1315_v14, 0.0  ;;  %v1925_v1 = vmax.f32 %v1666_v57, 0.0  ;;  %v5374_v48 = vld [vmem:[%s6440_s16 + $0xc4] ss:$16 sps:$4 sm:$0xff]   ;;  %v5363_v55 = vld [vmem:[%s6440_s16 + $0x88] ss:$16 sps:$4 sm:$0xff]  }
 0x2fa   : > { %v1927_v27 = vmax.f32 %v1317_v18, 0.0  ;;  %v5344_v18 = vld [vmem:[%s6440_s16 + $0x24] ss:$16 sps:$4 sm:$0xff]   ;;  %v5378_v57 = vld [vmem:[%s6440_s16 + $0xe0] ss:$16 sps:$4 sm:$0xff]  }
 0x2fb   : > { %v2058_v30 = vpack.c.bf16 %v1926_v23, %v1922_v22  ;;  %v5380_v53 = vld [vmem:[%s6440_s16 + $0xe4] ss:$16 sps:$4 sm:$0xff]  }
 0x2fc   : > { %v2059_v32 = vpack.c.bf16 %v1927_v27, %v1923_v26  ;;  %v1320_v33 = vpop.f32.mrb[124].mxu0  ;;  %v5350_v26 = vld [vmem:[%s6440_s16 + $0x44] ss:$16 sps:$4 sm:$0xff]  }
 0x2fd   : > { %v1321_v35 = vadd.f32 %v1320_v33, %v6661_v42  ;;  %v1322_v38 = vpop.f32.mrb[125].mxu0  ;;  %v1673_v14 = vpop.f32.mrb[124].mxu1  ;;  %v5354_v33 = vld [vmem:[%s6440_s16 + $0x60] ss:$16 sps:$4 sm:$0xff]  }
 0x2fe   : > { %v1323_v28 = vadd.f32 %v1322_v38, %v6664_v43  ;;  %v1324_v47 = vpop.f32.mrb[126].mxu0  ;;  %2165 = vmatprep.subr.bf16.mxu0 %v2059_v32  ;;  %v1674_v8 = vadd.f32 %v1673_v14, %v6683_v60  ;;  %v1675_v15 = vpop.f32.mrb[125].mxu1  ;;  %v5347_v32 = vld [vmem:[%s6440_s16 + $0x2c] ss:$16 sps:$4 sm:$0xff]   ;;  %v5360_v38 = vld [vmem:[%s6440_s16 + $0x80] ss:$16 sps:$4 sm:$0xff]  }
 0x2ff   : > { %v1325_v50 = vadd.f32 %v1324_v47, %v6661_v42  ;;  %v1326_v51 = vpop.f32.mrb[127].mxu0  ;;  %2166 = vmatpush1.bf16.msra.mxu0 %v2058_v30  ;;  %v1930_v58 = vmax.f32 %v1321_v35, 0.0  ;;  %v1668_v42 = vadd.f32 %v1667_v36, %v6683_v60  ;;  %v1676_v16 = vadd.f32 %v1675_v15, %v6688_v63  ;;  %v1677_v17 = vpop.f32.mrb[126].mxu1  ;;  %v5348_v30 = vld [vmem:[%s6440_s16 + $0x40] ss:$16 sps:$4 sm:$0xff]  }
 0x300   : > { %v1327_v56 = vadd.f32 %v1326_v51, %v6664_v43  ;;  %v1931_v62 = vmax.f32 %v1323_v28, 0.0  ;;  %v1670_v43 = vadd.f32 %v1669_v61, %v6688_v63  ;;  %v1932_v20 = vmax.f32 %v1674_v8, 0.0  ;;  %v1679_v22 = vpop.f32.mrb[127].mxu1  ;;  %v5353_v35 = vld [vmem:[%s6440_s16 + $0x4c] ss:$16 sps:$4 sm:$0xff]  }
 0x301   : > { %v1934_v45 = vmax.f32 %v1325_v50, 0.0  ;;  %v1928_v4 = vmax.f32 %v1668_v42, 0.0  ;;  %v1678_v21 = vadd.f32 %v1677_v17, %v6683_v60  ;;  %v1933_v23 = vmax.f32 %v1676_v16, 0.0  ;;  %v5351_v28 = vld [vmem:[%s6440_s16 + $0x48] ss:$16 sps:$4 sm:$0xff]  }
 0x302   : > { %v1935_v0 = vmax.f32 %v1327_v56, 0.0  ;;  %v1929_v2 = vmax.f32 %v1670_v43, 0.0  ;;  %v1680_v24 = vadd.f32 %v1679_v22, %v6688_v63  ;;  %v5356_v63 = vld [vmem:[%s6440_s16 + $0x64] ss:$16 sps:$4 sm:$0xff]   ;;  %v5366_v47 = vld [vmem:[%s6440_s16 + $0xa0] ss:$16 sps:$4 sm:$0xff]  }
 0x303   : > { %v2062_v44 = vpack.c.bf16 %v1934_v45, %v1930_v58  ;;  %v2060_v11 = vpack.c.bf16 %v1928_v4, %v1924_v59  ;;  %v1936_v25 = vmax.f32 %v1678_v21, 0.0  ;;  %v5365_v50 = vld [vmem:[%s6440_s16 + $0x8c] ss:$16 sps:$4 sm:$0xff]   ;;  %v5372_v51 = vld [vmem:[%s6440_s16 + $0xc0] ss:$16 sps:$4 sm:$0xff]  }
 0x304   : > { %v2063_v5 = vpack.c.bf16 %v1935_v0, %v1931_v62  ;;  %v2061_v13 = vpack.c.bf16 %v1929_v2, %v1925_v1  ;;  %v1937_v60 = vmax.f32 %v1680_v24, 0.0  ;;  %v5371_v56 = vld [vmem:[%s6440_s16 + $0xac] ss:$16 sps:$4 sm:$0xff]   ;;  %v5386_v36 = vld [vmem:[%s6440_s16 + $0x104] ss:$16 sps:$4 sm:$0xff]  }
 0x305   : > { %v2064_v27 = vpack.c.bf16 %v1936_v25, %v1932_v20  ;;  %v5369_v58 = vld [vmem:[%s6440_s16 + $0xa8] ss:$16 sps:$4 sm:$0xff]   ;;  %v5377_v45 = vld [vmem:[%s6440_s16 + $0xcc] ss:$16 sps:$4 sm:$0xff]   ;;  %v5384_v59 = vld [vmem:[%s6440_s16 + $0x100] ss:$16 sps:$4 sm:$0xff]  }
 0x306   : > { %2167 = vmatprep.subr.bf16.mxu0 %v2063_v5  ;;  %2247 = vmatprep.subr.bf16.mxu1 %v2061_v13  ;;  %v2065_v3 = vpack.c.bf16 %v1937_v60, %v1933_v23  ;;  %v5392_v42 = vld [vmem:[%s6440_s16 + $0x124] ss:$16 sps:$4 sm:$0xff]   ;;  %v5375_v61 = vld [vmem:[%s6440_s16 + $0xc8] ss:$16 sps:$4 sm:$0xff]   ;;  %v5383_v62 = vld [vmem:[%s6440_s16 + $0xec] ss:$16 sps:$4 sm:$0xff]  }
 0x307   : > { %2168 = vmatpush1.bf16.msra.mxu0 %v2062_v44  ;;  %2248 = vmatpush1.bf16.msra.mxu1 %v2060_v11  ;;  %v5390_v0 = vld [vmem:[%s6440_s16 + $0x120] ss:$16 sps:$4 sm:$0xff]   ;;  %v5398_v1 = vld [vmem:[%s6440_s16 + $0x144] ss:$16 sps:$4 sm:$0xff]   ;;  %v5381_v43 = vld [vmem:[%s6440_s16 + $0xe8] ss:$16 sps:$4 sm:$0xff]  }
 0x308   : > { %3033 = vmatprep.subr.bf16.mxu0 %v5338_v10  ;;  %2249 = vmatprep.subr.bf16.mxu1 %v2065_v3  ;;  %v5389_v44 = vld [vmem:[%s6440_s16 + $0x10c] ss:$16 sps:$4 sm:$0xff]   ;;  %v5396_v4 = vld [vmem:[%s6440_s16 + $0x140] ss:$16 sps:$4 sm:$0xff]   ;;  %v5404_v5 = vld [vmem:[%s6440_s16 + $0x164] ss:$16 sps:$4 sm:$0xff]  }
 0x309   : > { %v5395_v2 = vld [vmem:[%s6440_s16 + $0x12c] ss:$16 sps:$4 sm:$0xff]   ;;  %v5402_v10 = vld [vmem:[%s6440_s16 + $0x160] ss:$16 sps:$4 sm:$0xff]   ;;  %v5410_v11 = vld [vmem:[%s6440_s16 + $0x184] ss:$16 sps:$4 sm:$0xff]  }
 0x30a   : > { %4789 = vmatmul.mubr.msk.bf16.vlgmr.msra.gmra.mrb[128].mxu0 %vm4788_vm0, %v6046_v12  ;;  %v5393_v13 = vld [vmem:[%s6440_s16 + $0x128] ss:$16 sps:$4 sm:$0xff]   ;;  %v5401_v14 = vld [vmem:[%s6440_s16 + $0x14c] ss:$16 sps:$4 sm:$0xff]   ;;  %v5408_v8 = vld [vmem:[%s6440_s16 + $0x180] ss:$16 sps:$4 sm:$0xff]  }
 0x30b   : > { %3034 = vmatpush1.bf16.msra.mxu0 %v5336_v7  ;;  %2250 = vmatpush1.bf16.msra.mxu1 %v2064_v27  ;;  %v5416_v15 = vld [vmem:[%s6440_s16 + $0x1a4] ss:$16 sps:$4 sm:$0xff]   ;;  %v5399_v7 = vld [vmem:[%s6440_s16 + $0x148] ss:$16 sps:$4 sm:$0xff]   ;;  %v5407_v16 = vld [vmem:[%s6440_s16 + $0x16c] ss:$16 sps:$4 sm:$0xff]  }
 0x30c   : > { %3035 = vmatprep.subr.bf16.mxu0 %v5344_v18  ;;  %3115 = vmatprep.subr.bf16.mxu1 %v5341_v29  ;;  %v5414_v17 = vld [vmem:[%s6440_s16 + $0x1a0] ss:$16 sps:$4 sm:$0xff]   ;;  %v5422_v18 = vld [vmem:[%s6440_s16 + $0x1c4] ss:$16 sps:$4 sm:$0xff]   ;;  %v5405_v20 = vld [vmem:[%s6440_s16 + $0x168] ss:$16 sps:$4 sm:$0xff]  }
 0x30d   : > { %v5413_v21 = vld [vmem:[%s6440_s16 + $0x18c] ss:$16 sps:$4 sm:$0xff]   ;;  %v5420_v22 = vld [vmem:[%s6440_s16 + $0x1c0] ss:$16 sps:$4 sm:$0xff]   ;;  %v5411_v23 = vld [vmem:[%s6440_s16 + $0x188] ss:$16 sps:$4 sm:$0xff]  }
 0x30e   : > { %4797 = vmatmul.mubr.msk.bf16.vlgmr.msra.gmra.mrb[128].mxu1 %vm4788_vm0, %v6046_v12  ;;  %v5359_v12 = vld [vmem:[%s6440_s16 + $0x6c] ss:$16 sps:$4 sm:$0xff]   ;;  %v5417_v25 = vld [vmem:[%s6440_s16 + $0x1a8] ss:$16 sps:$4 sm:$0xff]   ;;  %v5428_v27 = vld [vmem:[%s6440_s16 + $0x1e4] ss:$16 sps:$4 sm:$0xff]  }
 0x30f   : > { %3036 = vmatpush1.bf16.msra.mxu0 %v5342_v9  ;;  %3116 = vmatpush1.bf16.msra.mxu1 %v5339_v31  ;;  %v5419_v24 = vld [vmem:[%s6440_s16 + $0x1ac] ss:$16 sps:$4 sm:$0xff]   ;;  %v5423_v60 = vld [vmem:[%s6440_s16 + $0x1c8] ss:$16 sps:$4 sm:$0xff]  }
 0x310   : > { %3037 = vmatprep.subr.bf16.mxu0 %v5350_v26  ;;  %3117 = vmatprep.subr.bf16.mxu1 %v5347_v32  ;;  %v5425_v9 = vld [vmem:[%s6440_s16 + $0x1cc] ss:$16 sps:$4 sm:$0xff]   ;;  %v5426_v26 = vld [vmem:[%s6440_s16 + $0x1e0] ss:$16 sps:$4 sm:$0xff]   ;;  %v5429_v3 = vld [vmem:[%s6440_s16 + $0x1e8] ss:$16 sps:$4 sm:$0xff]  }
 0x311   : > { %v5431_v29 = vld [vmem:[%s6440_s16 + $0x1ec] ss:$16 sps:$4 sm:$0xff]  }
 0x313   : > { %3038 = vmatpush1.bf16.msra.mxu0 %v5348_v30  ;;  %3118 = vmatpush1.bf16.msra.mxu1 %v5345_v19  ;;  %v5434_v30 = vld [vmem:[%s6440_s16 + $0x204] ss:$16 sps:$4 sm:$0xff]   ;;  %v5432_v19 = vld [vmem:[%s6440_s16 + $0x200] ss:$16 sps:$4 sm:$0xff]  }
 0x314   : > { %3039 = vmatprep.subr.bf16.mxu0 %v5356_v63  ;;  %3119 = vmatprep.subr.bf16.mxu1 %v5353_v35  ;;  %v5437_v63 = vld [vmem:[%s6440_s16 + $0x20c] ss:$16 sps:$4 sm:$0xff]   ;;  %v5435_v35 = vld [vmem:[%s6440_s16 + $0x208] ss:$16 sps:$4 sm:$0xff]  }
 0x317   : > { %3040 = vmatpush1.bf16.msra.mxu0 %v5354_v33  ;;  %3120 = vmatpush1.bf16.msra.mxu1 %v5351_v28  ;;  %v5440_v28 = vld [vmem:[%s6440_s16 + $0x224] ss:$16 sps:$4 sm:$0xff]  }
 0x318   : > { %3041 = vmatprep.subr.bf16.mxu0 %v5362_v34  ;;  %3121 = vmatprep.subr.bf16.mxu1 %v5359_v12  ;;  %v5443_v12 = vld [vmem:[%s6440_s16 + $0x22c] ss:$16 sps:$4 sm:$0xff]  }
 0x31b   : > { %3042 = vmatpush1.bf16.msra.mxu0 %v5360_v38  ;;  %3122 = vmatpush1.bf16.msra.mxu1 %v5357_v49  ;;  %v5446_v49 = vld [vmem:[%s6440_s16 + $0x244] ss:$16 sps:$4 sm:$0xff]  }
 0x31c   : > { %3043 = vmatprep.subr.bf16.mxu0 %v5368_v40  ;;  %3123 = vmatprep.subr.bf16.mxu1 %v5365_v50  ;;  %v5449_v50 = vld [vmem:[%s6440_s16 + $0x24c] ss:$16 sps:$4 sm:$0xff]  }
 0x31f   : > { %3044 = vmatpush1.bf16.msra.mxu0 %v5366_v47  ;;  %3124 = vmatpush1.bf16.msra.mxu1 %v5363_v55  ;;  %v5438_v47 = vld [vmem:[%s6440_s16 + $0x220] ss:$16 sps:$4 sm:$0xff]  }
 0x320   : > { %3045 = vmatprep.subr.bf16.mxu0 %v5374_v48  ;;  %3125 = vmatprep.subr.bf16.mxu1 %v5371_v56  ;;  %v5441_v48 = vld [vmem:[%s6440_s16 + $0x228] ss:$16 sps:$4 sm:$0xff]   ;;  %v5452_v56 = vld [vmem:[%s6440_s16 + $0x264] ss:$16 sps:$4 sm:$0xff]  }
 0x323   : > { %3046 = vmatpush1.bf16.msra.mxu0 %v5372_v51  ;;  %3126 = vmatpush1.bf16.msra.mxu1 %v5369_v58  ;;  %v5444_v51 = vld [vmem:[%s6440_s16 + $0x240] ss:$16 sps:$4 sm:$0xff]  }
 0x324   : > { %3047 = vmatprep.subr.bf16.mxu0 %v5380_v53  ;;  %3127 = vmatprep.subr.bf16.mxu1 %v5377_v45  ;;  %v5447_v53 = vld [vmem:[%s6440_s16 + $0x248] ss:$16 sps:$4 sm:$0xff]  }
 0x327   : > { %3048 = vmatpush1.bf16.msra.mxu0 %v5378_v57  ;;  %3128 = vmatpush1.bf16.msra.mxu1 %v5375_v61  ;;  %v5455_v57 = vld [vmem:[%s6440_s16 + $0x26c] ss:$16 sps:$4 sm:$0xff]  }
 0x328   : > { %3049 = vmatprep.subr.bf16.mxu0 %v5386_v36  ;;  %3129 = vmatprep.subr.bf16.mxu1 %v5383_v62  ;;  %v5458_v62 = vld [vmem:[%s6440_s16 + $0x284] ss:$16 sps:$4 sm:$0xff]  }
 0x32b   : > { %3050 = vmatpush1.bf16.msra.mxu0 %v5384_v59  ;;  %3130 = vmatpush1.bf16.msra.mxu1 %v5381_v43  ;;  %v5450_v59 = vld [vmem:[%s6440_s16 + $0x260] ss:$16 sps:$4 sm:$0xff]   ;;  %v5459_v43 = vld [vmem:[%s6440_s16 + $0x288] ss:$16 sps:$4 sm:$0xff]  }
 0x32c   : > { %3051 = vmatprep.subr.bf16.mxu0 %v5392_v42  ;;  %3131 = vmatprep.subr.bf16.mxu1 %v5389_v44  ;;  %v5453_v42 = vld [vmem:[%s6440_s16 + $0x268] ss:$16 sps:$4 sm:$0xff]   ;;  %v5464_v44 = vld [vmem:[%s6440_s16 + $0x2a4] ss:$16 sps:$4 sm:$0xff]  }
 0x32f   : > { %3052 = vmatpush1.bf16.msra.mxu0 %v5390_v0  ;;  %3132 = vmatpush1.bf16.msra.mxu1 %v5387_v6  ;;  %v5461_v0 = vld [vmem:[%s6440_s16 + $0x28c] ss:$16 sps:$4 sm:$0xff]   ;;  %v5465_v6 = vld [vmem:[%s6440_s16 + $0x2a8] ss:$16 sps:$4 sm:$0xff]  }
 0x330   : > { %3053 = vmatprep.subr.bf16.mxu0 %v5398_v1  ;;  %3133 = vmatprep.subr.bf16.mxu1 %v5395_v2  ;;  %v5456_v1 = vld [vmem:[%s6440_s16 + $0x280] ss:$16 sps:$4 sm:$0xff]   ;;  %v5470_v2 = vld [vmem:[%s6440_s16 + $0x2c4] ss:$16 sps:$4 sm:$0xff]  }
 0x333   : > { %3054 = vmatpush1.bf16.msra.mxu0 %v5396_v4  ;;  %3134 = vmatpush1.bf16.msra.mxu1 %v5393_v13  ;;  %v5467_v4 = vld [vmem:[%s6440_s16 + $0x2ac] ss:$16 sps:$4 sm:$0xff]   ;;  %v5471_v13 = vld [vmem:[%s6440_s16 + $0x2c8] ss:$16 sps:$4 sm:$0xff]  }
 0x334   : > { %3055 = vmatprep.subr.bf16.mxu0 %v5404_v5  ;;  %3135 = vmatprep.subr.bf16.mxu1 %v5401_v14  ;;  %v5462_v5 = vld [vmem:[%s6440_s16 + $0x2a0] ss:$16 sps:$4 sm:$0xff]   ;;  %v5476_v14 = vld [vmem:[%s6440_s16 + $0x2e4] ss:$16 sps:$4 sm:$0xff]  }
 0x337   : > { %3056 = vmatpush1.bf16.msra.mxu0 %v5402_v10  ;;  %3136 = vmatpush1.bf16.msra.mxu1 %v5399_v7  ;;  %v5473_v10 = vld [vmem:[%s6440_s16 + $0x2cc] ss:$16 sps:$4 sm:$0xff]   ;;  %v5477_v7 = vld [vmem:[%s6440_s16 + $0x2e8] ss:$16 sps:$4 sm:$0xff]  }
 0x338   : > { %3057 = vmatprep.subr.bf16.mxu0 %v5410_v11  ;;  %3137 = vmatprep.subr.bf16.mxu1 %v5407_v16  ;;  %v5468_v11 = vld [vmem:[%s6440_s16 + $0x2c0] ss:$16 sps:$4 sm:$0xff]   ;;  %v5482_v16 = vld [vmem:[%s6440_s16 + $0x304] ss:$16 sps:$4 sm:$0xff]  }
 0x33b   : > { %3058 = vmatpush1.bf16.msra.mxu0 %v5408_v8  ;;  %3138 = vmatpush1.bf16.msra.mxu1 %v5405_v20  ;;  %v5479_v8 = vld [vmem:[%s6440_s16 + $0x2ec] ss:$16 sps:$4 sm:$0xff]   ;;  %v5483_v20 = vld [vmem:[%s6440_s16 + $0x308] ss:$16 sps:$4 sm:$0xff]  }
 0x33c   : > { %3059 = vmatprep.subr.bf16.mxu0 %v5416_v15  ;;  %3139 = vmatprep.subr.bf16.mxu1 %v5413_v21  ;;  %v5474_v15 = vld [vmem:[%s6440_s16 + $0x2e0] ss:$16 sps:$4 sm:$0xff]   ;;  %v5488_v21 = vld [vmem:[%s6440_s16 + $0x324] ss:$16 sps:$4 sm:$0xff]  }
 0x33f   : > { %3060 = vmatpush1.bf16.msra.mxu0 %v5414_v17  ;;  %3140 = vmatpush1.bf16.msra.mxu1 %v5411_v23  ;;  %v5485_v17 = vld [vmem:[%s6440_s16 + $0x30c] ss:$16 sps:$4 sm:$0xff]   ;;  %v5486_v23 = vld [vmem:[%s6440_s16 + $0x320] ss:$16 sps:$4 sm:$0xff]  }
 0x340   : > { %3061 = vmatprep.subr.bf16.mxu0 %v5422_v18  ;;  %3141 = vmatprep.subr.bf16.mxu1 %v5419_v24  ;;  %v5480_v18 = vld [vmem:[%s6440_s16 + $0x300] ss:$16 sps:$4 sm:$0xff]   ;;  %v5489_v24 = vld [vmem:[%s6440_s16 + $0x328] ss:$16 sps:$4 sm:$0xff]  }
 0x343   : > { %3062 = vmatpush1.bf16.msra.mxu0 %v5420_v22  ;;  %3142 = vmatpush1.bf16.msra.mxu1 %v5417_v25  ;;  %v5491_v22 = vld [vmem:[%s6440_s16 + $0x32c] ss:$16 sps:$4 sm:$0xff]   ;;  %v5494_v25 = vld [vmem:[%s6440_s16 + $0x344] ss:$16 sps:$4 sm:$0xff]  }
 0x344   : > { %3143 = vmatprep.subr.bf16.mxu1 %v5425_v9  ;;  %3063 = vmatprep.subr.bf16.mxu0 %v5428_v27  ;;  %v5497_v9 = vld [vmem:[%s6440_s16 + $0x34c] ss:$16 sps:$4 sm:$0xff]   ;;  %v5500_v27 = vld [vmem:[%s6440_s16 + $0x364] ss:$16 sps:$4 sm:$0xff]  }
 0x347   : > { %3144 = vmatpush1.bf16.msra.mxu1 %v5423_v60  ;;  %3064 = vmatpush1.bf16.msra.mxu0 %v5426_v26  ;;  %v5492_v60 = vld [vmem:[%s6440_s16 + $0x340] ss:$16 sps:$4 sm:$0xff]   ;;  %v5495_v26 = vld [vmem:[%s6440_s16 + $0x348] ss:$16 sps:$4 sm:$0xff]  }
 0x348   : > { %3145 = vmatprep.subr.bf16.mxu1 %v5431_v29  ;;  %3074 = vmatprep.subr.bf16.mxu0 %v5434_v30  ;;  %v5498_v29 = vld [vmem:[%s6440_s16 + $0x360] ss:$16 sps:$4 sm:$0xff]   ;;  %v5501_v30 = vld [vmem:[%s6440_s16 + $0x368] ss:$16 sps:$4 sm:$0xff]  }
 0x34b   : > { %3146 = vmatpush1.bf16.msra.mxu1 %v5429_v3  ;;  %v5503_v3 = vld [vmem:[%s6440_s16 + $0x36c] ss:$16 sps:$4 sm:$0xff]  }
 0x34c   : > { %3156 = vmatprep.subr.bf16.mxu1 %v5437_v63  ;;  %v5506_v63 = vld [vmem:[%s6440_s16 + $0x384] ss:$16 sps:$4 sm:$0xff]  }
 0x3dd   : > { %v2171_v31 = vpop.f32.mrb[128].mxu0 }
 0x3de   : > { %v2173_v32 = vpop.f32.mrb[129].mxu0  ;;  %v2261_v38 = vpack.c.bf16 %v2171_v31, %v2171_v31  ;;  %v5509_v31 = vld [vmem:[%s6440_s16 + $0x38c] ss:$16 sps:$4 sm:$0xff]  }
 0x3df   : > { %v2262_v33 = vpack.c.bf16 %v2173_v32, %v2173_v32  ;;  %v2175_v34 = vpop.f32.mrb[130].mxu0  ;;  %v5504_v32 = vld [vmem:[%s6440_s16 + $0x380] ss:$16 sps:$4 sm:$0xff]  }
 0x3e0   : > { %v2176_v40 = vpop.f32.mrb[131].mxu0  ;;  %v5512_v34 = vld [vmem:[%s6440_s16 + $0x3a4] ss:$16 sps:$4 sm:$0xff]  }
 0x3e1   : > { %3065 = vmatprep.mubr.bf16.mxu0 %v2262_v33  ;;  %3147 = vmatprep.mubr.bf16.mxu1 %v2262_v33  ;;  %v7175_v55 = vpop.f32.mrb[128].mxu1  ;;  %v5507_v33 = vld [vmem:[%s6440_s16 + $0x388] ss:$16 sps:$4 sm:$0xff]   ;;  %v5518_v40 = vld [vmem:[%s6440_s16 + $0x3c4] ss:$16 sps:$4 sm:$0xff]  }
 0x3e2   : > { %3066 = vmatmul.mubr.bf16.vlgmr.msra.gmra.mrb[132].mxu0 %v2261_v38  ;;  %3148 = vmatmul.mubr.bf16.vlgmr.msra.gmra.mrb[132].mxu1 %v2261_v38  ;;  %v2255_v36 = vpop.f32.mrb[129].mxu1  ;;  %v5513_v38 = vld [vmem:[%s6440_s16 + $0x3a8] ss:$16 sps:$4 sm:$0xff]  }
 0x3e3   : > { %3075 = vmatpush1.bf16.msra.mxu0 %v5432_v19  ;;  %3157 = vmatpush1.bf16.msra.mxu1 %v5435_v35  ;;  %v2257_v58 = vpop.f32.mrb[130].mxu1  ;;  %v2264_v61 = vpack.c.bf16 %v2255_v36, %v2255_v36  ;;  %v5515_v19 = vld [vmem:[%s6440_s16 + $0x3ac] ss:$16 sps:$4 sm:$0xff]   ;;  %v5510_v35 = vld [vmem:[%s6440_s16 + $0x3a0] ss:$16 sps:$4 sm:$0xff]  }
 0x3e4   : > { %3076 = vmatprep.subr.bf16.mxu0 %v5440_v28  ;;  %3158 = vmatprep.subr.bf16.mxu1 %v5443_v12  ;;  %v2258_v45 = vpop.f32.mrb[131].mxu1  ;;  %v5521_v28 = vld [vmem:[%s6440_s16 + $0x3cc] ss:$16 sps:$4 sm:$0xff]   ;;  %v5516_v12 = vld [vmem:[%s6440_s16 + $0x3c0] ss:$16 sps:$4 sm:$0xff]  }
 0x3e5   : > { %3106 = vmatprep.mubr.bf16.mxu0 %v2264_v61  ;;  %3188 = vmatprep.mubr.bf16.mxu1 %v2264_v61 }
 0x3e7   : > { %3077 = vmatpush1.bf16.msra.mxu0 %v5438_v47  ;;  %3159 = vmatpush1.bf16.msra.mxu1 %v5441_v48  ;;  %v5519_v47 = vld [vmem:[%s6440_s16 + $0x3c8] ss:$16 sps:$4 sm:$0xff]   ;;  %v5524_v48 = vld [vmem:[%s6440_s16 + $0x3e4] ss:$16 sps:$4 sm:$0xff]  }
 0x3e8   : > { %3078 = vmatprep.subr.bf16.mxu0 %v5446_v49  ;;  %3160 = vmatprep.subr.bf16.mxu1 %v5449_v50  ;;  %v5527_v49 = vld [vmem:[%s6440_s16 + $0x3ec] ss:$16 sps:$4 sm:$0xff]   ;;  %v5522_v50 = vld [vmem:[%s6440_s16 + $0x3e0] ss:$16 sps:$4 sm:$0xff]  }
 0x3eb   : > { %3079 = vmatpush1.bf16.msra.mxu0 %v5444_v51  ;;  %3161 = vmatpush1.bf16.msra.mxu1 %v5447_v53  ;;  %v5525_v51 = vld [vmem:[%s6440_s16 + $0x3e8] ss:$16 sps:$4 sm:$0xff]   ;;  %v2263_v53 = vpack.c.bf16 %v7175_v55, %v7175_v55 }
 0x3ec   : > { %3080 = vmatprep.subr.bf16.mxu0 %v5452_v56  ;;  %3162 = vmatprep.subr.bf16.mxu1 %v5455_v57  ;;  %v6047_v56 = vmov 1983009808  }
 0x3ed   : > { %v3204_v57 = vunpack.c.l.s4 %v6047_v56  ;;  %v5624_v56 = vld [vmem:[#allocation13 + $0x4] ss:$12 sps:$4 sm:$0xff] (!%p4926_p11)  }
 0x3ef   : > { %3081 = vmatpush1.bf16.msra.mxu0 %v5450_v59  ;;  %3163 = vmatpush1.bf16.msra.mxu1 %v5453_v42  ;;  %v3205_v36 = vunpack.c.0.s8 %v3204_v57  ;;  %v5626_v57 = vld [vmem:[#allocation13] ss:$12 sps:$4 sm:$0xff] (!%p4926_p11)  }
 0x3f0   : > { %3082 = vmatprep.subr.bf16.mxu0 %v5458_v62  ;;  %3164 = vmatprep.subr.bf16.mxu1 %v5461_v0 }
 0x3f1   : > { %v7232_v59 = vsub.s32 %v3205_v36, %v6644_v37  ;;  %v5554_v37 = vld [vmem:[#allocation10 + $0x80] ss:$8 sps:$4 sm:$0xff] (!%p4926_p11)  }
 0x3f2   : > { %v5627_v36 = vld [vmem:[#allocation13 + $0x1c] ss:$12 sps:$4 sm:$0xff] (!%p4926_p11)  }
 0x3f3   : > { %3083 = vmatpush1.bf16.msra.mxu0 %v5456_v1  ;;  %3165 = vmatpush1.bf16.msra.mxu1 %v5459_v43 }
 0x3f4   : > { %3084 = vmatprep.subr.bf16.mxu0 %v5464_v44  ;;  %3166 = vmatprep.subr.bf16.mxu1 %v5467_v4 }
 0x3f7   : > { %3085 = vmatpush1.bf16.msra.mxu0 %v5462_v5  ;;  %3167 = vmatpush1.bf16.msra.mxu1 %v5465_v6  ;;  %v2260_v6 = vld [vmem:[#allocation2] sm:$0xff] }
 0x3f8   : > { %3086 = vmatprep.subr.bf16.mxu0 %v5470_v2  ;;  %3168 = vmatprep.subr.bf16.mxu1 %v5473_v10 }
 0x3fb   : > { %3087 = vmatpush1.bf16.msra.mxu0 %v5468_v11  ;;  %3169 = vmatpush1.bf16.msra.mxu1 %v5471_v13  ;;  %v5528_v11 = vld [vmem:[#allocation10 + $0x4] ss:$8 sps:$4 sm:$0xff] (!%p4926_p11)   ;;  %v5530_v13 = vld [vmem:[#allocation10] ss:$8 sps:$4 sm:$0xff] (!%p4926_p11)  }
 0x3fc   : > { %3088 = vmatprep.subr.bf16.mxu0 %v5476_v14  ;;  %3170 = vmatprep.subr.bf16.mxu1 %v5479_v8  ;;  %v5531_v14 = vld [vmem:[#allocation10 + $0x14] ss:$8 sps:$4 sm:$0xff] (!%p4926_p11)   ;;  %v5533_v8 = vld [vmem:[#allocation10 + $0x10] ss:$8 sps:$4 sm:$0xff] (!%p4926_p11)  }
 0x3ff   : > { %3089 = vmatpush1.bf16.msra.mxu0 %v5474_v15  ;;  %3171 = vmatpush1.bf16.msra.mxu1 %v5477_v7  ;;  %v5534_v15 = vld [vmem:[#allocation10 + $0x24] ss:$8 sps:$4 sm:$0xff] (!%p4926_p11)   ;;  %v5536_v7 = vld [vmem:[#allocation10 + $0x20] ss:$8 sps:$4 sm:$0xff] (!%p4926_p11)  }
 0x400   : > { %3090 = vmatprep.subr.bf16.mxu0 %v5482_v16  ;;  %3172 = vmatprep.subr.bf16.mxu1 %v5485_v17  ;;  %v5537_v16 = vld [vmem:[#allocation10 + $0x34] ss:$8 sps:$4 sm:$0xff] (!%p4926_p11)   ;;  %v5539_v17 = vld [vmem:[#allocation10 + $0x30] ss:$8 sps:$4 sm:$0xff] (!%p4926_p11)  }
 0x403   : > { %3091 = vmatpush1.bf16.msra.mxu0 %v5480_v18  ;;  %3173 = vmatpush1.bf16.msra.mxu1 %v5483_v20  ;;  %v5540_v18 = vld [vmem:[#allocation10 + $0x44] ss:$8 sps:$4 sm:$0xff] (!%p4926_p11)   ;;  %v5542_v20 = vld [vmem:[#allocation10 + $0x40] ss:$8 sps:$4 sm:$0xff] (!%p4926_p11)  }
 0x404   : > { %3092 = vmatprep.subr.bf16.mxu0 %v5488_v21  ;;  %3174 = vmatprep.subr.bf16.mxu1 %v5491_v22  ;;  %v5543_v21 = vld [vmem:[#allocation10 + $0x54] ss:$8 sps:$4 sm:$0xff] (!%p4926_p11)   ;;  %v5545_v22 = vld [vmem:[#allocation10 + $0x50] ss:$8 sps:$4 sm:$0xff] (!%p4926_p11)  }
 0x407   : > { %3093 = vmatpush1.bf16.msra.mxu0 %v5486_v23  ;;  %3175 = vmatpush1.bf16.msra.mxu1 %v5489_v24  ;;  %v5546_v23 = vld [vmem:[#allocation10 + $0x64] ss:$8 sps:$4 sm:$0xff] (!%p4926_p11)   ;;  %v3226_v24 = vld [vmem:[#allocation8] sm:$0xf] (!%p4926_p11) }
 0x408   : > { %3094 = vmatprep.subr.bf16.mxu0 %v5494_v25  ;;  %3176 = vmatprep.subr.bf16.mxu1 %v5497_v9  ;;  %v3231_v25 = vrot.slane (!%p4926_p11), %v3226_v24, %v6653_v39  ;;  %v3235_v9 = vrot.slane (!%p4926_p11), %v3226_v24, %v6657_v41 }
 0x40b   : > { %3095 = vmatpush1.bf16.msra.mxu0 %v5492_v60  ;;  %3177 = vmatpush1.bf16.msra.mxu1 %v5495_v26  ;;  %v3239_v60 = vrot.slane (!%p4926_p11), %v3226_v24, %v6676_v52  ;;  %v3243_v26 = vrot.slane (!%p4926_p11), %v3226_v24, %v673_v54  ;;  %v5555_v54 = vld [vmem:[#allocation10 + $0x94] ss:$8 sps:$4 sm:$0xff] (!%p4926_p11)   ;;  %v5582_v24 = vld [vmem:[#allocation10 + $0x120] ss:$8 sps:$4 sm:$0xff] (!%p4926_p11)  }
 0x40c   : > { %3096 = vmatprep.subr.bf16.mxu0 %v5500_v27  ;;  %3178 = vmatprep.subr.bf16.mxu1 %v5503_v3  ;;  %v5548_v27 = vld [vmem:[#allocation10 + $0x60] ss:$8 sps:$4 sm:$0xff] (!%p4926_p11)   ;;  %v5549_v3 = vld [vmem:[#allocation10 + $0x74] ss:$8 sps:$4 sm:$0xff] (!%p4926_p11)  }
 0x40f   : > { %3097 = vmatpush1.bf16.msra.mxu0 %v5498_v29  ;;  %3179 = vmatpush1.bf16.msra.mxu1 %v5501_v30  ;;  %v3244_v29 = vcombine.low (!%p4926_p11), %v3231_v25, %v3235_v9  ;;  %v3245_v30 = vcombine.low (!%p4926_p11), %v3239_v60, %v3243_v26  ;;  %v5587_v25 = vld [vmem:[#allocation10 + $0x134] ss:$8 sps:$4 sm:$0xff] (!%p4926_p11)   ;;  %v5585_v26 = vld [vmem:[#allocation10 + $0x130] ss:$8 sps:$4 sm:$0xff] (!%p4926_p11)  }
 0x410   : > { %3098 = vmatprep.subr.bf16.mxu0 %v5506_v63  ;;  %3180 = vmatprep.subr.bf16.mxu1 %v5509_v31  ;;  %v5551_v63 = vld [vmem:[#allocation10 + $0x70] ss:$8 sps:$4 sm:$0xff] (!%p4926_p11)  }
 0x411   : > { %v3252_v31 = vrot.slane (!%p4926_p11), %v3244_v29, %v7232_v59  ;;  %v5647_v9 = vld [vmem:[#allocation13 + $0xa8] ss:$12 sps:$4 sm:$0xff] (!%p4926_p11)   ;;  %v5648_v60 = vld [vmem:[#allocation13 + $0xc4] ss:$12 sps:$4 sm:$0xff] (!%p4926_p11)  }
 0x412   : > { %v5651_v29 = vld [vmem:[#allocation13 + $0xdc] ss:$12 sps:$4 sm:$0xff] (!%p4926_p11)  }
 0x413   : > { %3099 = vmatpush1.bf16.msra.mxu0 %v5504_v32  ;;  %3181 = vmatpush1.bf16.msra.mxu1 %v5507_v33  ;;  %v3259_v32 = vrot.slane (!%p4926_p11), %v3245_v30, %v7232_v59  ;;  %v5588_v30 = vld [vmem:[#allocation10 + $0x140] ss:$8 sps:$4 sm:$0xff] (!%p4926_p11)  }
 0x414   : > { %3100 = vmatprep.subr.bf16.mxu0 %v5512_v34  ;;  %3182 = vmatprep.subr.bf16.mxu1 %v5515_v19  ;;  %v5552_v34 = vld [vmem:[#allocation10 + $0x84] ss:$8 sps:$4 sm:$0xff] (!%p4926_p11)  }
 0x415   : > { %v3260_v19 = vcombine.low (!%p4926_p11), %v3252_v31, %v3259_v32  ;;  %v5653_v31 = vld [vmem:[#allocation13 + $0xd8] ss:$12 sps:$4 sm:$0xff] (!%p4926_p11)   ;;  %v5654_v32 = vld [vmem:[#allocation13 + $0xf4] ss:$12 sps:$4 sm:$0xff] (!%p4926_p11)  }
 0x417   : > { %3101 = vmatpush1.bf16.msra.mxu0 %v5510_v35  ;;  %3183 = vmatpush1.bf16.msra.mxu1 %v5513_v38 }
 0x418   : > { %3102 = vmatprep.subr.bf16.mxu0 %v5518_v40  ;;  %3184 = vmatprep.subr.bf16.mxu1 %v5521_v28  ;;  %v5557_v28 = vld [vmem:[#allocation10 + $0x90] ss:$8 sps:$4 sm:$0xff] (!%p4926_p11)  }
 0x41b   : > { %3103 = vmatpush1.bf16.msra.mxu0 %v5516_v12  ;;  %3185 = vmatpush1.bf16.msra.mxu1 %v5519_v47  ;;  %v5558_v12 = vld [vmem:[#allocation10 + $0xa4] ss:$8 sps:$4 sm:$0xff] (!%p4926_p11)  }
 0x41c   : > { %3104 = vmatprep.subr.bf16.mxu0 %v5524_v48  ;;  %3186 = vmatprep.subr.bf16.mxu1 %v5527_v49  ;;  %v5560_v49 = vld [vmem:[#allocation10 + $0xa0] ss:$8 sps:$4 sm:$0xff] (!%p4926_p11)  }
 0x41f   : > { %3105 = vmatpush1.bf16.msra.mxu0 %v5522_v50  ;;  %3187 = vmatpush1.bf16.msra.mxu1 %v5525_v51  ;;  %v5561_v50 = vld [vmem:[#allocation10 + $0xb4] ss:$8 sps:$4 sm:$0xff] (!%p4926_p11)   ;;  %v5563_v51 = vld [vmem:[#allocation10 + $0xb0] ss:$8 sps:$4 sm:$0xff] (!%p4926_p11)  }
 0x420   : > { %3686 = vmatprep.subr.bf16.mxu0 (!%p4926_p11), %v5528_v11  ;;  %4109 = vmatprep.subr.bf16.mxu1 (!%p4926_p11), %v5624_v56  ;;  %v5608_v56 = vld [vmem:[#allocation10 + $0x1a4] ss:$8 sps:$4 sm:$0xff] (!%p4926_p11)  }
 0x422   : > { %3107 = vmatmul.mubr.bf16.vlgmr.msra.gmra.mrb[132].mxu0 %v2263_v53  ;;  %3189 = vmatmul.mubr.bf16.vlgmr.msra.gmra.mrb[132].mxu1 %v2263_v53  ;;  %v5564_v53 = vld [vmem:[#allocation10 + $0xc4] ss:$8 sps:$4 sm:$0xff] (!%p4926_p11)  }
 0x423   : > { %3687 = vmatpush1.bf16.msra.mxu0 (!%p4926_p11), %v5530_v13  ;;  %4110 = vmatpush1.bf16.msra.mxu1 (!%p4926_p11), %v5626_v57  ;;  %v5638_v13 = vld [vmem:[#allocation13 + $0x60] ss:$12 sps:$4 sm:$0xff] (!%p4926_p11)  }
 0x424   : > { %3688 = vmatprep.subr.bf16.mxu0 (!%p4926_p11), %v5531_v14  ;;  %4111 = vmatprep.subr.bf16.mxu1 (!%p4926_p11), %v5627_v36  ;;  %v5578_v14 = vld [vmem:[#allocation10 + $0x104] ss:$8 sps:$4 sm:$0xff] (!%p4926_p11)   ;;  %v5606_v57 = vld [vmem:[#allocation10 + $0x1a0] ss:$8 sps:$4 sm:$0xff] (!%p4926_p11)   ;;  %v5611_v36 = vld [vmem:[#allocation10 + $0x1b4] ss:$8 sps:$4 sm:$0xff] (!%p4926_p11)  }
 0x427   : > { %3689 = vmatpush1.bf16.msra.mxu0 (!%p4926_p11), %v5533_v8  ;;  %v5639_v8 = vld [vmem:[#allocation13 + $0x7c] ss:$12 sps:$4 sm:$0xff] (!%p4926_p11)  }
 0x428   : > { %3690 = vmatprep.subr.bf16.mxu0 (!%p4926_p11), %v5534_v15  ;;  %v5576_v15 = vld [vmem:[#allocation10 + $0x100] ss:$8 sps:$4 sm:$0xff] (!%p4926_p11)  }
 0x42b   : > { %3691 = vmatpush1.bf16.msra.mxu0 (!%p4926_p11), %v5536_v7  ;;  %v5581_v7 = vld [vmem:[#allocation10 + $0x114] ss:$8 sps:$4 sm:$0xff] (!%p4926_p11)  }
 0x42c   : > { %3692 = vmatprep.subr.bf16.mxu0 (!%p4926_p11), %v5537_v16  ;;  %v5641_v16 = vld [vmem:[#allocation13 + $0x78] ss:$12 sps:$4 sm:$0xff] (!%p4926_p11)  }
 0x42f   : > { %3693 = vmatpush1.bf16.msra.mxu0 (!%p4926_p11), %v5539_v17 }
 0x430   : > { %3694 = vmatprep.subr.bf16.mxu0 (!%p4926_p11), %v5540_v18  ;;  %v5642_v18 = vld [vmem:[#allocation13 + $0x94] ss:$12 sps:$4 sm:$0xff] (!%p4926_p11)  }
 0x433   : > { %3695 = vmatpush1.bf16.msra.mxu0 (!%p4926_p11), %v5542_v20  ;;  %v5579_v20 = vld [vmem:[#allocation10 + $0x110] ss:$8 sps:$4 sm:$0xff] (!%p4926_p11)  }
 0x434   : > { %3696 = vmatprep.subr.bf16.mxu0 (!%p4926_p11), %v5543_v21  ;;  %v5584_v21 = vld [vmem:[#allocation10 + $0x124] ss:$8 sps:$4 sm:$0xff] (!%p4926_p11)  }
 0x437   : > { %3697 = vmatpush1.bf16.msra.mxu0 (!%p4926_p11), %v5545_v22  ;;  %v5644_v22 = vld [vmem:[#allocation13 + $0x90] ss:$12 sps:$4 sm:$0xff] (!%p4926_p11)  }
 0x438   : > { %3698 = vmatprep.subr.bf16.mxu0 (!%p4926_p11), %v5546_v23  ;;  %v5645_v23 = vld [vmem:[#allocation13 + $0xac] ss:$12 sps:$4 sm:$0xff] (!%p4926_p11)  }
 0x43b   : > { %3699 = vmatpush1.bf16.msra.mxu0 (!%p4926_p11), %v5548_v27  ;;  %v5590_v27 = vld [vmem:[#allocation10 + $0x144] ss:$8 sps:$4 sm:$0xff] (!%p4926_p11)  }
 0x43c   : > { %3700 = vmatprep.subr.bf16.mxu0 (!%p4926_p11), %v5549_v3  ;;  %v5650_v3 = vld [vmem:[#allocation13 + $0xc0] ss:$12 sps:$4 sm:$0xff] (!%p4926_p11)  }
 0x43f   : > { %3701 = vmatpush1.bf16.msra.mxu0 (!%p4926_p11), %v5551_v63  ;;  %v5593_v63 = vld [vmem:[#allocation10 + $0x154] ss:$8 sps:$4 sm:$0xff] (!%p4926_p11)  }
 0x440   : > { %3702 = vmatprep.subr.bf16.mxu0 (!%p4926_p11), %v5552_v34  ;;  %v5596_v34 = vld [vmem:[#allocation10 + $0x164] ss:$8 sps:$4 sm:$0xff] (!%p4926_p11)  }
 0x443   : > { %3703 = vmatpush1.bf16.msra.mxu0 (!%p4926_p11), %v5554_v37  ;;  %v5594_v37 = vld [vmem:[#allocation10 + $0x160] ss:$8 sps:$4 sm:$0xff] (!%p4926_p11)  }
 0x444   : > { %3704 = vmatprep.subr.bf16.mxu0 (!%p4926_p11), %v5555_v54  ;;  %v5599_v54 = vld [vmem:[#allocation10 + $0x174] ss:$8 sps:$4 sm:$0xff] (!%p4926_p11)  }
 0x447   : > { %3705 = vmatpush1.bf16.msra.mxu0 (!%p4926_p11), %v5557_v28  ;;  %v5597_v28 = vld [vmem:[#allocation10 + $0x170] ss:$8 sps:$4 sm:$0xff] (!%p4926_p11)  }
 0x448   : > { %3706 = vmatprep.subr.bf16.mxu0 (!%p4926_p11), %v5558_v12  ;;  %v5602_v12 = vld [vmem:[#allocation10 + $0x184] ss:$8 sps:$4 sm:$0xff] (!%p4926_p11)  }
 0x44b   : > { %3707 = vmatpush1.bf16.msra.mxu0 (!%p4926_p11), %v5560_v49  ;;  %v5600_v49 = vld [vmem:[#allocation10 + $0x180] ss:$8 sps:$4 sm:$0xff] (!%p4926_p11)  }
 0x44c   : > { %3708 = vmatprep.subr.bf16.mxu0 (!%p4926_p11), %v5561_v50  ;;  %v5605_v50 = vld [vmem:[#allocation10 + $0x194] ss:$8 sps:$4 sm:$0xff] (!%p4926_p11)  }
 0x44f   : > { %3709 = vmatpush1.bf16.msra.mxu0 (!%p4926_p11), %v5563_v51  ;;  %v5665_v51 = vld [vmem:[#allocation13 + $0x138] ss:$12 sps:$4 sm:$0xff] (!%p4926_p11)  }
 0x450   : > { %3710 = vmatprep.subr.bf16.mxu0 (!%p4926_p11), %v5564_v53  ;;  %v5603_v53 = vld [vmem:[#allocation10 + $0x190] ss:$8 sps:$4 sm:$0xff] (!%p4926_p11)  }
 0x4f5   : > { %v3108_v58 = vpop.f32.mrb[132].mxu0  ;;  %v3190_v45 = vpop.f32.mrb[132].mxu1 }
 0x4f6   : > { %v3110_v42 = vpop.f32.mrb[133].mxu0  ;;  %v3192_v61 = vpop.f32.mrb[133].mxu1 }
 0x4f7   : > { %v3201_v62 = vcombine.low %v3108_v58, %v3110_v42  ;;  %v3202_v0 = vcombine.low %v3190_v45, %v3192_v61  ;;  %v3112_v1 = vpop.f32.mrb[134].mxu0  ;;  %v3194_v43 = vpop.f32.mrb[134].mxu1  ;;  %v5566_v58 = vld [vmem:[#allocation10 + $0xc0] ss:$8 sps:$4 sm:$0xff] (!%p4926_p11)   ;;  %v5567_v42 = vld [vmem:[#allocation10 + $0xd4] ss:$8 sps:$4 sm:$0xff] (!%p4926_p11)  }
 0x4f8   : > { %v3113_v44 = vpop.f32.mrb[135].mxu0  ;;  %v3195_v4 = vpop.f32.mrb[135].mxu1  ;;  %v5629_v45 = vld [vmem:[#allocation13 + $0x18] ss:$12 sps:$4 sm:$0xff] (!%p4926_p11)   ;;  %v5630_v61 = vld [vmem:[#allocation13 + $0x34] ss:$12 sps:$4 sm:$0xff] (!%p4926_p11)   ;;  %3711 = vmatpush1.bf16.msra.mxu0 (!%p4926_p11), %v5566_v58 }
 0x4f9   : > { %v3209_v55 = vrot.slane %v3201_v62, %v7232_v59  ;;  %v3216_v5 = vrot.slane %v3202_v0, %v7232_v59  ;;  %3224 = sbr.rel (%p4926_p11) target bundleno = 2378 (0x94a), region = 112  ;;  %v5569_v62 = vld [vmem:[#allocation10 + $0xd0] ss:$8 sps:$4 sm:$0xff] (!%p4926_p11)   ;;  %4112 = vmatpush1.bf16.msra.mxu1 (!%p4926_p11), %v5629_v45  ;;  %3712 = vmatprep.subr.bf16.mxu0 (!%p4926_p11), %v5567_v42  ;;  %v5570_v43 = vld [vmem:[#allocation10 + $0xe4] ss:$8 sps:$4 sm:$0xff] (!%p4926_p11)  }
 0x4fa   : > { %v5632_v1 = vld [vmem:[#allocation13 + $0x30] ss:$12 sps:$4 sm:$0xff] (!%p4926_p11)   ;;  %4113 = vmatprep.subr.bf16.mxu1 (!%p4926_p11), %v5630_v61  ;;  %v5633_v44 = vld [vmem:[#allocation13 + $0x4c] ss:$12 sps:$4 sm:$0xff] (!%p4926_p11)  }
 0x4fb   : > { %v3217_v2 = vcombine.low %v3209_v55, %v3216_v5  ;;  %v5572_v4 = vld [vmem:[#allocation10 + $0xe0] ss:$8 sps:$4 sm:$0xff] (!%p4926_p11)   ;;  %v5609_v58 = vld [vmem:[#allocation10 + $0x1b0] ss:$8 sps:$4 sm:$0xff] (!%p4926_p11)   ;;  %v5614_v45 = vld [vmem:[#allocation10 + $0x1c4] ss:$8 sps:$4 sm:$0xff] (!%p4926_p11)  }
 0x4fc   : > { %3713 = vmatpush1.bf16.msra.mxu0 (!%p4926_p11), %v5569_v62  ;;  %v5635_v5 = vld [vmem:[#allocation13 + $0x48] ss:$12 sps:$4 sm:$0xff] (!%p4926_p11)  }
 0x4fd   : > { %v3219_v10 = vadd.f32 %v3217_v2, %v2260_v6  ;;  %4114 = vmatpush1.bf16.msra.mxu1 (!%p4926_p11), %v5632_v1  ;;  %3714 = vmatprep.subr.bf16.mxu0 (!%p4926_p11), %v5570_v43  ;;  %v5573_v6 = vld [vmem:[#allocation10 + $0xf4] ss:$8 sps:$4 sm:$0xff] (!%p4926_p11)   ;;  %v5612_v42 = vld [vmem:[#allocation10 + $0x1c0] ss:$8 sps:$4 sm:$0xff] (!%p4926_p11)   ;;  %v5615_v62 = vld [vmem:[#allocation10 + $0x1d0] ss:$8 sps:$4 sm:$0xff] (!%p4926_p11)  }
 0x4fe   : > { %4115 = vmatprep.subr.bf16.mxu1 (!%p4926_p11), %v5633_v44  ;;  %v5636_v2 = vld [vmem:[#allocation13 + $0x64] ss:$12 sps:$4 sm:$0xff] (!%p4926_p11)  }
 0x4ff   : > { %3220 = vst [vmem:[#allocation2] sm:$0xff] %v3219_v10  ;;  %v5575_v10 = vld [vmem:[#allocation10 + $0xf0] ss:$8 sps:$4 sm:$0xff] (!%p4926_p11)   ;;  %v5617_v61 = vld [vmem:[#allocation10 + $0x1d4] ss:$8 sps:$4 sm:$0xff] (!%p4926_p11)  }
 0x500   : > { %3715 = vmatpush1.bf16.msra.mxu0 %v5572_v4  ;;  %v5618_v1 = vld [vmem:[#allocation10 + $0x1e0] ss:$8 sps:$4 sm:$0xff]   ;;  %v5623_v43 = vld [vmem:[#allocation10 + $0x1f4] ss:$8 sps:$4 sm:$0xff]   ;;  %v5621_v44 = vld [vmem:[#allocation10 + $0x1f0] ss:$8 sps:$4 sm:$0xff]  }
 0x501   : > { %4116 = vmatpush1.bf16.msra.mxu1 %v5635_v5  ;;  %3716 = vmatprep.subr.bf16.mxu0 %v5573_v6  ;;  %v5666_v5 = vld [vmem:[#allocation13 + $0x154] ss:$12 sps:$4 sm:$0xff]   ;;  %v5668_v6 = vld [vmem:[#allocation13 + $0x150] ss:$12 sps:$4 sm:$0xff]  }
 0x502   : > { %4117 = vmatprep.subr.bf16.mxu1 %v5636_v2  ;;  %v5669_v2 = vld [vmem:[#allocation13 + $0x16c] ss:$12 sps:$4 sm:$0xff]  }
 0x504   : > { %3717 = vmatpush1.bf16.msra.mxu0 %v5575_v10  ;;  %v5671_v10 = vld [vmem:[#allocation13 + $0x168] ss:$12 sps:$4 sm:$0xff]  }
 0x505   : > { %4118 = vmatpush1.bf16.msra.mxu1 %v5638_v13  ;;  %3727 = vmatprep.subr.bf16.mxu0 %v5578_v14  ;;  %v3354_v13 = vld [vmem:[#allocation11] sm:$0x3] }
 0x506   : > { %v3225_v33 = vld [vmem:[#allocation2] sm:$0xff]  ;;  %4119 = vmatprep.subr.bf16.mxu1 %v5639_v8  ;;  %v3359_v14 = vrot.slane %v3354_v13, %v6653_v39  ;;  %v3363_v8 = vrot.slane %v3354_v13, %v6657_v41 }
 0x507   : > { %v3262_v35 = vadd.f32 %v3260_v19, %v3225_v33  ;;  %v5591_v33 = vld [vmem:[#allocation10 + $0x150] ss:$8 sps:$4 sm:$0xff]  }
 0x508   : > { %v5656_v19 = vld [vmem:[#allocation13 + $0xf0] ss:$12 sps:$4 sm:$0xff]  }
 0x509   : > { %v3263_v38 = vmax.f32 %v3262_v35, 0.0  ;;  %4120 = vmatpush1.bf16.msra.mxu1 %v5641_v16  ;;  %v5657_v35 = vld [vmem:[#allocation13 + $0x10c] ss:$12 sps:$4 sm:$0xff]  }
 0x50a   : > { %4121 = vmatprep.subr.bf16.mxu1 %v5642_v18 }
 0x50b   : > { %v7245_v40 = vrot.slane %v3263_v38, %v7232_v59  ;;  %v3265_v0 = vcombine.high %v3263_v38, %v3263_v38  ;;  %v5659_v38 = vld [vmem:[#allocation13 + $0x108] ss:$12 sps:$4 sm:$0xff]  }
 0x50d   : > { %v3280_v47 = vcombine.high %v7245_v40, %v7245_v40  ;;  %v7250_v55 = vrot.slane %v3265_v0, %v7232_v59  ;;  %v3286_v59 = vpack.c.bf16 %v7245_v40, %v7245_v40  ;;  %4122 = vmatpush1.bf16.msra.mxu1 %v5644_v22  ;;  %v5660_v40 = vld [vmem:[#allocation13 + $0x124] ss:$12 sps:$4 sm:$0xff]   ;;  %v5673_v22 = vld [vmem:[#allocation13 + $0x8] ss:$12 sps:$4 sm:$0xff]  }
 0x50e   : > { %4123 = vmatprep.subr.bf16.mxu1 %v5645_v23  ;;  %v5620_v0 = vld [vmem:[#allocation10 + $0x1e4] ss:$8 sps:$4 sm:$0xff]  }
 0x50f   : > { %v3287_v48 = vpack.c.bf16 %v3280_v47, %v3280_v47  ;;  %v3281_v11 = vcombine.high %v7250_v55, %v7250_v55  ;;  %v5662_v47 = vld [vmem:[#allocation13 + $0x120] ss:$12 sps:$4 sm:$0xff]   ;;  %v3288_v4 = vpack.c.bf16 %v7250_v55, %v7250_v55 }
 0x511   : > { %3718 = vmatprep.mubr.bf16.mxu0 %v3287_v48  ;;  %v3289_v17 = vpack.c.bf16 %v3281_v11, %v3281_v11  ;;  %4124 = vmatpush1.bf16.msra.mxu1 %v5647_v9  ;;  %v5663_v48 = vld [vmem:[#allocation13 + $0x13c] ss:$12 sps:$4 sm:$0xff]   ;;  %v5676_v9 = vld [vmem:[#allocation13 + $0xf8] ss:$12 sps:$4 sm:$0xff]  }
 0x512   : > { %3719 = vmatmul.mubr.bf16.vlgmr.msra.gmra.mrb[0].mxu0 %v3286_v59  ;;  %4125 = vmatprep.subr.bf16.mxu1 %v5648_v60  ;;  %v5672_v11 = vld [vmem:[#allocation13 + $0xc8] ss:$12 sps:$4 sm:$0xff]   ;;  %v5677_v60 = vld [vmem:[#allocation13 + $0x38] ss:$12 sps:$4 sm:$0xff]  }
 0x513   : > { %3728 = vmatpush1.bf16.msra.mxu0 %v5576_v15  ;;  %3759 = vmatprep.mubr.bf16.mxu0 %v3289_v17 }
 0x514   : > { %3729 = vmatprep.subr.bf16.mxu0 %v5581_v7 }
 0x515   : > { %4126 = vmatpush1.bf16.msra.mxu1 %v5650_v3  ;;  %v5680_v3 = vld [vmem:[#allocation13 + $0x128] ss:$12 sps:$4 sm:$0xff]  }
 0x516   : > { %4127 = vmatprep.subr.bf16.mxu1 %v5651_v29  ;;  %v5681_v29 = vld [vmem:[#allocation13 + $0x68] ss:$12 sps:$4 sm:$0xff]  }
 0x517   : > { %3730 = vmatpush1.bf16.msra.mxu0 %v5579_v20 }
 0x518   : > { %3731 = vmatprep.subr.bf16.mxu0 %v5584_v21 }
 0x519   : > { %4128 = vmatpush1.bf16.msra.mxu1 %v5653_v31  ;;  %v5684_v31 = vld [vmem:[#allocation13 + $0x158] ss:$12 sps:$4 sm:$0xff]  }
 0x51a   : > { %4129 = vmatprep.subr.bf16.mxu1 %v5654_v32  ;;  %v5685_v32 = vld [vmem:[#allocation13 + $0x98] ss:$12 sps:$4 sm:$0xff]  }
 0x51b   : > { %3732 = vmatpush1.bf16.msra.mxu0 %v5582_v24  ;;  %v5674_v24 = vld [vmem:[#allocation13 + $0xe0] ss:$12 sps:$4 sm:$0xff]  }
 0x51c   : > { %3733 = vmatprep.subr.bf16.mxu0 %v5587_v25  ;;  %v5675_v25 = vld [vmem:[#allocation13 + $0x20] ss:$12 sps:$4 sm:$0xff]  }
 0x51d   : > { %4130 = vmatpush1.bf16.msra.mxu1 %v5656_v19  ;;  %v5688_v19 = vld [vmem:[#allocation16 + $0x40] sm:$0xff]  }
 0x51e   : > { %4131 = vmatprep.subr.bf16.mxu1 %v5657_v35  ;;  %v5689_v35 = vld [vmem:[#allocation16 + $0x80] sm:$0xff]  }
 0x51f   : > { %3734 = vmatpush1.bf16.msra.mxu0 %v5585_v26  ;;  %v5678_v26 = vld [vmem:[#allocation13 + $0x110] ss:$12 sps:$4 sm:$0xff]  }
 0x520   : > { %3735 = vmatprep.subr.bf16.mxu0 %v5590_v27  ;;  %v5679_v27 = vld [vmem:[#allocation13 + $0x50] ss:$12 sps:$4 sm:$0xff]  }
 0x521   : > { %4132 = vmatpush1.bf16.msra.mxu1 %v5659_v38  ;;  %v5691_v38 = vld [vmem:[#allocation16 + $0x48] sm:$0xff]  }
 0x522   : > { %4133 = vmatprep.subr.bf16.mxu1 %v5660_v40  ;;  %v5692_v40 = vld [vmem:[#allocation16 + $0x88] sm:$0xff]  }
 0x523   : > { %3736 = vmatpush1.bf16.msra.mxu0 %v5588_v30  ;;  %v5682_v30 = vld [vmem:[#allocation13 + $0x140] ss:$12 sps:$4 sm:$0xff]  }
 0x524   : > { %3737 = vmatprep.subr.bf16.mxu0 %v5593_v63  ;;  %v5683_v63 = vld [vmem:[#allocation13 + $0x80] ss:$12 sps:$4 sm:$0xff]  }
 0x525   : > { %4134 = vmatpush1.bf16.msra.mxu1 %v5662_v47  ;;  %v5695_v47 = vld [vmem:[#allocation16 + $0x90] sm:$0xff]  }
 0x526   : > { %4135 = vmatprep.subr.bf16.mxu1 %v5663_v48  ;;  %v5696_v48 = vld [vmem:[#allocation16 + $0x10] sm:$0xff]  }
 0x527   : > { %3738 = vmatpush1.bf16.msra.mxu0 %v5591_v33  ;;  %v5686_v33 = vld [vmem:[#allocation13 + $0x170] ss:$12 sps:$4 sm:$0xff]  }
 0x528   : > { %3739 = vmatprep.subr.bf16.mxu0 %v5596_v34  ;;  %v5687_v34 = vld [vmem:[#allocation13 + $0xb0] ss:$12 sps:$4 sm:$0xff]  }
 0x529   : > { %4136 = vmatpush1.bf16.msra.mxu1 %v5665_v51  ;;  %v5699_v51 = vld [vmem:[#allocation16 + $0x18] sm:$0xff]  }
 0x52a   : > { %4137 = vmatprep.subr.bf16.mxu1 %v5666_v5 }
 0x52b   : > { %3740 = vmatpush1.bf16.msra.mxu0 %v5594_v37  ;;  %v5690_v37 = vld [vmem:[#allocation16] sm:$0xff]  }
 0x52c   : > { %3741 = vmatprep.subr.bf16.mxu0 %v5599_v54  ;;  %v6048_v54 = vmov 0.0  }
 0x52d   : > { %4138 = vmatpush1.bf16.msra.mxu1 %v5668_v6 }
 0x52e   : > { %4139 = vmatprep.subr.bf16.mxu1 %v5669_v2 }
 0x52f   : > { %3742 = vmatpush1.bf16.msra.mxu0 %v5597_v28  ;;  %v5693_v28 = vld [vmem:[#allocation16 + $0x8] sm:$0xff]  }
 0x530   : > { %3743 = vmatprep.subr.bf16.mxu0 %v5602_v12  ;;  %v5694_v12 = vld [vmem:[#allocation16 + $0x50] sm:$0xff]  }
 0x531   : > { %4140 = vmatpush1.bf16.msra.mxu1 %v5671_v10 }
 0x532   : > { %5072 = vmatprep.subr.bf16.mxu1 %v5672_v11 }
 0x533   : > { %3744 = vmatpush1.bf16.msra.mxu0 %v5600_v49  ;;  %v5697_v49 = vld [vmem:[#allocation16 + $0x58] sm:$0xff]  }
 0x534   : > { %3745 = vmatprep.subr.bf16.mxu0 %v5605_v50  ;;  %v5698_v50 = vld [vmem:[#allocation16 + $0x98] sm:$0xff]  }
 0x537   : > { %3746 = vmatpush1.bf16.msra.mxu0 %v5603_v53 }
 0x538   : > { %3747 = vmatprep.subr.bf16.mxu0 %v5608_v56 }
 0x53b   : > { %3748 = vmatpush1.bf16.msra.mxu0 %v5606_v57 }
 0x53c   : > { %3749 = vmatprep.subr.bf16.mxu0 %v5611_v36 }
 0x53f   : > { %3750 = vmatpush1.bf16.msra.mxu0 %v5609_v58  ;;  %v3836_v58 = vld [vmem:[#allocation14] sm:$0x7] }
 0x540   : > { %3751 = vmatprep.subr.bf16.mxu0 %v5614_v45  ;;  %v3841_v45 = vrot.slane %v3836_v58, %v6653_v39 }
 0x543   : > { %3752 = vmatpush1.bf16.msra.mxu0 %v5612_v42  ;;  %v3845_v42 = vrot.slane %v3836_v58, %v6657_v41 }
 0x544   : > { %3753 = vmatprep.subr.bf16.mxu0 %v5617_v61 }
 0x547   : > { %3754 = vmatpush1.bf16.msra.mxu0 %v5615_v62 }
 0x548   : > { %3755 = vmatprep.subr.bf16.mxu0 %v5620_v0 }
 0x54b   : > { %3756 = vmatpush1.bf16.msra.mxu0 %v5618_v1 }
 0x54c   : > { %3757 = vmatprep.subr.bf16.mxu0 %v5623_v43 }
 0x54f   : > { %3758 = vmatpush1.bf16.msra.mxu0 %v5621_v44  ;;  %v3849_v44 = vrot.slane %v3836_v58, %v6676_v52  ;;  %v5703_v52 = vld [vmem:[#allocation16 + $0x68] sm:$0xff]  }
 0x550   : > { %5125 = vmatprep.subr.bf16.mxu0 %v6048_v54 }
 0x552   : > { %3760 = vmatmul.mubr.bf16.vlgmr.msra.gmra.mrb[0].mxu0 %v3288_v4 }
 0x553   : > { %5126 = vmatpush3.bf16.msra.mxu0 %v5689_v35  ;;  %5141 = vmatprep.mubr.msk.bf16.mxu0 %vm6049_vm2, %v6048_v54 }
 0x554   : > { %5127 = vmatprep.subr.bf16.mxu0 %v6048_v54 }
 0x557   : > { %5128 = vmatpush3.bf16.msra.mxu0 %v5692_v40 }
 0x558   : > { %5129 = vmatprep.subr.bf16.mxu0 %v6048_v54 }
 0x55b   : > { %5130 = vmatpush3.bf16.msra.mxu0 %v5695_v47 }
 0x55c   : > { %5131 = vmatprep.subr.bf16.mxu0 %v6048_v54 }
 0x55f   : > { %5132 = vmatpush3.bf16.msra.mxu0 %v5698_v50  ;;  %v5065_v50 = vld [vmem:[%s7373_s17] ss:$0 sm:$0xff] }
 0x560   : > { %5133 = vmatprep.subr.bf16.mxu0 %v6048_v54 }
 0x625   : > { %v3761_v15 = vpop.f32.mrb[0].mxu0 }
 0x626   : > { %v5161_v59 = vadd.f32 %v3761_v15, %v3359_v14  ;;  %v3763_v55 = vpop.f32.mrb[1].mxu0  ;;  %v5700_v15 = vld [vmem:[#allocation16 + $0x60] sm:$0xff]  }
 0x627   : > { %v5162_v7 = vadd.f32 %v3763_v55, %v3363_v8  ;;  %v3765_v16 = vpop.f32.mrb[2].mxu0  ;;  %v5702_v55 = vld [vmem:[#allocation16 + $0x20] sm:$0xff]  }
 0x628   : > { %v3768_v17 = vmax.f32 %v5161_v59, 0.0  ;;  %v3766_v18 = vpop.f32.mrb[3].mxu0  ;;  %v5701_v59 = vld [vmem:[#allocation16 + $0xa0] sm:$0xff]   ;;  %v5705_v16 = vld [vmem:[#allocation16 + $0x28] sm:$0xff]  }
 0x629   : > { %v3769_v20 = vmax.f32 %v5162_v7, 0.0  ;;  %5134 = vmatpush3.bf16.msra.mxu0 %v5701_v59  ;;  %v5704_v7 = vld [vmem:[#allocation16 + $0xa8] sm:$0xff]   ;;  %v5707_v18 = vld [vmem:[#allocation16 + $0xb0] sm:$0xff]  }
 0x62a   : > { %v3770_v23 = vpack.c.bf16 %v3768_v17, %v3768_v17  ;;  %5135 = vmatprep.subr.bf16.mxu0 %v6048_v54  ;;  %v5706_v17 = vld [vmem:[#allocation16 + $0x70] sm:$0xff]  }
 0x62b   : > { %v3771_v21 = vpack.c.bf16 %v3769_v20, %v3769_v20  ;;  %v5708_v20 = vld [vmem:[#allocation16 + $0x30] sm:$0xff]  }
 0x62d   : > { %4141 = vmatprep.mubr.bf16.mxu1 %v3771_v21  ;;  %5136 = vmatpush3.bf16.msra.mxu0 %v5704_v7 }
 0x62e   : > { %4142 = vmatmul.mubr.bf16.vlgmr.msra.gmra.mrb[0].mxu1 %v3770_v23  ;;  %5137 = vmatprep.subr.bf16.mxu0 %v6048_v54 }
 0x62f   : > { %5073 = vmatpush3.bf16.msra.mxu1 %v5673_v22  ;;  %4182 = vmatprep.mubr.bf16.mxu1 %v3771_v21  ;;  %v5709_v21 = vld [vmem:[#allocation16 + $0x78] sm:$0xff]  }
 0x630   : > { %5074 = vmatprep.subr.bf16.mxu1 %v5674_v24  ;;  %v5710_v22 = vld [vmem:[#allocation16 + $0xb8] sm:$0xff]  }
 0x631   : > { %5138 = vmatpush3.bf16.msra.mxu0 %v5707_v18 }
 0x632   : > { %5139 = vmatprep.subr.bf16.mxu0 %v6048_v54 }
 0x633   : > { %5075 = vmatpush3.bf16.msra.mxu1 %v5675_v25 }
 0x634   : > { %5076 = vmatprep.subr.bf16.mxu1 %v5676_v9 }
 0x635   : > { %5140 = vmatpush3.bf16.msra.mxu0 %v5710_v22 }
 0x637   : > { %5077 = vmatpush3.bf16.msra.mxu1 %v5677_v60 }
 0x638   : > { %5078 = vmatprep.subr.bf16.mxu1 %v5678_v26 }
 0x63b   : > { %5079 = vmatpush3.bf16.msra.mxu1 %v5679_v27 }
 0x63c   : > { %5080 = vmatprep.subr.bf16.mxu1 %v5680_v3 }
 0x63f   : > { %5081 = vmatpush3.bf16.msra.mxu1 %v5681_v29 }
 0x640   : > { %5082 = vmatprep.subr.bf16.mxu1 %v5682_v30 }
 0x643   : > { %5083 = vmatpush3.bf16.msra.mxu1 %v5683_v63 }
 0x644   : > { %5084 = vmatprep.subr.bf16.mxu1 %v5684_v31 }
 0x647   : > { %5085 = vmatpush3.bf16.msra.mxu1 %v5685_v32 }
 0x648   : > { %5086 = vmatprep.subr.bf16.mxu1 %v5686_v33 }
 0x64b   : > { %5087 = vmatpush3.bf16.msra.mxu1 %v5687_v34 }
 0x64c   : > { %5094 = vmatprep.subr.bf16.mxu1 %v5688_v19 }
 0x64e   : > { %4183 = vmatmul.mubr.bf16.vlgmr.msra.gmra.mrb[4].mxu1 %v3770_v23  ;;  %v5711_v23 = vld [vmem:[#allocation16 + $0x38] sm:$0xff]  }
 0x64f   : > { %5095 = vmatpush3.bf16.msra.mxu1 %v5690_v37 }
 0x650   : > { %5096 = vmatprep.subr.bf16.mxu1 %v5691_v38  ;;  %v4481_v38 = vld [vmem:[%s7372_s29] sm:$0x3] }
 0x653   : > { %5097 = vmatpush3.bf16.msra.mxu1 %v5693_v28 }
 0x654   : > { %5098 = vmatprep.subr.bf16.mxu1 %v5694_v12 }
 0x657   : > { %5099 = vmatpush3.bf16.msra.mxu1 %v5696_v48 }
 0x658   : > { %5100 = vmatprep.subr.bf16.mxu1 %v5697_v49 }
 0x65b   : > { %5101 = vmatpush3.bf16.msra.mxu1 %v5699_v51  ;;  %v4499_v51 = vsub.f32 %v5065_v50, %v4481_v38 }
 0x65c   : > { %5102 = vmatprep.subr.bf16.mxu1 %v5700_v15 }
 0x65f   : > { %5103 = vmatpush3.bf16.msra.mxu1 %v5702_v55 }
 0x660   : > { %5104 = vmatprep.subr.bf16.mxu1 %v5703_v52 }
 0x663   : > { %5105 = vmatpush3.bf16.msra.mxu1 %v5705_v16 }
 0x664   : > { %5106 = vmatprep.subr.bf16.mxu1 %v5706_v17 }
 0x667   : > { %5107 = vmatpush3.bf16.msra.mxu1 %v5708_v20 }
 0x668   : > { %5108 = vmatprep.subr.bf16.mxu1 %v5709_v21 }
 0x66b   : > { %5109 = vmatpush3.bf16.msra.mxu1 %v5711_v23 }
 0x701   : > { %v4143_v53 = vpop.f32.mrb[0].mxu1 }
 0x702   : > { %v4145_v56 = vpop.f32.mrb[1].mxu1  ;;  %v4144_v61 = vadd.f32 %v4143_v53, %v3841_v45 }
 0x703   : > { %v4147_v57 = vpop.f32.mrb[2].mxu1  ;;  %v4146_v62 = vadd.f32 %v4145_v56, %v3845_v42 }
 0x704   : > { %v4148_v36 = vpop.f32.mrb[3].mxu1  ;;  %v4190_v0 = vmul.f32 %v4144_v61, %v4144_v61 }
 0x705   : > { %v4191_v1 = vmul.f32 %v4146_v62, %v4146_v62 }
 0x706   : > { %v4194_v11 = vsel %vm4193_vm1, %v4190_v0, 0.0 }
 0x707   : > { %v4195_v13 = vsel %vm4193_vm1, %v4191_v1, 0.0 }
 0x708   : > { %v4196_v14 = vadd.f32 %v4195_v13, %v4194_v11 }
 0x721   : > { %v5088_v43 = vpop.f32.mrb[4].mxu1 }
 0x722   : > { %v5089_v4 = vpop.f32.mrb[5].mxu1 }
 0x723   : > { %v5090_v5 = vadd.f32 %v5089_v4, %v5088_v43  ;;  %v5091_v6 = vpop.f32.mrb[6].mxu1 }
 0x724   : > { %v5092_v2 = vpop.f32.mrb[7].mxu1 }
 0x725   : > { %v4185_v10 = vadd.f32 %v5090_v5, %v3849_v44 }
 0x727   : > { %v4192_v39 = vmul.f32 %v4185_v10, %v4185_v10 }
 0x729   : > { %v4197_v41 = vsel %vm4193_vm1, %v4192_v39, 0.0 }
 0x72a   : > { %v4198_v8 = vadd.f32 %v4197_v41, %v4196_v14 }
 0x72c   : > { %4199 = vadd.xlane.f32.xlu0 %v4198_v8 }
 0x7b9   : > { %v4200_v24 = vpop.xlane.xlu0 %4199 }
 0x7ba   : > { %v4201_v25 = vmax.f32 %v4200_v24, 1e-24 }
 0x7bc   : > { %5712 = vrsqrt.f32 %v4201_v25 }
 0x7c6   : > { %v5713_v9 = vpop.eup %5712 }
 0x7c7   : > { %v4204_v60 = vmul.f32 %v5713_v9, %v4146_v62  ;;  %v4205_v26 = vmul.f32 %v5713_v9, %v4185_v10  ;;  %v4203_v27 = vmul.f32 %v5713_v9, %v4144_v61 }
 0x7c9   : > { %v4207_v3 = vpack.c.bf16 %v4204_v60, %v4204_v60  ;;  %v4208_v29 = vpack.c.bf16 %v4205_v26, %v4205_v26  ;;  %v4206_v30 = vpack.c.bf16 %v4203_v27, %v4203_v27 }
 0x7cb   : > { %4433 = vmatprep.mubr.bf16.mxu1 %v4207_v3  ;;  %5142 = vmatmul.mubr.bf16.vlgmr.msra.gmra.mrb[4].mxu0 %v4208_v29 }
 0x7cc   : > { %4434 = vmatmul.mubr.bf16.vlgmr.msra.gmra.mrb[8].mxu1 %v4206_v30 }
 0x89e   : > { %v4475_v63 = vpop.f32.mrb[4].mxu0 }
 0x89f   : > { %v5110_v31 = vpop.f32.mrb[8].mxu1  ;;  %v5143_v32 = vpop.f32.mrb[5].mxu0 }
 0x8a0   : > { %v5111_v33 = vpop.f32.mrb[9].mxu1  ;;  %v4478_v34 = vpop.f32.mrb[6].mxu0 }
 0x8a1   : > { %v5112_v19 = vadd.f32 %v5111_v33, %v5110_v31  ;;  %v5113_v35 = vpop.f32.mrb[10].mxu1  ;;  %v5144_v37 = vpop.f32.mrb[7].mxu0 }
 0x8a2   : > { %v5114_v54 = vpop.f32.mrb[11].mxu1 }
 0x8a3   : > { %v4476_v40 = vadd.f32 %v5112_v19, %v4475_v63 }
 0x8a5   : > { %v5064_v28 = vadd.f32 -1.0, %v4476_v40  ;;  %v4482_v12 = vmul.f32 %v4481_v38, %v4476_v40 }
 0x8a7   : > { %v4489_v47 = vmul.f32 64.0, %v5064_v28  ;;  %v4483_v48 = vsel %vm4193_vm1, %v4482_v12, 0.0 }
 0x8a8   : > { %4484 = vadd.xlane.f32.xlu0 %v4483_v48 }
 0x8a9   : > { %v4490_v49 = vmul.f32 1.442695, %v4489_v47 }
 0x8ab   : > { %5714 = vpow2.f32 %v4490_v49 }
 0x8b5   : > { %v5715_v53 = vpop.eup %5714 }
 0x8b6   : > { %v4500_v56 = vmul.f32 %v5715_v53, %v4499_v51 }
 0x8b8   : > { %v4501_v57 = vsel %vm4193_vm1, %v4500_v56, 0.0 }
 0x8b9   : > { %4502 = vadd.xlane.f32.xlu1 %v4501_v57 }
 0x935   : > { %v4485_v36 = vpop.xlane.xlu0 %4484 }
 0x936   : > { %v5063_v58 = vclamps-f32 %v4485_v36, 0.9999999 }
 0x946   : > { %v4503_v45 = vpop.xlane.xlu1 %4502 }
 0x947   : > { %v4506_v42 = vsel %vm4505_vm3, %v4503_v45, 0.0 }
 0x948   : > { %v4507_v61 = vsel %vm4504_vm4, %v5063_v58, %v4506_v42 }
 0x949   : > { %4508 = vst [vmem:[%s7374_s12] sm:$0x3] %v4507_v61 }
 0x94a PF: > { %s7375_s24 = sld [smem:[#allocation23_spill]]  ;;  %s7376_s15 = sld [smem:[#allocation22_spill]] }
 0x94b   : > { %s7377_s23 = sld [smem:[#allocation24_spill]]  ;;  %s7378_s21 = smov %s6016_s22 }
 0x950   : > { %p28_p7 = scmp.ge.s32.totalorder %s7375_s24, 6   ;;  %s7379_s22 = smov %s7376_s15 }
 0x952   :  { %30 = sbr.rel (!%p28_p7) target bundleno = 16 (0x10), region = 160 }
 0x959   :  { %4520 = vsyncpa [#allocation4], 1 }
 0x95a   :  { %4522 = vsyncpa [#allocation4 + $0x1], 1 }
 0x95b   :  { %4523 = vsyncpa [#allocation6], 1 }
 0x95c   :  { %4525 = vsyncpa [#allocation6 + $0x1], 1 }
 0x95d   :  { %4526 = vsyncpa [#allocation9], 1 }
 0x95e   :  { %4527 = vsyncpa [#allocation12], 1 }
 0x95f   :  { %4528 = vsyncpa [#allocation15], 1 }

</bundles_post_ra>
